<compile_context>
chip_gen: v7x
topology: tpu7x:2x2x1
jax: 0.10.0
libtpu: 0.0.40
codegen_flags: <defaults>
</compile_context>

<pallas_src>
import functools
import math

import jax
import jax.numpy as jnp
import numpy as np
from jax.experimental import pallas as pl
from jax.experimental.pallas import tpu as pltpu

_SQRT_2_OVER_PI = 0.7978845608028654
_GELU_COEFF = 0.044715


def _gelu_tanh(x):
    # tanh-form GELU: ~6 VALU ops + 1 EUP tanh (vs ~18 VALU + divide + exp for
    # the erf polynomial).  Max abs deviation from exact erf GELU is ~1e-3.
    # NOTE: nn.GELU() default is the exact erf form; the approximation is
    # flagged here and stays far below the verification tolerance.
    x3 = x * x * x
    return 0.5 * x * (1.0 + jnp.tanh(_SQRT_2_OVER_PI * (x + _GELU_COEFF * x3)))


def _mlp_kernel(x_ref, w1_ref, b1_ref, w2_ref, b2_ref, o_ref, acc_ref, *,
                act_dtype):
    # x_ref:  (TM, D)      w1_ref: (D, TH)    b1_ref: (1, TH)
    # w2_ref: (TH, Dout)   b2_ref: (1, Dout)
    # o_ref:  (TM, Dout)   acc_ref: (TM, Dout) f32 scratch
    j = pl.program_id(1)

    @pl.when(j == 0)
    def _():
        acc_ref[...] = jnp.zeros_like(acc_ref)

    # fc1 on the MXU, f32 accumulation, then bias.
    h = jnp.dot(x_ref[...], w1_ref[...], preferred_element_type=jnp.float32)
    h = h + b1_ref[...].astype(jnp.float32)

    # GELU (tanh form).  act_dtype is bf16 when the params are bf16 (packed
    # vregs + bf16 VPU/EUP on v6e/v7x), f32 otherwise.
    h = _gelu_tanh(h.astype(act_dtype))

    # ffn_ln: nn.Identity (module default subln=False); Dropout(p=0) is identity.
    # TODO(synk): subln=True LayerNorm and training-time dropout (p>0) are not
    # implemented (both are identity with the module defaults).

    # fc2 partial product over this hidden tile; accumulate in f32.
    acc_ref[...] += jnp.dot(h.astype(w2_ref.dtype), w2_ref[...],
                            preferred_element_type=jnp.float32)

    @pl.when(j == pl.num_programs(1) - 1)
    def _():
        out = acc_ref[...] + b2_ref[...].astype(jnp.float32)
        o_ref[...] = out.astype(o_ref.dtype)


def _round_down(v, mult):
    return (v // mult) * mult


def _round_up(v, mult):
    return -(-v // mult) * mult


def _vmem_budget_bytes():
    """Per-generation VMEM target: ~3/4 of physical capacity (96 MiB on the
    128 MiB v5e/v6e parts, 48 MiB on 64 MiB v7x), leaving compiler headroom."""
    try:
        cap = int(pltpu.get_tpu_info().vmem_capacity_bytes)
    except Exception:  # interpret mode / unknown device: assume the small part
        cap = 64 * 1024 * 1024
    return min((cap * 3) // 4, 96 * 1024 * 1024)


def _pick_tiles(m, d, h, d_out, x_bytes, param_bytes, out_bytes, budget):
    """Pick (TM, TH).

    TH tiles the hidden dim so resident weight blocks never blow VMEM (fixes
    the TM-collapse failure mode at realistic MLP widths); TM then takes the
    remaining budget.  All blocks are budgeted as double-buffered (the Pallas
    default).  TH always divides H exactly (padded H blocks would feed garbage
    into the fc2 reduction)."""
    planning = max(budget - 2 * 1024 * 1024, 4 * 1024 * 1024)

    def weight_block_bytes(th):
        # w1 (D,TH), b1 (1,TH), w2 (TH,Dout) double-buffered, plus b2 (1,Dout).
        return (2 * (d * th + th + th * d_out) * param_bytes
                + 2 * d_out * param_bytes)

    cands = [h]
    step = 256 if h % 256 == 0 else (128 if h % 128 == 0 else None)
    if step is not None:
        k = h // step
        cands += [t * step for t in range(k, 0, -1) if h % (t * step) == 0]
    th = h
    for cand in cands:
        if weight_block_bytes(cand) <= planning // 2:
            th = cand
            break
    else:
        th = cands[-1]

    wbytes = weight_block_bytes(th)
    # Per activation row: x tile + out tile (double-buffered), f32 accumulator
    # scratch, f32 fc1/GELU intermediate plus its casted copy for the fc2 matmul.
    per_row = (2 * d * x_bytes + 2 * d_out * out_bytes + d_out * 4
               + 2 * th * 4 + th * param_bytes)
    tm = int(min((planning - wbytes) // per_row, 1024))
    if tm >= m:
        # Whole M fits in one tile; split so the "parallel" axis can feed both
        # v7x TensorCores and the last store stays unmasked.
        tm = _round_up(pl.cdiv(m, 2), 256) if m >= 512 else m
    else:
        tm = max(_round_down(tm, 256), 256)
    tm = max(8, min(tm, _round_up(m, 8)))
    return tm, th


@jax.jit
def mlp_forward(x, w1_t, b1, w2_t, b2):
    """Fused Mlp forward.

    x:    (..., in_features)
    w1_t: (in_features, hidden_features)   -- pre-transposed once at setup
    b1:   (hidden_features,)
    w2_t: (hidden_features, out_features)  -- pre-transposed once at setup
    b2:   (out_features,)
    Returns (..., out_features), same dtype as x.
    """
    lead = x.shape[:-1]
    d = x.shape[-1]
    h = w1_t.shape[1]
    d_out = w2_t.shape[1]
    m = int(math.prod(lead)) if lead else 1

    x2 = x.reshape(m, d)
    b1_2 = b1.reshape(1, h)
    b2_2 = b2.reshape(1, d_out)

    x_bytes = jnp.dtype(x.dtype).itemsize
    param_bytes = jnp.dtype(w1_t.dtype).itemsize
    budget = _vmem_budget_bytes()
    tm, th = _pick_tiles(m, d, h, d_out, x_bytes, param_bytes, x_bytes, budget)
    grid = (pl.cdiv(m, tm), pl.cdiv(h, th))

    act_dtype = (jnp.bfloat16 if jnp.dtype(w1_t.dtype) == jnp.dtype(jnp.bfloat16)
                 else jnp.float32)

    out = pl.pallas_call(
        functools.partial(_mlp_kernel, act_dtype=act_dtype),
        out_shape=jax.ShapeDtypeStruct((m, d_out), x.dtype),
        grid_spec=pltpu.PrefetchScalarGridSpec(
            num_scalar_prefetch=0,
            grid=grid,
            in_specs=[
                pl.BlockSpec((tm, d), lambda i, j: (i, 0)),      # activations
                pl.BlockSpec((d, th), lambda i, j: (0, j)),      # fc1 weight
                pl.BlockSpec((1, th), lambda i, j: (0, j)),      # fc1 bias
                pl.BlockSpec((th, d_out), lambda i, j: (j, 0)),  # fc2 weight
                pl.BlockSpec((1, d_out), lambda i, j: (0, 0)),   # fc2 bias
            ],
            out_specs=pl.BlockSpec((tm, d_out), lambda i, j: (i, 0)),
            scratch_shapes=[pltpu.VMEM((tm, d_out), jnp.float32)],
        ),
        compiler_params=pltpu.CompilerParams(
            dimension_semantics=("parallel", "arbitrary"),
            vmem_limit_bytes=int(budget),
        ),
    )(x2, w1_t, b1_2, w2_t, b2_2)

    return out.reshape(*lead, d_out)


def _reference(x, w1, b1, w2, b2):
    """Pure-JAX reference matching the PyTorch Mlp defaults (exact GELU,
    ffn_ln=Identity, drop=0).  Weights in PyTorch (out, in) layout."""
    hp = jax.lax.Precision.HIGHEST
    hmid = jnp.dot(x, w1.T, precision=hp) + b1
    hmid = jax.nn.gelu(hmid, approximate=False)
    return jnp.dot(hmid, w2.T, precision=hp) + b2


if __name__ == "__main__":
    # Small ViT-style token shapes: batch=2, seq=512, dim=128, hidden=256
    # (feature dims are multiples of 128 so loads/stores are lane-dense).
    B, N, D, H = 2, 512, 128, 256
    key = jax.random.PRNGKey(0)
    kx, k1, kb1, k2, kb2 = jax.random.split(key, 5)

    x = jax.random.normal(kx, (B, N, D), dtype=jnp.float32)
    # PyTorch nn.Linear layout: weight is (out_features, in_features).
    w1 = jax.random.normal(k1, (H, D), dtype=jnp.float32) * (1.0 / math.sqrt(D))
    b1 = jax.random.normal(kb1, (H,), dtype=jnp.float32) * 0.02
    w2 = jax.random.normal(k2, (D, H), dtype=jnp.float32) * (1.0 / math.sqrt(H))
    b2 = jax.random.normal(kb2, (D,), dtype=jnp.float32) * 0.02

    # One-time parameter prep (outside the jitted forward): transpose to
    # (in, out) so the forward never re-streams the weights through HBM.
    w1_t = jax.block_until_ready(jnp.transpose(w1))
    w2_t = jax.block_until_ready(jnp.transpose(w2))

    out = jax.block_until_ready(mlp_forward(x, w1_t, b1, w2_t, b2))
    ref = jax.block_until_ready(_reference(x, w1, b1, w2, b2))

    assert out.shape == (B, N, D), out.shape
    np.testing.assert_allclose(np.asarray(out), np.asarray(ref),
                               rtol=2e-2, atol=2e-2)
    print("KERNEL_OK")
</pallas_src>

<mosaic_0001>
module attributes {stable_mosaic.version = 11 : i64} {
  func.func @_mlp_kernel(%arg0: i32, %arg1: i32, %arg2: memref<512x128xf32, #tpu.memory_space<vmem>>, %arg3: memref<128x256xf32, #tpu.memory_space<vmem>>, %arg4: memref<1x256xf32, #tpu.memory_space<vmem>>, %arg5: memref<256x128xf32, #tpu.memory_space<vmem>>, %arg6: memref<1x128xf32, #tpu.memory_space<vmem>>, %arg7: memref<512x128xf32, #tpu.memory_space<vmem>>, %arg8: memref<512x128xf32, #tpu.memory_space<vmem>>) attributes {dimension_semantics = [#tpu.dimension_semantics<parallel>, #tpu.dimension_semantics<arbitrary>], iteration_bounds = array<i64: 2, 1>, scalar_prefetch = 0 : i64, scratch_operands = 1 : i64, tpu.core_type = #tpu.core_type<tc>, window_params = [{transform_indices = @transform_0, window_bounds = array<i64: 512, 128>}, {transform_indices = @transform_1, window_bounds = array<i64: 128, 256>}, {transform_indices = @transform_2, window_bounds = array<i64: 1, 256>}, {transform_indices = @transform_3, window_bounds = array<i64: 256, 128>}, {pipeline_mode = #tpu.pipeline_mode<synchronous>, transform_indices = @transform_4, window_bounds = array<i64: 1, 128>}, {transform_indices = @transform_5, window_bounds = array<i64: 512, 128>}]} {
    %c0_i32 = arith.constant 0 : i32
    %0 = arith.cmpi eq, %arg1, %c0_i32 : i32
    %1 = arith.extui %0 : i1 to i32
    %c0_i32_0 = arith.constant 0 : i32
    %2 = arith.cmpi ne, %1, %c0_i32_0 : i32
    scf.if %2 {
      %cst_19 = arith.constant 0.000000e+00 : f32
      %30 = vector.broadcast %cst_19 : f32 to vector<512x128xf32>
      %c0_20 = arith.constant 0 : index
      %c0_21 = arith.constant 0 : index
      %31 = vector.load %arg8[%c0_20, %c0_21] : memref<512x128xf32, #tpu.memory_space<vmem>>, vector<512x128xf32>
      tpu.vector_store %arg8[%c0_20, %c0_21], %30 {strides = array<i32>} : memref<512x128xf32, #tpu.memory_space<vmem>>, vector<512x128xf32>,
    } else {
    }
    %c0 = arith.constant 0 : index
    %c0_1 = arith.constant 0 : index
    %3 = vector.load %arg2[%c0, %c0_1] : memref<512x128xf32, #tpu.memory_space<vmem>>, vector<512x128xf32>
    %c0_2 = arith.constant 0 : index
    %c0_3 = arith.constant 0 : index
    %4 = vector.load %arg3[%c0_2, %c0_3] : memref<128x256xf32, #tpu.memory_space<vmem>>, vector<128x256xf32>
    %cst = arith.constant dense<0.000000e+00> : vector<512x256xf32>
    %5 = tpu.matmul %3, %4, %cst {dimension_numbers = #tpu.dot_dimension_numbers<[1], [0], [0], [1], [0, 0, 1, 1], [], []>} : vector<512x128xf32>, vector<128x256xf32>, vector<512x256xf32> -> vector<512x256xf32>
    %c0_4 = arith.constant 0 : index
    %c0_5 = arith.constant 0 : index
    %6 = vector.load %arg4[%c0_4, %c0_5] : memref<1x256xf32, #tpu.memory_space<vmem>>, vector<1x256xf32>
    %7 = vector.broadcast %6 : vector<1x256xf32> to vector<512x256xf32>
    %8 = arith.addf %5, %7 : vector<512x256xf32>
    %9 = arith.mulf %8, %8 : vector<512x256xf32>
    %10 = arith.mulf %9, %8 : vector<512x256xf32>
    %cst_6 = arith.constant 5.000000e-01 : f32
    %11 = vector.broadcast %cst_6 : f32 to vector<512x256xf32>
    %12 = arith.mulf %11, %8 : vector<512x256xf32>
    %cst_7 = arith.constant 4.471500e-02 : f32
    %13 = vector.broadcast %cst_7 : f32 to vector<512x256xf32>
    %14 = arith.mulf %13, %10 : vector<512x256xf32>
    %15 = arith.addf %8, %14 : vector<512x256xf32>
    %cst_8 = arith.constant 0.797884583 : f32
    %16 = vector.broadcast %cst_8 : f32 to vector<512x256xf32>
    %17 = arith.mulf %16, %15 : vector<512x256xf32>
    %18 = math.tanh %17 : vector<512x256xf32>
    %cst_9 = arith.constant 1.000000e+00 : f32
    %19 = vector.broadcast %cst_9 : f32 to vector<512x256xf32>
    %20 = arith.addf %19, %18 : vector<512x256xf32>
    %21 = arith.mulf %12, %20 : vector<512x256xf32>
    %c0_10 = arith.constant 0 : index
    %c0_11 = arith.constant 0 : index
    %22 = vector.load %arg8[%c0_10, %c0_11] : memref<512x128xf32, #tpu.memory_space<vmem>>, vector<512x128xf32>
    %c0_12 = arith.constant 0 : index
    %c0_13 = arith.constant 0 : index
    %23 = vector.load %arg5[%c0_12, %c0_13] : memref<256x128xf32, #tpu.memory_space<vmem>>, vector<256x128xf32>
    %cst_14 = arith.constant dense<0.000000e+00> : vector<512x128xf32>
    %24 = tpu.matmul %21, %23, %cst_14 {dimension_numbers = #tpu.dot_dimension_numbers<[1], [0], [0], [1], [0, 0, 1, 1], [], []>} : vector<512x256xf32>, vector<256x128xf32>, vector<512x128xf32> -> vector<512x128xf32>
    %25 = arith.addf %22, %24 : vector<512x128xf32>
    %c0_15 = arith.constant 0 : index
    %c0_16 = arith.constant 0 : index
    %26 = vector.load %arg8[%c0_15, %c0_16] : memref<512x128xf32, #tpu.memory_space<vmem>>, vector<512x128xf32>
    tpu.vector_store %arg8[%c0_15, %c0_16], %25 {strides = array<i32>} : memref<512x128xf32, #tpu.memory_space<vmem>>, vector<512x128xf32>,
    %c0_i32_17 = arith.constant 0 : i32
    %27 = arith.cmpi eq, %arg1, %c0_i32_17 : i32
    %28 = arith.extui %27 : i1 to i32
    %c0_i32_18 = arith.constant 0 : i32
    %29 = arith.cmpi ne, %28, %c0_i32_18 : i32
    scf.if %29 {
      %c0_19 = arith.constant 0 : index
      %c0_20 = arith.constant 0 : index
      %30 = vector.load %arg8[%c0_19, %c0_20] : memref<512x128xf32, #tpu.memory_space<vmem>>, vector<512x128xf32>
      %c0_21 = arith.constant 0 : index
      %c0_22 = arith.constant 0 : index
      %31 = vector.load %arg6[%c0_21, %c0_22] : memref<1x128xf32, #tpu.memory_space<vmem>>, vector<1x128xf32>
      %32 = vector.broadcast %31 : vector<1x128xf32> to vector<512x128xf32>
      %33 = arith.addf %30, %32 : vector<512x128xf32>
      %c0_23 = arith.constant 0 : index
      %c0_24 = arith.constant 0 : index
      %34 = vector.load %arg7[%c0_23, %c0_24] : memref<512x128xf32, #tpu.memory_space<vmem>>, vector<512x128xf32>
      tpu.vector_store %arg7[%c0_23, %c0_24], %33 {strides = array<i32>} : memref<512x128xf32, #tpu.memory_space<vmem>>, vector<512x128xf32>,
    } else {
    }
    return
  }
  func.func @transform_0(%arg0: i32, %arg1: i32) -> (i32, i32) {
    %c0_i32 = arith.constant 0 : i32
    %c0_i32_0 = arith.constant 0 : i32
    return %arg0, %c0_i32 : i32, i32
  }
  func.func @transform_1(%arg0: i32, %arg1: i32) -> (i32, i32) {
    %c0_i32 = arith.constant 0 : i32
    %c0_i32_0 = arith.constant 0 : i32
    return %c0_i32, %arg1 : i32, i32
  }
  func.func @transform_2(%arg0: i32, %arg1: i32) -> (i32, i32) {
    %c0_i32 = arith.constant 0 : i32
    %c0_i32_0 = arith.constant 0 : i32
    return %c0_i32, %arg1 : i32, i32
  }
  func.func @transform_3(%arg0: i32, %arg1: i32) -> (i32, i32) {
    %c0_i32 = arith.constant 0 : i32
    %c0_i32_0 = arith.constant 0 : i32
    return %arg1, %c0_i32 : i32, i32
  }
  func.func @transform_4(%arg0: i32, %arg1: i32) -> (i32, i32) {
    %c0_i32 = arith.constant 0 : i32
    %c0_i32_0 = arith.constant 0 : i32
    %c0_i32_1 = arith.constant 0 : i32
    return %c0_i32, %c0_i32_0 : i32, i32
  }
  func.func @transform_5(%arg0: i32, %arg1: i32) -> (i32, i32) {
    %c0_i32 = arith.constant 0 : i32
    %c0_i32_0 = arith.constant 0 : i32
    return %arg0, %c0_i32 : i32, i32
  }
}

</mosaic_0001>

<bundles_post_ra>
// kernel: mlp_forward.1
= control target key start
LH: loop header
LB: loop body
LE: loop exit
PB: predicated region body
PF: predicated region fallthrough
CT: control target
= control target key end

     0   :  { %10 = vsyncpa [#allocation4], 0  ;;  %s5901_s0 = inlined_call_operand.hbm [shape: f32[1024,128], index: 0, kind: input, shape index: {}]   ;;  %s5902_s1 = inlined_call_operand.hbm [shape: f32[128,256], index: 1, kind: input, shape index: {}]   ;;  %s5903_s2 = inlined_call_operand.vmem [shape: f32[1,256], index: 2, kind: input, shape index: {}]   ;;  %s5904_s3 = inlined_call_operand.hbm [shape: f32[256,128], index: 3, kind: input, shape index: {}]   ;;  %s5905_s4 = inlined_call_operand.vmem [shape: f32[1,128], index: 4, kind: input, shape index: {}]   ;;  %s5906_s5 = inlined_call_operand.hbm [shape: f32[1024,128], index: 5, kind: output, shape index: {}]  }
   0x1   :  { %12 = vsyncpa [#allocation4 + $0x1], 0 }
   0x2   :  { %13 = vsyncpa [#allocation7], 0 }
   0x3   :  { %14 = vsyncpa [#allocation5], 0 }
   0x4   :  { %16 = vsyncpa [#allocation5 + $0x1], 0  ;;  %s3739_s18 = smov 0   ;;  %s3741_s19 = smov 0  }
   0x5   :  { %s3743_s20 = smov 0   ;;  %s3745_s21 = smov 0  }
   0x6   :  { %s3747_s22 = smov 0   ;;  %s3749_s23 = smov 0  }
   0x7 LB: > { %s3041_s24 = sadd.s32 4294967295, %s3695_s23   ;;  %s3042_s25 = sadd.s32 4294967294, %s3695_s23   ;;  %s3695_s23 = sphi %s3749_s23, %s22_s23   ;;  %s3691_s22 = sphi %s3747_s22, %s5961_s22   ;;  %s3687_s21 = sphi %s3745_s21, %s5960_s21   ;;  %s3683_s20 = sphi %s3743_s20, %s5959_s20   ;;  %s3679_s19 = sphi %s3741_s19, %s5958_s19   ;;  %s3675_s18 = sphi %s3739_s18, %s5957_s18  }
   0x8   : > { %p54_p0 = scmp.ne.s32.totalorder %s3679_s19, %s3675_s18  ;;  %p3773_p1 = scmp.eq.s32.totalorder %s3041_s24, 0 }
   0x9   : > { %p3777_p2 = scmp.eq.s32.totalorder %s3041_s24, 1  ;;  %p183_p3 = scmp.eq.s32.totalorder %s3042_s25, 1 }
   0xa   : > { %s5913_s26 = scalar_select %p3773_p1, 1, 0 }
   0xb   : > { %p3783_p4 = por %p3773_p1, %p54_p0  ;;  %p3043_p5 = scmp.ge.s32.totalorder %s3695_s23, 1 }
   0xc   : > { %p3788_p6 = por %p183_p3, %p54_p0  ;;  %p190_p7 = scmp.lt.s32.totalorder %s3695_s23, 3 }
   0xd   : > { %s5915_s28 = scalar_select %p3783_p4, 1, 0 }
   0xe   : > { %s5916_s29 = scalar_select %p3788_p6, 1, 0 }
   0xf   : > { %p3793_p8 = pnand %p3043_p5, %p190_p7  ;;  %s3697_s6 = smov [#allocation6]  }
  0x10   : > { %s205_s7 = sshll.u32 %s3697_s6, 4  ;;  %s3698_s9 = smov [#allocation8]   ;;  %s3797_s7 = int_to_ptr.vmem [resolvable:$true] %s205_s7 }
  0x11   : > { %p3188_p9 = pneg %p3793_p8  ;;  %s229_s10 = sshll.u32 %s3698_s9, 4  ;;  %s3808_s10 = int_to_ptr.vmem [resolvable:$true] %s229_s10 }
  0x12   : > { %s3523_s13 = scalar_lea.hbm %s5902_s1, 4096 }
  0x13   : > { %p3804_p11 = pnand %p3188_p9, %p3773_p1  ;;  %p3524_p12 = scmp.ne.s32.totalorder %s5902_s1, %s3523_s13 }
  0x14   : > { %p3530_p5 = scmp.lt.u32.totalorder %s3523_s13, %s5902_s1 }
  0x15   : > { %p3525_p13 = pneg %p3804_p11 }
  0x17   : > { %p3526_p0 = pnand %p3525_p13, %p3524_p12 }
  0x19   : > { %p3527_p3 = pneg %p3526_p0 }
  0x1b   : > { %p3532_p7 = pnand %p3530_p5, %p3527_p3 }
  0x1d   : > { %3535 = shalt.err (!%p3532_p7)
}
  0x1e   : > { %s3536_s24 = scalar_lea.vmem %s3797_s7, 4096  ;;  %p3544_p1 = scmp.lt.s32.totalorder %s3797_s7, %s3797_s7 }
  0x1f   : > { %p3537_p9 = scmp.ne.s32.totalorder %s3797_s7, %s3536_s24  ;;  %p3545_p12 = scmp.lt.s32.totalorder %s3536_s24, %s3536_s24 }
  0x21   : > { %p3539_p10 = pnand %p3537_p9, %p3525_p13  ;;  %p3546_p0 = por %p3545_p12, %p3544_p1 }
  0x23   : > { %p3540_p6 = pneg %p3539_p10 }
  0x25   : > { %p3547_p4 = pnand %p3546_p0, %p3540_p6 }
  0x27   : > { %3550 = shalt.err (!%p3547_p4)
}
  0x28   : > { %s3699_s25 = smov 256   ;;  %s3700_s6 = smov 16  }
  0x29   : > { %3191 = dma.hbm_to_vmem [thread:$0]  (!%p3804_p11), %s5902_s1, 4096, %s3797_s7, [#allocation7], %s3699_s25, %s3699_s25, %s3700_s6  }
  0x2a   : > { %s3551_s14 = scalar_lea.hbm %s5904_s3, 4096 }
  0x2b   : > { %p3552_p1 = scmp.ne.s32.totalorder %s5904_s3, %s3551_s14  ;;  %p3558_p10 = scmp.lt.u32.totalorder %s3551_s14, %s5904_s3 }
  0x2d   : > { %p3554_p4 = pnand %p3552_p1, %p3525_p13 }
  0x2f   : > { %p3555_p6 = pneg %p3554_p4 }
  0x31   : > { %p3560_p3 = pnand %p3558_p10, %p3555_p6 }
  0x33   : > { %3563 = shalt.err (!%p3560_p3)
}
  0x34   : > { %s3564_s7 = scalar_lea.vmem %s3808_s10, 4096  ;;  %p3572_p12 = scmp.lt.s32.totalorder %s3808_s10, %s3808_s10 }
  0x35   : > { %p3565_p5 = scmp.ne.s32.totalorder %s3808_s10, %s3564_s7  ;;  %p3573_p0 = scmp.lt.s32.totalorder %s3564_s7, %s3564_s7 }
  0x37   : > { %p3567_p7 = pnand %p3565_p5, %p3525_p13  ;;  %p3574_p1 = por %p3573_p0, %p3572_p12 }
  0x39   : > { %p3568_p9 = pneg %p3567_p7 }
  0x3b   : > { %p3575_p4 = pnand %p3574_p1, %p3568_p9 }
  0x3d   : > { %3578 = shalt.err (!%p3575_p4)
}
  0x3e   : > { %s5910_s25 = smov 128   ;;  %s3702_s6 = smov 8  }
  0x3f   : > { %3194 = dma.hbm_to_vmem [thread:$0]  (!%p3804_p11), %s5904_s3, 4096, %s3808_s10, [#allocation7], %s5910_s25, %s5910_s25, %s3702_s6  }
  0x40   : > { %s34_s12 = sadd.s32 1, %s3691_s22  ;;  %s41_s13 = sadd.s32 1, %s3683_s20 }
  0x41   : > { %p36_p13 = scmp.ge.s32.totalorder %s34_s12, 2  ;;  %p48_p6 = scmp.ne.s32.totalorder %s3683_s20, %s3679_s19 }
  0x42   : > { %p49_p10 = scmp.eq.s32.totalorder %s3695_s23, 0  ;;  %p3205_p3 = scmp.lt.s32.totalorder %s3695_s23, 2 }
  0x43   : > { %s5963_s12 = smov (%p36_p13, %s34_s12), 0  ;;  %p3875_p7 = por %p3777_p2, %p48_p6 }
  0x44   : > { %p50_p5 = por %p49_p10, %p48_p6  ;;  %s38_s14 = ssub.s32 %s3691_s22, %s5963_s12 }
  0x45   : > { %s5919_s8 = scalar_select %p3875_p7, 1, 0 }
  0x46   : > { %s246_s15 = sand.u32 1, %s3683_s20   ;;  %p39_p9 = scmp.eq.s32.totalorder %s38_s14, 0 }
  0x47   : > { %s3048_s10 = sshll.u32 %s246_s15, 9  ;;  %s3062_s16 = sshll.u32 %s3691_s22, 13 }
  0x48   : > { %s3884_s17 = scalar_select %p39_p9, %s3683_s20, %s41_s13  }
  0x49   : > { %s3889_s9 = scalar_lea.hbm %s5901_s0, %s3062_s16  ;;  %s250_s27 = scalar_lea.vmem [#allocation3], %s3048_s10 }
  0x4a   : > { %s257_s11 = sshll.u32 %s250_s27, 4  ;;  %p3893_p2 = pnand %p3205_p3, %p50_p5  ;;  %s3897_s11 = int_to_ptr.vmem [resolvable:$true] %s257_s11 }
  0x4b   : > { %s3899_s13 = scalar_lea.sflag [#allocation4], %s246_s15  ;;  %s3579_s14 = scalar_lea.hbm %s3889_s9, 8192 }
  0x4c   : > { %p3580_p11 = scmp.ne.s32.totalorder %s3889_s9, %s3579_s14  ;;  %p3581_p12 = pneg %p3893_p2 }
  0x4d   : > { %s3584_s24 = scalar_lea.hbm %s5901_s0, 16384  ;;  %p3585_p4 = scmp.lt.u32.totalorder %s3889_s9, %s5901_s0 }
  0x4e   : > { %p3582_p0 = pnand %p3581_p12, %p3580_p11  ;;  %p3586_p13 = scmp.lt.u32.totalorder %s3584_s24, %s3579_s14 }
  0x4f   : > { %p3588_p10 = scmp.lt.u32.totalorder %s3579_s14, %s3889_s9 }
  0x50   : > { %p3583_p1 = pneg %p3582_p0  ;;  %p3587_p6 = por %p3586_p13, %p3585_p4 }
  0x52   : > { %p3589_p3 = por %p3588_p10, %p3587_p6 }
  0x54   : > { %p3590_p5 = pnand %p3589_p3, %p3583_p1 }
  0x56   : > { %3593 = shalt.err (!%p3590_p5)
}
  0x57   : > { %s3594_s15 = scalar_lea.vmem %s3897_s11, 8192  ;;  %s3703_s10 = smov [#allocation3]  }
  0x58   : > { %p3595_p9 = scmp.ne.s32.totalorder %s3897_s11, %s3594_s15  ;;  %s3599_s16 = sshll.u32 %s3703_s10, 4  ;;  %s3600_s16 = int_to_ptr.vmem [resolvable:$false] %s3599_s16 }
  0x59   : > { %s3601_s7 = scalar_lea.vmem %s3600_s16, 16384  ;;  %p3602_p7 = scmp.lt.s32.totalorder %s3897_s11, %s3600_s16 }
  0x5a   : > { %p3597_p11 = pnand %p3595_p9, %p3581_p12  ;;  %p3603_p4 = scmp.lt.s32.totalorder %s3601_s7, %s3594_s15 }
  0x5c   : > { %p3598_p0 = pneg %p3597_p11  ;;  %p3604_p13 = por %p3603_p4, %p3602_p7 }
  0x5e   : > { %p3605_p6 = pnand %p3604_p13, %p3598_p0 }
  0x60   : > { %3608 = shalt.err (!%p3605_p6)
}
  0x61   : > { %s5921_s14 = smov 128   ;;  %269 = sbr.rel (%p3793_p8) target bundleno = 932 (0x3a4), region = 40 }
  0x62   : > { %3198 = dma.hbm_to_vmem [thread:$0]  (!%p3893_p2), %s3889_s9, 8192, %s3897_s11, %s3899_s13, %s5921_s14, %s5921_s14, %s3702_s6  }
  0x68   : > { %s3933_s24 = sand.u32 1, %s3679_s19   ;;  %p5922_p7 = scmp.ne.s32.totalorder %s5915_s28, 0 }
  0x69   : > { %s3052_s27 = sshll.u32 %s3933_s24, 9  ;;  %s272_s15 = scalar_lea.sflag [#allocation4], %s3933_s24 }
  0x6a   : > { %s3939_s25 = scalar_lea.vmem [#allocation3], %s3052_s27 }
  0x6b   : > { %3662 = dma.done.wait (%p5922_p7), %s272_s15, 8192  }
  0x6c   : > { %3664 = vsyncadd (%p5922_p7), %s272_s15, 4294959104  ;;  %p5923_p2 = scmp.ne.s32.totalorder %s5913_s26, 0 }
  0x6e   : > { %3666 = dma.done.wait (%p5923_p2), [#allocation7], 8192  }
  0x6f   : > { %3668 = vsyncadd (%p5923_p2), [#allocation7], 4294959104  ;;  %v3704_v0 = vmov 0.0   ;;  %v456_v1 = vld [vmem:[#allocation6 + $0x8] sm:$0xff]  ;;  %v458_v2 = vld [vmem:[#allocation6 + $0x18] sm:$0xff]  ;;  %s5675_s9 = scalar_lea.vmem [#allocation9], %s3052_s27 }
  0x70   : > { %563 = vmatprep.mubr.f32.mxu0 %v3704_v0  ;;  %v455_v3 = vld [vmem:[#allocation6] sm:$0xff]  ;;  %v3064_v4 = vpack.c.bf16 %v458_v2, %v456_v1  ;;  %v457_v5 = vld [vmem:[#allocation6 + $0x10] sm:$0xff]  ;;  %v460_v6 = vld [vmem:[#allocation6 + $0x28] sm:$0xff]  ;;  %s3063_s11 = sshll.u32 %s3687_s21, 13  ;;  %s2925_s13 = sshll.u32 %s5675_s9, 4  ;;  %s5850_s13 = int_to_ptr.vmem [resolvable:$true] %s2925_s13 }
  0x71   : > { %v462_v7 = vld [vmem:[#allocation6 + $0x38] sm:$0xff]  ;;  %v3066_v8 = vpack.c.bf16 %v457_v5, %v455_v3  ;;  %v459_v10 = vld [vmem:[#allocation6 + $0x20] sm:$0xff]  ;;  %v461_v11 = vld [vmem:[#allocation6 + $0x30] sm:$0xff]  ;;  %s5848_s7 = scalar_lea.hbm %s5906_s5, %s3063_s11  ;;  %s2912_s14 = scalar_lea.sflag [#allocation5], %s3933_s24 }
  0x72   : > { %v3068_v9 = vpack.c.bf16 %v462_v7, %v460_v6  ;;  %v464_v12 = vld [vmem:[#allocation6 + $0x48] sm:$0xff]  ;;  %3065 = vmatprep.subr.bf16.mxu0 %v3064_v4  ;;  %v466_v13 = vld [vmem:[#allocation6 + $0x58] sm:$0xff]  ;;  %v3070_v14 = vpack.c.bf16 %v461_v11, %v459_v10  ;;  %v463_v16 = vld [vmem:[#allocation6 + $0x40] sm:$0xff]  ;;  %v3705_v6 = vmov 0.0|0.0   ;;  %s3609_s27 = scalar_lea.vmem %s5850_s13, 8192  ;;  %p5954_p12 = scmp.ne.s32.totalorder %s5919_s8, 0 }
  0x73   : > { %3067 = vmatpush1.bf16.msra.mxu0 %v3066_v8  ;;  %v3072_v15 = vpack.c.bf16 %v466_v13, %v464_v12  ;;  %v465_v17 = vld [vmem:[#allocation6 + $0x50] sm:$0xff]  ;;  %v468_v18 = vld [vmem:[#allocation6 + $0x68] sm:$0xff]  ;;  %v470_v19 = vld [vmem:[#allocation6 + $0x78] sm:$0xff]  ;;  %3144 = vmatprep.subr.bf16.mxu1 %v3705_v6  ;;  %p3610_p8 = scmp.ne.s32.totalorder %s5850_s13, %s3609_s27  ;;  %s3706_s21 = smov [#allocation9]  }
  0x74   : > { %3069 = vmatprep.subr.bf16.mxu0 %v3068_v9  ;;  %v3074_v20 = vpack.c.bf16 %v465_v17, %v463_v16  ;;  %v3076_v21 = vpack.c.bf16 %v470_v19, %v468_v18  ;;  %v467_v22 = vld [vmem:[#allocation6 + $0x60] sm:$0xff]  ;;  %v469_v23 = vld [vmem:[#allocation6 + $0x70] sm:$0xff]  ;;  %v472_v24 = vld [vmem:[#allocation6 + $0x88] sm:$0xff]  ;;  %s3613_s15 = sshll.u32 %s3706_s21, 4  ;;  %s3614_s15 = int_to_ptr.vmem [resolvable:$false] %s3613_s15 }
  0x75   : > { %v474_v25 = vld [vmem:[#allocation6 + $0x98] sm:$0xff]  ;;  %v3078_v26 = vpack.c.bf16 %v469_v23, %v467_v22  ;;  %v471_v28 = vld [vmem:[#allocation6 + $0x80] sm:$0xff]  ;;  %v473_v29 = vld [vmem:[#allocation6 + $0x90] sm:$0xff]  ;;  %p3611_p1 = pnand %p3610_p8, %p5954_p12  ;;  %p3616_p3 = scmp.lt.s32.totalorder %s5850_s13, %s3614_s15 }
  0x76   : > { %v3080_v27 = vpack.c.bf16 %v474_v25, %v472_v24  ;;  %v476_v30 = vld [vmem:[#allocation6 + $0xa8] sm:$0xff]  ;;  %v478_v31 = vld [vmem:[#allocation6 + $0xb8] sm:$0xff]  ;;  %v3082_v32 = vpack.c.bf16 %v473_v29, %v471_v28  ;;  %v475_v34 = vld [vmem:[#allocation6 + $0xa0] sm:$0xff] }
  0x77   : > { %3071 = vmatpush1.bf16.msra.mxu0 %v3070_v14  ;;  %v3084_v33 = vpack.c.bf16 %v478_v31, %v476_v30  ;;  %v477_v35 = vld [vmem:[#allocation6 + $0xb0] sm:$0xff]  ;;  %v480_v36 = vld [vmem:[#allocation6 + $0xc8] sm:$0xff]  ;;  %v482_v37 = vld [vmem:[#allocation6 + $0xd8] sm:$0xff]  ;;  %p3612_p10 = pneg %p3611_p1 }
  0x78   : > { %3073 = vmatprep.subr.bf16.mxu0 %v3072_v15  ;;  %v3086_v38 = vpack.c.bf16 %v477_v35, %v475_v34  ;;  %v3088_v39 = vpack.c.bf16 %v482_v37, %v480_v36  ;;  %v479_v40 = vld [vmem:[#allocation6 + $0xc0] sm:$0xff]  ;;  %v481_v41 = vld [vmem:[#allocation6 + $0xd0] sm:$0xff]  ;;  %v484_v42 = vld [vmem:[#allocation6 + $0xe8] sm:$0xff] }
  0x79   : > { %v486_v43 = vld [vmem:[#allocation6 + $0xf8] sm:$0xff]  ;;  %v3090_v44 = vpack.c.bf16 %v481_v41, %v479_v40  ;;  %v483_v46 = vld [vmem:[#allocation6 + $0xe0] sm:$0xff]  ;;  %v485_v47 = vld [vmem:[#allocation6 + $0xf0] sm:$0xff] }
  0x7a   : > { %v3092_v45 = vpack.c.bf16 %v486_v43, %v484_v42  ;;  %v3094_v48 = vpack.c.bf16 %v485_v47, %v483_v46  ;;  %v391_v49 = vld [vmem:[%s3939_s25] sm:$0xff]  ;;  %v392_v50 = vld [vmem:[%s3939_s25 + $0x8] sm:$0xff]  ;;  %v393_v51 = vld [vmem:[%s3939_s25 + $0x10] sm:$0xff] }
  0x7b   : > { %3075 = vmatpush1.bf16.msra.mxu0 %v3074_v20  ;;  %v394_v52 = vld [vmem:[%s3939_s25 + $0x18] sm:$0xff]  ;;  %v395_v53 = vld [vmem:[%s3939_s25 + $0x20] sm:$0xff]  ;;  %v396_v54 = vld [vmem:[%s3939_s25 + $0x28] sm:$0xff] }
  0x7c   : > { %3077 = vmatprep.subr.bf16.mxu0 %v3076_v21  ;;  %v397_v55 = vld [vmem:[%s3939_s25 + $0x30] sm:$0xff]  ;;  %v398_v56 = vld [vmem:[%s3939_s25 + $0x38] sm:$0xff]  ;;  %v399_v57 = vld [vmem:[%s3939_s25 + $0x40] sm:$0xff] }
  0x7d   : > { %v400_v58 = vld [vmem:[%s3939_s25 + $0x48] sm:$0xff]  ;;  %v401_v59 = vld [vmem:[%s3939_s25 + $0x50] sm:$0xff]  ;;  %v402_v60 = vld [vmem:[%s3939_s25 + $0x58] sm:$0xff] }
  0x7e   : > { %v403_v61 = vld [vmem:[%s3939_s25 + $0x60] sm:$0xff]  ;;  %v404_v62 = vld [vmem:[%s3939_s25 + $0x68] sm:$0xff]  ;;  %v405_v63 = vld [vmem:[%s3939_s25 + $0x70] sm:$0xff] }
  0x7f   : > { %3079 = vmatpush1.bf16.msra.mxu0 %v3078_v26  ;;  %v406_v1 = vld [vmem:[%s3939_s25 + $0x78] sm:$0xff]  ;;  %v407_v2 = vld [vmem:[%s3939_s25 + $0x80] sm:$0xff]  ;;  %v2165_v4 = vld [vmem:[#allocation8 + $0x8] sm:$0xff] }
  0x80   : > { %3081 = vmatprep.subr.bf16.mxu0 %v3080_v27  ;;  %v2164_v3 = vld [vmem:[#allocation8] sm:$0xff]  ;;  %v408_v7 = vld [vmem:[%s3939_s25 + $0x88] sm:$0xff]  ;;  %v2166_v8 = vld [vmem:[#allocation8 + $0x10] sm:$0xff] }
  0x81   : > { %v3097_v5 = vpack.c.bf16 %v2165_v4, %v2164_v3  ;;  %v2167_v9 = vld [vmem:[#allocation8 + $0x18] sm:$0xff]  ;;  %v409_v11 = vld [vmem:[%s3939_s25 + $0x90] sm:$0xff]  ;;  %v2168_v12 = vld [vmem:[#allocation8 + $0x20] sm:$0xff] }
  0x82   : > { %v3100_v10 = vpack.c.bf16 %v2167_v9, %v2166_v8  ;;  %v2169_v13 = vld [vmem:[#allocation8 + $0x28] sm:$0xff]  ;;  %v410_v15 = vld [vmem:[%s3939_s25 + $0x98] sm:$0xff]  ;;  %v2170_v16 = vld [vmem:[#allocation8 + $0x30] sm:$0xff] }
  0x83   : > { %3083 = vmatpush1.bf16.msra.mxu0 %v3082_v32  ;;  %3160 = vmatpush1.bf16.msra.mxu1 %v3097_v5  ;;  %v3103_v14 = vpack.c.bf16 %v2169_v13, %v2168_v12  ;;  %v2171_v17 = vld [vmem:[#allocation8 + $0x38] sm:$0xff]  ;;  %v411_v19 = vld [vmem:[%s3939_s25 + $0xa0] sm:$0xff]  ;;  %v2173_v21 = vld [vmem:[#allocation8 + $0x48] sm:$0xff] }
  0x84   : > { %3085 = vmatprep.subr.bf16.mxu0 %v3084_v33  ;;  %3145 = vmatprep.subr.bf16.mxu1 %v3705_v6  ;;  %v3106_v18 = vpack.c.bf16 %v2171_v17, %v2170_v16  ;;  %v2172_v20 = vld [vmem:[#allocation8 + $0x40] sm:$0xff]  ;;  %v412_v23 = vld [vmem:[%s3939_s25 + $0xa8] sm:$0xff]  ;;  %v2174_v24 = vld [vmem:[#allocation8 + $0x50] sm:$0xff] }
  0x85   : > { %v3109_v22 = vpack.c.bf16 %v2173_v21, %v2172_v20  ;;  %v2175_v25 = vld [vmem:[#allocation8 + $0x58] sm:$0xff]  ;;  %v413_v27 = vld [vmem:[%s3939_s25 + $0xb0] sm:$0xff]  ;;  %v2176_v28 = vld [vmem:[#allocation8 + $0x60] sm:$0xff] }
  0x86   : > { %v3112_v26 = vpack.c.bf16 %v2175_v25, %v2174_v24  ;;  %v2177_v29 = vld [vmem:[#allocation8 + $0x68] sm:$0xff]  ;;  %v414_v31 = vld [vmem:[%s3939_s25 + $0xb8] sm:$0xff]  ;;  %v2178_v32 = vld [vmem:[#allocation8 + $0x70] sm:$0xff] }
  0x87   : > { %3087 = vmatpush1.bf16.msra.mxu0 %v3086_v38  ;;  %3161 = vmatpush1.bf16.msra.mxu1 %v3100_v10  ;;  %v3115_v30 = vpack.c.bf16 %v2177_v29, %v2176_v28  ;;  %v2179_v33 = vld [vmem:[#allocation8 + $0x78] sm:$0xff]  ;;  %v415_v35 = vld [vmem:[%s3939_s25 + $0xc0] sm:$0xff]  ;;  %v2181_v37 = vld [vmem:[#allocation8 + $0x88] sm:$0xff] }
  0x88   : > { %3089 = vmatprep.subr.bf16.mxu0 %v3088_v39  ;;  %3146 = vmatprep.subr.bf16.mxu1 %v3705_v6  ;;  %v3118_v34 = vpack.c.bf16 %v2179_v33, %v2178_v32  ;;  %v2180_v36 = vld [vmem:[#allocation8 + $0x80] sm:$0xff]  ;;  %v416_v39 = vld [vmem:[%s3939_s25 + $0xc8] sm:$0xff]  ;;  %v2182_v40 = vld [vmem:[#allocation8 + $0x90] sm:$0xff] }
  0x89   : > { %v3121_v38 = vpack.c.bf16 %v2181_v37, %v2180_v36  ;;  %v2183_v41 = vld [vmem:[#allocation8 + $0x98] sm:$0xff]  ;;  %v417_v43 = vld [vmem:[%s3939_s25 + $0xd0] sm:$0xff]  ;;  %v423_v4 = vld [vmem:[%s3939_s25 + $0x100] sm:$0xff] }
  0x8a   : > { %v3124_v42 = vpack.c.bf16 %v2183_v41, %v2182_v40  ;;  %v418_v47 = vld [vmem:[%s3939_s25 + $0xd8] sm:$0xff]  ;;  %v427_v8 = vld [vmem:[%s3939_s25 + $0x120] sm:$0xff]  ;;  %v428_v9 = vld [vmem:[%s3939_s25 + $0x128] sm:$0xff] }
  0x8b   : > { %3091 = vmatpush1.bf16.msra.mxu0 %v3090_v44  ;;  %3162 = vmatpush1.bf16.msra.mxu1 %v3103_v14  ;;  %v2184_v44 = vld [vmem:[#allocation8 + $0xa0] sm:$0xff]  ;;  %v432_v13 = vld [vmem:[%s3939_s25 + $0x148] sm:$0xff]  ;;  %v442_v25 = vld [vmem:[%s3939_s25 + $0x198] sm:$0xff] }
  0x8c   : > { %3093 = vmatprep.subr.bf16.mxu0 %v3092_v45  ;;  %3147 = vmatprep.subr.bf16.mxu1 %v3705_v6  ;;  %v2185_v45 = vld [vmem:[#allocation8 + $0xa8] sm:$0xff]  ;;  %v431_v12 = vld [vmem:[%s3939_s25 + $0x140] sm:$0xff]  ;;  %v445_v37 = vld [vmem:[%s3939_s25 + $0x1b0] sm:$0xff] }
  0x8d   : > { %v3127_v46 = vpack.c.bf16 %v2185_v45, %v2184_v44  ;;  %v435_v16 = vld [vmem:[%s3939_s25 + $0x160] sm:$0xff]  ;;  %v436_v17 = vld [vmem:[%s3939_s25 + $0x168] sm:$0xff] }
  0x8e   : > { %v439_v20 = vld [vmem:[%s3939_s25 + $0x180] sm:$0xff]  ;;  %v440_v21 = vld [vmem:[%s3939_s25 + $0x188] sm:$0xff] }
  0x8f   : > { %3095 = vmatpush1.bf16.msra.mxu0 %v3094_v48  ;;  %3163 = vmatpush1.bf16.msra.mxu1 %v3106_v18  ;;  %v2186_v48 = vld [vmem:[#allocation8 + $0xb0] sm:$0xff]  ;;  %v487_v28 = vld [vmem:[%s5903_s2] sm:$0x3]  ;;  %v444_v32 = vld [vmem:[%s3939_s25 + $0x1a8] sm:$0xff] }
  0x90   : > { %3096 = vmatprep.subr.bf16.mxu0 %v3705_v6  ;;  %3148 = vmatprep.subr.bf16.mxu1 %v3705_v6 }
  0x92   : > { %564 = vmatmul.mubr.f32.vlgmr.msra.gmra.mrb[0].mxu0 %v391_v49  ;;  %v2187_v49 = vld [vmem:[#allocation8 + $0xb8] sm:$0xff] }
  0x93   : > { %569 = vmatprep.mubr.f32.mxu0 %v3704_v0  ;;  %3098 = vmatpush1.bf16.msra.mxu0 %v3097_v5  ;;  %v424_v5 = vld [vmem:[%s3939_s25 + $0x108] sm:$0xff] }
  0x94   : > { %3099 = vmatprep.subr.bf16.mxu0 %v3705_v6  ;;  %3164 = vmatpush1.bf16.msra.mxu1 %v3109_v22 }
  0x95   : > { %3149 = vmatprep.subr.bf16.mxu1 %v3705_v6 }
  0x96   : > { %570 = vmatmul.mubr.f32.gmra.mrb[2].mxu0 %v392_v50  ;;  %v3130_v50 = vpack.c.bf16 %v2187_v49, %v2186_v48 }
  0x97   : > { %575 = vmatprep.mubr.f32.mxu0 %v3704_v0  ;;  %3101 = vmatpush1.bf16.msra.mxu0 %v3100_v10  ;;  %v429_v10 = vld [vmem:[%s3939_s25 + $0x130] sm:$0xff] }
  0x98   : > { %3102 = vmatprep.subr.bf16.mxu0 %v3705_v6  ;;  %3165 = vmatpush1.bf16.msra.mxu1 %v3112_v26 }
  0x99   : > { %3150 = vmatprep.subr.bf16.mxu1 %v3705_v6 }
  0x9a   : > { %576 = vmatmul.mubr.f32.gmra.mrb[4].mxu0 %v393_v51  ;;  %v419_v51 = vld [vmem:[%s3939_s25 + $0xe0] sm:$0xff] }
  0x9b   : > { %581 = vmatprep.mubr.f32.mxu0 %v3704_v0  ;;  %3104 = vmatpush1.bf16.msra.mxu0 %v3103_v14  ;;  %v433_v14 = vld [vmem:[%s3939_s25 + $0x150] sm:$0xff] }
  0x9c   : > { %3105 = vmatprep.subr.bf16.mxu0 %v3705_v6  ;;  %3166 = vmatpush1.bf16.msra.mxu1 %v3115_v30 }
  0x9d   : > { %3151 = vmatprep.subr.bf16.mxu1 %v3705_v6 }
  0x9e   : > { %582 = vmatmul.mubr.f32.gmra.mrb[6].mxu0 %v394_v52  ;;  %v2188_v52 = vld [vmem:[#allocation8 + $0xc0] sm:$0xff] }
  0x9f   : > { %587 = vmatprep.mubr.f32.mxu0 %v3704_v0  ;;  %3107 = vmatpush1.bf16.msra.mxu0 %v3106_v18  ;;  %v437_v18 = vld [vmem:[%s3939_s25 + $0x170] sm:$0xff] }
  0xa0   : > { %3108 = vmatprep.subr.bf16.mxu0 %v3705_v6  ;;  %3167 = vmatpush1.bf16.msra.mxu1 %v3118_v34 }
  0xa1   : > { %3152 = vmatprep.subr.bf16.mxu1 %v3705_v6 }
  0xa2   : > { %588 = vmatmul.mubr.f32.gmra.mrb[8].mxu0 %v395_v53  ;;  %v2189_v53 = vld [vmem:[#allocation8 + $0xc8] sm:$0xff] }
  0xa3   : > { %593 = vmatprep.mubr.f32.mxu0 %v3704_v0  ;;  %3110 = vmatpush1.bf16.msra.mxu0 %v3109_v22  ;;  %v489_v22 = vlaneseq }
  0xa4   : > { %3111 = vmatprep.subr.bf16.mxu0 %v3705_v6  ;;  %3168 = vmatpush1.bf16.msra.mxu1 %v3121_v38 }
  0xa5   : > { %3153 = vmatprep.subr.bf16.mxu1 %v3705_v6  ;;  %v490_v24 = vshrl.u32 %v489_v22, 7 }
  0xa6   : > { %594 = vmatmul.mubr.f32.gmra.mrb[10].mxu0 %v396_v54  ;;  %v3133_v54 = vpack.c.bf16 %v2189_v53, %v2188_v52 }
  0xa7   : > { %599 = vmatprep.mubr.f32.mxu0 %v3704_v0  ;;  %3113 = vmatpush1.bf16.msra.mxu0 %v3112_v26  ;;  %v491_v26 = vsub.s32 0, %v490_v24  ;;  %v495_v29 = vsub.s32 1, %v490_v24 }
  0xa8   : > { %3114 = vmatprep.subr.bf16.mxu0 %v3705_v6  ;;  %3169 = vmatpush1.bf16.msra.mxu1 %v3124_v42 }
  0xa9   : > { %3154 = vmatprep.subr.bf16.mxu1 %v3705_v6 }
  0xaa   : > { %600 = vmatmul.mubr.f32.gmra.mrb[12].mxu0 %v397_v55  ;;  %v420_v55 = vld [vmem:[%s3939_s25 + $0xe8] sm:$0xff] }
  0xab   : > { %605 = vmatprep.mubr.f32.mxu0 %v3704_v0  ;;  %3116 = vmatpush1.bf16.msra.mxu0 %v3115_v30  ;;  %v4090_v30 = vrot.slane %v487_v28, %v491_v26 }
  0xac   : > { %3117 = vmatprep.subr.bf16.mxu0 %v3705_v6  ;;  %3170 = vmatpush1.bf16.msra.mxu1 %v3127_v46 }
  0xad   : > { %3155 = vmatprep.subr.bf16.mxu1 %v3705_v6 }
  0xae   : > { %606 = vmatmul.mubr.f32.gmra.mrb[14].mxu0 %v398_v56  ;;  %v2190_v56 = vld [vmem:[#allocation8 + $0xd0] sm:$0xff] }
  0xaf   : > { %611 = vmatprep.mubr.f32.mxu0 %v3704_v0  ;;  %3119 = vmatpush1.bf16.msra.mxu0 %v3118_v34 }
  0xb0   : > { %3120 = vmatprep.subr.bf16.mxu0 %v3705_v6  ;;  %3171 = vmatpush1.bf16.msra.mxu1 %v3130_v50 }
  0xb1   : > { %3156 = vmatprep.subr.bf16.mxu1 %v3705_v6 }
  0xb2   : > { %612 = vmatmul.mubr.f32.gmra.mrb[16].mxu0 %v399_v57  ;;  %v2191_v57 = vld [vmem:[#allocation8 + $0xd8] sm:$0xff] }
  0xb3   : > { %617 = vmatprep.mubr.f32.mxu0 %v3704_v0  ;;  %3122 = vmatpush1.bf16.msra.mxu0 %v3121_v38 }
  0xb4   : > { %3123 = vmatprep.subr.bf16.mxu0 %v3705_v6  ;;  %3172 = vmatpush1.bf16.msra.mxu1 %v3133_v54 }
  0xb5   : > { %3157 = vmatprep.subr.bf16.mxu1 %v3705_v6 }
  0xb6   : > { %618 = vmatmul.mubr.f32.gmra.mrb[18].mxu0 %v400_v58  ;;  %v3136_v58 = vpack.c.bf16 %v2191_v57, %v2190_v56 }
  0xb7   : > { %623 = vmatprep.mubr.f32.mxu0 %v3704_v0  ;;  %3125 = vmatpush1.bf16.msra.mxu0 %v3124_v42 }
  0xb8   : > { %3126 = vmatprep.subr.bf16.mxu0 %v3705_v6  ;;  %3173 = vmatpush1.bf16.msra.mxu1 %v3136_v58 }
  0xb9   : > { %3158 = vmatprep.subr.bf16.mxu1 %v3705_v6 }
  0xba   : > { %624 = vmatmul.mubr.f32.gmra.mrb[20].mxu0 %v401_v59  ;;  %v421_v59 = vld [vmem:[%s3939_s25 + $0xf0] sm:$0xff] }
  0xbb   : > { %629 = vmatprep.mubr.f32.mxu0 %v3704_v0  ;;  %3128 = vmatpush1.bf16.msra.mxu0 %v3127_v46  ;;  %v446_v46 = vld [vmem:[%s3939_s25 + $0x1b8] sm:$0xff] }
  0xbc   : > { %3129 = vmatprep.subr.bf16.mxu0 %v3705_v6 }
  0xbe   : > { %630 = vmatmul.mubr.f32.gmra.mrb[22].mxu0 %v402_v60  ;;  %v2192_v60 = vld [vmem:[#allocation8 + $0xe0] sm:$0xff] }
  0xbf   : > { %635 = vmatprep.mubr.f32.mxu0 %v3704_v0  ;;  %3131 = vmatpush1.bf16.msra.mxu0 %v3130_v50 }
  0xc0   : > { %3132 = vmatprep.subr.bf16.mxu0 %v3705_v6 }
  0xc2   : > { %636 = vmatmul.mubr.f32.gmra.mrb[24].mxu0 %v403_v61  ;;  %v2193_v61 = vld [vmem:[#allocation8 + $0xe8] sm:$0xff] }
  0xc3   : > { %641 = vmatprep.mubr.f32.mxu0 %v3704_v0  ;;  %3134 = vmatpush1.bf16.msra.mxu0 %v3133_v54 }
  0xc4   : > { %3135 = vmatprep.subr.bf16.mxu0 %v3705_v6 }
  0xc6   : > { %642 = vmatmul.mubr.f32.gmra.mrb[26].mxu0 %v404_v62  ;;  %v3139_v62 = vpack.c.bf16 %v2193_v61, %v2192_v60 }
  0xc7   : > { %647 = vmatprep.mubr.f32.mxu0 %v3704_v0  ;;  %3137 = vmatpush1.bf16.msra.mxu0 %v3136_v58  ;;  %v447_v58 = vld [vmem:[%s3939_s25 + $0x1c0] sm:$0xff] }
  0xc8   : > { %3138 = vmatprep.subr.bf16.mxu0 %v3705_v6  ;;  %3174 = vmatpush1.bf16.msra.mxu1 %v3139_v62 }
  0xc9   : > { %3159 = vmatprep.subr.bf16.mxu1 %v3705_v6 }
  0xca   : > { %648 = vmatmul.mubr.f32.gmra.mrb[28].mxu0 %v405_v63  ;;  %v422_v63 = vld [vmem:[%s3939_s25 + $0xf8] sm:$0xff] }
  0xcb   : > { %653 = vmatprep.mubr.f32.mxu0 %v3704_v0  ;;  %3140 = vmatpush1.bf16.msra.mxu0 %v3139_v62 }
  0xcc   : > { %3141 = vmatprep.subr.bf16.mxu0 %v3705_v6  ;;  %v426_v6 = vld [vmem:[%s3939_s25 + $0x118] sm:$0xff] }
  0xce   : > { %654 = vmatmul.mubr.f32.gmra.mrb[30].mxu0 %v406_v1  ;;  %v2194_v1 = vld [vmem:[#allocation8 + $0xf0] sm:$0xff] }
  0xcf   : > { %659 = vmatprep.mubr.f32.mxu0 %v3704_v0 }
  0xd2   : > { %660 = vmatmul.mubr.f32.gmra.mrb[32].mxu0 %v407_v2  ;;  %v2195_v2 = vld [vmem:[#allocation8 + $0xf8] sm:$0xff] }
  0xd3   : > { %665 = vmatprep.mubr.f32.mxu0 %v3704_v0  ;;  %v3142_v3 = vpack.c.bf16 %v2195_v2, %v2194_v1 }
  0xd5   : > { %3143 = vmatpush1.bf16.msra.mxu0 %v3142_v3  ;;  %3175 = vmatpush1.bf16.msra.mxu1 %v3142_v3 }
  0xd6   : > { %666 = vmatmul.mubr.f32.gmra.mrb[34].mxu0 %v408_v7  ;;  %v425_v7 = vld [vmem:[%s3939_s25 + $0x110] sm:$0xff] }
  0xd7   : > { %671 = vmatprep.mubr.f32.mxu0 %v3704_v0 }
  0xda   : > { %672 = vmatmul.mubr.f32.gmra.mrb[36].mxu0 %v409_v11  ;;  %v430_v11 = vld [vmem:[%s3939_s25 + $0x138] sm:$0xff] }
  0xdb   : > { %677 = vmatprep.mubr.f32.mxu0 %v3704_v0 }
  0xde   : > { %678 = vmatmul.mubr.f32.gmra.mrb[38].mxu0 %v410_v15  ;;  %v434_v15 = vld [vmem:[%s3939_s25 + $0x158] sm:$0xff] }
  0xdf   : > { %683 = vmatprep.mubr.f32.mxu0 %v3704_v0 }
  0xe2   : > { %684 = vmatmul.mubr.f32.gmra.mrb[40].mxu0 %v411_v19  ;;  %v438_v19 = vld [vmem:[%s3939_s25 + $0x178] sm:$0xff] }
  0xe3   : > { %689 = vmatprep.mubr.f32.mxu0 %v3704_v0 }
  0xe6   : > { %690 = vmatmul.mubr.f32.gmra.mrb[42].mxu0 %v412_v23  ;;  %v441_v23 = vld [vmem:[%s3939_s25 + $0x190] sm:$0xff] }
  0xe7   : > { %695 = vmatprep.mubr.f32.mxu0 %v3704_v0 }
  0xea   : > { %696 = vmatmul.mubr.f32.gmra.mrb[44].mxu0 %v413_v27  ;;  %v443_v27 = vld [vmem:[%s3939_s25 + $0x1a0] sm:$0xff] }
  0xeb   : > { %701 = vmatprep.mubr.f32.mxu0 %v3704_v0 }
  0xee   : > { %702 = vmatmul.mubr.f32.gmra.mrb[46].mxu0 %v414_v31  ;;  %v4093_v31 = vrot.slane %v487_v28, %v495_v29 }
  0xef   : > { %707 = vmatprep.mubr.f32.mxu0 %v3704_v0 }
  0xf2   : > { %708 = vmatmul.mubr.f32.gmra.mrb[48].mxu0 %v415_v35 }
  0xf3   : > { %713 = vmatprep.mubr.f32.mxu0 %v3704_v0 }
  0xf6   : > { %714 = vmatmul.mubr.f32.gmra.mrb[50].mxu0 %v416_v39 }
  0xf7   : > { %719 = vmatprep.mubr.f32.mxu0 %v3704_v0 }
  0xfa   : > { %720 = vmatmul.mubr.f32.gmra.mrb[52].mxu0 %v417_v43 }
  0xfb   : > { %725 = vmatprep.mubr.f32.mxu0 %v3704_v0 }
  0xfe   : > { %726 = vmatmul.mubr.f32.gmra.mrb[54].mxu0 %v418_v47 }
  0xff   : > { %731 = vmatprep.mubr.f32.mxu0 %v3704_v0 }
 0x102   : > { %732 = vmatmul.mubr.f32.gmra.mrb[56].mxu0 %v419_v51 }
 0x103   : > { %737 = vmatprep.mubr.f32.mxu0 %v3704_v0 }
 0x106   : > { %738 = vmatmul.mubr.f32.gmra.mrb[58].mxu0 %v420_v55 }
 0x107   : > { %743 = vmatprep.mubr.f32.mxu0 %v3704_v0 }
 0x10a   : > { %744 = vmatmul.mubr.f32.gmra.mrb[60].mxu0 %v421_v59 }
 0x10b   : > { %749 = vmatprep.mubr.f32.mxu0 %v3704_v0 }
 0x10e   : > { %750 = vmatmul.mubr.f32.gmra.mrb[62].mxu0 %v422_v63 }
 0x10f   : > { %755 = vmatprep.mubr.f32.mxu0 %v3704_v0 }
 0x112   : > { %756 = vmatmul.mubr.f32.gmra.mrb[64].mxu0 %v423_v4 }
 0x113   : > { %761 = vmatprep.mubr.f32.mxu0 %v3704_v0 }
 0x116   : > { %762 = vmatmul.mubr.f32.gmra.mrb[66].mxu0 %v424_v5 }
 0x117   : > { %767 = vmatprep.mubr.f32.mxu0 %v3704_v0 }
 0x11a   : > { %768 = vmatmul.mubr.f32.gmra.mrb[68].mxu0 %v425_v7 }
 0x11b   : > { %773 = vmatprep.mubr.f32.mxu0 %v3704_v0 }
 0x11e   : > { %774 = vmatmul.mubr.f32.gmra.mrb[70].mxu0 %v426_v6 }
 0x11f   : > { %779 = vmatprep.mubr.f32.mxu0 %v3704_v0 }
 0x122   : > { %780 = vmatmul.mubr.f32.gmra.mrb[72].mxu0 %v427_v8 }
 0x123   : > { %785 = vmatprep.mubr.f32.mxu0 %v3704_v0 }
 0x126   : > { %786 = vmatmul.mubr.f32.gmra.mrb[74].mxu0 %v428_v9 }
 0x127   : > { %791 = vmatprep.mubr.f32.mxu0 %v3704_v0 }
 0x12a   : > { %792 = vmatmul.mubr.f32.gmra.mrb[76].mxu0 %v429_v10  ;;  %v448_v10 = vld [vmem:[%s3939_s25 + $0x1c8] sm:$0xff] }
 0x12b   : > { %797 = vmatprep.mubr.f32.mxu0 %v3704_v0 }
 0x12e   : > { %798 = vmatmul.mubr.f32.gmra.mrb[78].mxu0 %v430_v11 }
 0x12f   : > { %803 = vmatprep.mubr.f32.mxu0 %v3704_v0 }
 0x132   : > { %804 = vmatmul.mubr.f32.gmra.mrb[80].mxu0 %v431_v12 }
 0x133   : > { %809 = vmatprep.mubr.f32.mxu0 %v3704_v0 }
 0x136   : > { %810 = vmatmul.mubr.f32.gmra.mrb[82].mxu0 %v432_v13 }
 0x137   : > { %815 = vmatprep.mubr.f32.mxu0 %v3704_v0 }
 0x13a   : > { %816 = vmatmul.mubr.f32.gmra.mrb[84].mxu0 %v433_v14 }
 0x13b   : > { %821 = vmatprep.mubr.f32.mxu0 %v3704_v0 }
 0x13e   : > { %822 = vmatmul.mubr.f32.gmra.mrb[86].mxu0 %v434_v15 }
 0x13f   : > { %827 = vmatprep.mubr.f32.mxu0 %v3704_v0 }
 0x142   : > { %828 = vmatmul.mubr.f32.gmra.mrb[88].mxu0 %v435_v16 }
 0x143   : > { %833 = vmatprep.mubr.f32.mxu0 %v3704_v0 }
 0x146   : > { %834 = vmatmul.mubr.f32.gmra.mrb[90].mxu0 %v436_v17 }
 0x147   : > { %839 = vmatprep.mubr.f32.mxu0 %v3704_v0 }
 0x14a   : > { %840 = vmatmul.mubr.f32.gmra.mrb[92].mxu0 %v437_v18 }
 0x14b   : > { %845 = vmatprep.mubr.f32.mxu0 %v3704_v0 }
 0x14e   : > { %846 = vmatmul.mubr.f32.gmra.mrb[94].mxu0 %v438_v19 }
 0x14f   : > { %851 = vmatprep.mubr.f32.mxu0 %v3704_v0 }
 0x152   : > { %852 = vmatmul.mubr.f32.gmra.mrb[96].mxu0 %v439_v20 }
 0x153   : > { %857 = vmatprep.mubr.f32.mxu0 %v3704_v0 }
 0x156   : > { %858 = vmatmul.mubr.f32.gmra.mrb[98].mxu0 %v440_v21 }
 0x157   : > { %863 = vmatprep.mubr.f32.mxu0 %v3704_v0 }
 0x15a   : > { %864 = vmatmul.mubr.f32.gmra.mrb[100].mxu0 %v441_v23 }
 0x15b   : > { %869 = vmatprep.mubr.f32.mxu0 %v3704_v0 }
 0x15e   : > { %870 = vmatmul.mubr.f32.gmra.mrb[102].mxu0 %v442_v25 }
 0x15f   : > { %875 = vmatprep.mubr.f32.mxu0 %v3704_v0 }
 0x162   : > { %876 = vmatmul.mubr.f32.gmra.mrb[104].mxu0 %v443_v27  ;;  %v449_v27 = vld [vmem:[%s3939_s25 + $0x1d0] sm:$0xff] }
 0x163   : > { %881 = vmatprep.mubr.f32.mxu0 %v3704_v0 }
 0x165   : > { %v565_v33 = vpop.f32.mrb[0].mxu0 }
 0x166   : > { %v566_v34 = vadd.f32 %v565_v33, %v4090_v30  ;;  %v567_v35 = vpop.f32.mrb[1].mxu0  ;;  %882 = vmatmul.mubr.f32.gmra.mrb[106].mxu0 %v444_v32 }
 0x167   : > { %v568_v36 = vadd.f32 %v567_v35, %v4093_v31  ;;  %887 = vmatprep.mubr.f32.mxu0 %v3704_v0 }
 0x168   : > { %v948_v38 = vmul.f32 %v566_v34, %v566_v34  ;;  %v4116_v11 = vmul.f32 0.5, %v566_v34 }
 0x169   : > { %v949_v39 = vmul.f32 %v568_v36, %v568_v36  ;;  %v571_v40 = vpop.f32.mrb[2].mxu0  ;;  %v4120_v14 = vmul.f32 0.5, %v568_v36 }
 0x16a   : > { %v1076_v41 = vmul.f32 %v948_v38, %v566_v34  ;;  %v572_v42 = vadd.f32 %v571_v40, %v4090_v30  ;;  %v573_v43 = vpop.f32.mrb[3].mxu0  ;;  %888 = vmatmul.mubr.f32.gmra.mrb[108].mxu0 %v445_v37 }
 0x16b   : > { %v1077_v44 = vmul.f32 %v949_v39, %v568_v36  ;;  %v574_v45 = vadd.f32 %v573_v43, %v4093_v31  ;;  %893 = vmatprep.mubr.f32.mxu0 %v3704_v0 }
 0x16c   : > { %v1332_v47 = vmul.f32 0.044715, %v1076_v41  ;;  %v950_v48 = vmul.f32 %v572_v42, %v572_v42  ;;  %v4122_v18 = vmul.f32 0.5, %v572_v42 }
 0x16d   : > { %v1333_v49 = vmul.f32 0.044715, %v1077_v44  ;;  %v951_v50 = vmul.f32 %v574_v45, %v574_v45  ;;  %v577_v51 = vpop.f32.mrb[4].mxu0  ;;  %v4125_v22 = vmul.f32 0.5, %v574_v45  ;;  %v450_v44 = vld [vmem:[%s3939_s25 + $0x1d8] sm:$0xff] }
 0x16e   : > { %v1460_v52 = vadd.f32 %v1332_v47, %v566_v34  ;;  %v1078_v53 = vmul.f32 %v950_v48, %v572_v42  ;;  %v578_v54 = vadd.f32 %v577_v51, %v4090_v30  ;;  %v579_v55 = vpop.f32.mrb[5].mxu0  ;;  %894 = vmatmul.mubr.f32.gmra.mrb[110].mxu0 %v446_v46 }
 0x16f   : > { %v1079_v56 = vmul.f32 %v951_v50, %v574_v45  ;;  %v580_v57 = vadd.f32 %v579_v55, %v4093_v31  ;;  %899 = vmatprep.mubr.f32.mxu0 %v3704_v0  ;;  %v1461_v59 = vadd.f32 %v1333_v49, %v568_v36 }
 0x170   : > { %v1334_v60 = vmul.f32 0.044715, %v1078_v53  ;;  %v952_v61 = vmul.f32 %v578_v54, %v578_v54  ;;  %v1588_v2 = vmul.f32 0.7978846, %v1460_v52  ;;  %v4135_v33 = vmul.f32 0.5, %v578_v54 }
 0x171   : > { %v1335_v62 = vmul.f32 0.044715, %v1079_v56  ;;  %v953_v63 = vmul.f32 %v580_v57, %v580_v57  ;;  %v583_v1 = vpop.f32.mrb[6].mxu0  ;;  %v1589_v12 = vmul.f32 0.7978846, %v1461_v59  ;;  %v4133_v32 = vmul.f32 0.5, %v580_v57 }
 0x172   : > { %v1462_v3 = vadd.f32 %v1334_v60, %v572_v42  ;;  %v1080_v4 = vmul.f32 %v952_v61, %v578_v54  ;;  %v4109_v5 = vadd.f32 %v583_v1, %v4090_v30  ;;  %v585_v7 = vpop.f32.mrb[7].mxu0  ;;  %900 = vmatmul.mubr.f32.gmra.mrb[112].mxu0 %v447_v58  ;;  %3267 = vtanh.f32 %v1588_v2 }
 0x173   : > { %v1463_v6 = vadd.f32 %v1335_v62, %v574_v45  ;;  %v1081_v8 = vmul.f32 %v953_v63, %v580_v57  ;;  %v4112_v9 = vadd.f32 %v585_v7, %v4093_v31  ;;  %905 = vmatprep.mubr.f32.mxu0 %v3704_v0  ;;  %3269 = vtanh.f32 %v1589_v12  ;;  %v451_v62 = vld [vmem:[%s3939_s25 + $0x1e0] sm:$0xff] }
 0x174   : > { %v954_v13 = vmul.f32 %v4109_v5, %v4109_v5  ;;  %v1336_v15 = vmul.f32 0.044715, %v1080_v4  ;;  %v1590_v19 = vmul.f32 0.7978846, %v1462_v3  ;;  %v4138_v37 = vmul.f32 0.5, %v4109_v5 }
 0x175   : > { %v1337_v16 = vmul.f32 0.044715, %v1081_v8  ;;  %v589_v17 = vpop.f32.mrb[8].mxu0  ;;  %v1591_v23 = vmul.f32 0.7978846, %v1463_v6  ;;  %v955_v25 = vmul.f32 %v4112_v9, %v4112_v9  ;;  %v4152_v49 = vmul.f32 0.5, %v4112_v9 }
 0x176   : > { %v590_v20 = vadd.f32 %v589_v17, %v4090_v30  ;;  %v591_v21 = vpop.f32.mrb[9].mxu0  ;;  %906 = vmatmul.mubr.f32.gmra.mrb[114].mxu0 %v448_v10  ;;  %v1082_v28 = vmul.f32 %v954_v13, %v4109_v5  ;;  %v1464_v34 = vadd.f32 %v1336_v15, %v578_v54  ;;  %3271 = vtanh.f32 %v1590_v19 }
 0x177   : > { %v1465_v24 = vadd.f32 %v1337_v16, %v580_v57  ;;  %v592_v26 = vadd.f32 %v591_v21, %v4093_v31  ;;  %911 = vmatprep.mubr.f32.mxu0 %v3704_v0  ;;  %v1083_v42 = vmul.f32 %v955_v25, %v4112_v9  ;;  %3273 = vtanh.f32 %v1591_v23 }
 0x178   : > { %v956_v29 = vmul.f32 %v590_v20, %v590_v20  ;;  %v1338_v46 = vmul.f32 0.044715, %v1082_v28  ;;  %v1592_v50 = vmul.f32 0.7978846, %v1464_v34  ;;  %v4156_v54 = vmul.f32 0.5, %v590_v20 }
 0x179   : > { %v957_v35 = vmul.f32 %v592_v26, %v592_v26  ;;  %v595_v36 = vpop.f32.mrb[10].mxu0  ;;  %v1593_v38 = vmul.f32 0.7978846, %v1465_v24  ;;  %v1339_v59 = vmul.f32 0.044715, %v1083_v42  ;;  %v4173_v12 = vmul.f32 0.5, %v592_v26 }
 0x17a   : > { %v1084_v39 = vmul.f32 %v956_v29, %v590_v20  ;;  %v4141_v40 = vadd.f32 %v595_v36, %v4090_v30  ;;  %v597_v41 = vpop.f32.mrb[11].mxu0  ;;  %912 = vmatmul.mubr.f32.gmra.mrb[116].mxu0 %v449_v27  ;;  %v1466_v2 = vadd.f32 %v1338_v46, %v4109_v5  ;;  %v452_v24 = vld [vmem:[%s3939_s25 + $0x1e8] sm:$0xff] }
 0x17b   : > { %v4145_v43 = vadd.f32 %v597_v41, %v4093_v31  ;;  %917 = vmatprep.mubr.f32.mxu0 %v3704_v0  ;;  %v1085_v45 = vmul.f32 %v957_v35, %v592_v26  ;;  %3275 = vtanh.f32 %v1593_v38  ;;  %v1467_v28 = vadd.f32 %v1339_v59, %v4112_v9 }
 0x17c   : > { %v1340_v47 = vmul.f32 0.044715, %v1084_v39  ;;  %v958_v48 = vmul.f32 %v4141_v40, %v4141_v40  ;;  %v3268_v1 = vpop.eup %3267  ;;  %3277 = vtanh.f32 %v1592_v50  ;;  %v4187_v27 = vmul.f32 0.7978846, %v1466_v2 }
 0x17d   : > { %v959_v51 = vmul.f32 %v4145_v43, %v4145_v43  ;;  %v601_v52 = vpop.f32.mrb[12].mxu0  ;;  %v1341_v53 = vmul.f32 0.044715, %v1085_v45  ;;  %v3270_v19 = vpop.eup %3269 }
 0x17e   : > { %v1468_v55 = vadd.f32 %v1340_v47, %v590_v20  ;;  %v1086_v56 = vmul.f32 %v958_v48, %v4141_v40  ;;  %v4160_v57 = vadd.f32 %v601_v52, %v4090_v30  ;;  %v603_v58 = vpop.f32.mrb[13].mxu0  ;;  %918 = vmatmul.mubr.f32.gmra.mrb[118].mxu0 %v450_v44  ;;  %v453_v48 = vld [vmem:[%s3939_s25 + $0x1f0] sm:$0xff]  ;;  %v1845_v50 = vadd.f32 1.0, %v3270_v19 }
 0x17f   : > { %v1087_v60 = vmul.f32 %v959_v51, %v4145_v43  ;;  %v4164_v61 = vadd.f32 %v603_v58, %v4093_v31  ;;  %923 = vmatprep.mubr.f32.mxu0 %v3704_v0  ;;  %v1469_v63 = vadd.f32 %v1341_v53, %v592_v26  ;;  %v1844_v26 = vadd.f32 1.0, %v3268_v1 }
 0x180   : > { %v1596_v3 = vmul.f32 0.7978846, %v1468_v55  ;;  %v1342_v4 = vmul.f32 0.044715, %v1086_v56  ;;  %v960_v7 = vmul.f32 %v4160_v57, %v4160_v57  ;;  %v3272_v25 = vpop.eup %3271  ;;  %v4206_v58 = vmul.f32 0.7978846, %v1467_v28 }
 0x181   : > { %v1343_v6 = vmul.f32 0.044715, %v1087_v60  ;;  %v961_v8 = vmul.f32 %v4164_v61, %v4164_v61  ;;  %v607_v10 = vpop.f32.mrb[14].mxu0  ;;  %v1597_v13 = vmul.f32 0.7978846, %v1469_v63  ;;  %v3274_v34 = vpop.eup %3273  ;;  %v1846_v51 = vadd.f32 1.0, %v3272_v25 }
 0x182   : > { %v1470_v15 = vadd.f32 %v1342_v4, %v4141_v40  ;;  %v1088_v16 = vmul.f32 %v960_v7, %v4160_v57  ;;  %v4178_v5 = vadd.f32 %v607_v10, %v4090_v30  ;;  %v609_v17 = vpop.f32.mrb[15].mxu0  ;;  %924 = vmatmul.mubr.f32.gmra.mrb[120].mxu0 %v451_v62  ;;  %v1847_v56 = vadd.f32 1.0, %v3274_v34 }
 0x183   : > { %v1471_v20 = vadd.f32 %v1343_v6, %v4145_v43  ;;  %v1089_v21 = vmul.f32 %v961_v8, %v4164_v61  ;;  %v4183_v23 = vadd.f32 %v609_v17, %v4093_v31  ;;  %929 = vmatprep.mubr.f32.mxu0 %v3704_v0  ;;  %3279 = vtanh.f32 %v1597_v13 }
 0x184   : > { %v962_v29 = vmul.f32 %v4178_v5, %v4178_v5  ;;  %v1344_v36 = vmul.f32 0.044715, %v1088_v16  ;;  %3281 = vtanh.f32 %v1596_v3  ;;  %v1598_v41 = vmul.f32 0.7978846, %v1470_v15 }
 0x185   : > { %v1599_v35 = vmul.f32 0.7978846, %v1471_v20  ;;  %v963_v38 = vmul.f32 %v4183_v23, %v4183_v23  ;;  %v613_v39 = vpop.f32.mrb[16].mxu0  ;;  %v1345_v42 = vmul.f32 0.044715, %v1089_v21  ;;  %v3276_v52 = vpop.eup %3275  ;;  %v4212_v63 = vmul.f32 0.5, %v4141_v40 }
 0x186   : > { %v1090_v44 = vmul.f32 %v962_v29, %v4178_v5  ;;  %v4196_v45 = vadd.f32 %v613_v39, %v4090_v30  ;;  %v615_v9 = vpop.f32.mrb[17].mxu0  ;;  %930 = vmatmul.mubr.f32.gmra.mrb[122].mxu0 %v452_v24  ;;  %v1472_v59 = vadd.f32 %v1344_v36, %v4160_v57  ;;  %v1972_v7 = vmul.f32 %v1844_v26, %v4116_v11  ;;  %v454_v40 = vld [vmem:[%s3939_s25 + $0x1f8] sm:$0xff]  ;;  %v3278_v13 = vpop.eup %3277  ;;  %s3615_s25 = scalar_lea.vmem %s3614_s15, 16384 }
 0x187   : > { %v1091_v46 = vmul.f32 %v963_v38, %v4183_v23  ;;  %v4200_v47 = vadd.f32 %v615_v9, %v4093_v31  ;;  %935 = vmatprep.mubr.f32.mxu0 %v3704_v0  ;;  %3283 = vtanh.f32 %v1599_v35  ;;  %v1473_v1 = vadd.f32 %v1345_v42, %v4164_v61  ;;  %p3617_p5 = scmp.lt.s32.totalorder %s3615_s25, %s3609_s27 }
 0x188   : > { %v1346_v53 = vmul.f32 0.044715, %v1090_v44  ;;  %v964_v55 = vmul.f32 %v4196_v45, %v4196_v45  ;;  %3285 = vtanh.f32 %v1598_v41  ;;  %v1849_v10 = vadd.f32 1.0, %v3276_v52 }
 0x189   : > { %v965_v60 = vmul.f32 %v4200_v47, %v4200_v47  ;;  %v619_v62 = vpop.f32.mrb[18].mxu0  ;;  %v1347_v2 = vmul.f32 0.044715, %v1091_v46  ;;  %v1973_v16 = vmul.f32 %v1845_v50, %v4120_v14  ;;  %v1975_v17 = vmul.f32 %v1847_v56, %v4125_v22  ;;  %p3618_p9 = por %p3617_p5, %p3616_p3 }
 0x18a   : > { %v4216_v3 = vadd.f32 %v619_v62, %v4090_v30  ;;  %v621_v4 = vpop.f32.mrb[19].mxu0  ;;  %936 = vmatmul.mubr.f32.gmra.mrb[124].mxu0 %v453_v48  ;;  %v1474_v6 = vadd.f32 %v1346_v53, %v4178_v5  ;;  %v1092_v15 = vmul.f32 %v964_v55, %v4196_v45  ;;  %v1974_v19 = vmul.f32 %v1846_v51, %v4122_v18 }
 0x18b   : > { %v4221_v8 = vadd.f32 %v621_v4, %v4093_v31  ;;  %941 = vmatprep.mubr.f32.mxu0 %v3704_v0  ;;  %v4229_v11 = vmul.f32 0.7978846, %v1472_v59  ;;  %v1093_v21 = vmul.f32 %v965_v60, %v4200_v47  ;;  %v1215_v25 = vmul.f32 0.5, %v4145_v43  ;;  %p3619_p11 = pnand %p3618_p9, %p3612_p10 }
 0x18c   : > { %v966_v24 = vmul.f32 %v4216_v3, %v4216_v3  ;;  %v1601_v26 = vmul.f32 0.7978846, %v1473_v1  ;;  %v1475_v28 = vadd.f32 %v1347_v2, %v4183_v23  ;;  %v4239_v34 = vmul.f32 0.7978846, %v1474_v6 }
 0x18d   : > { %v3280_v20 = vpop.eup %3279  ;;  %v625_v0 = vpop.f32.mrb[20].mxu0  ;;  %v967_v35 = vmul.f32 %v4221_v8, %v4221_v8  ;;  %v1977_v43 = vmul.f32 %v1849_v10, %v4133_v32  ;;  %v1348_v38 = vmul.f32 0.044715, %v1092_v15  ;;  %v1848_v42 = vadd.f32 1.0, %v3278_v13 }
 0x18e   : > { %v4237_v14 = vadd.f32 %v625_v0, %v4090_v30  ;;  %v627_v22 = vpop.f32.mrb[21].mxu0  ;;  %942 = vmatmul.mubr.f32.gmra.mrb[126].mxu0 %v454_v40  ;;  %v1853_v18 = vadd.f32 1.0, %v3280_v20  ;;  %v3282_v29 = vpop.eup %3281  ;;  %v1349_v44 = vmul.f32 0.044715, %v1093_v21  ;;  %v1094_v9 = vmul.f32 %v966_v24, %v4216_v3 }
 0x18f   : > { %v4244_v36 = vadd.f32 %v627_v22, %v4093_v31  ;;  %2260 = vmatprep.mubr.f32.mxu0 %v1973_v16  ;;  %v1852_v50 = vadd.f32 1.0, %v3282_v29  ;;  %v4253_v52 = vmul.f32 0.7978846, %v1475_v28  ;;  %3287 = vtanh.f32 %v1601_v26 }
 0x190   : > { %v968_v39 = vmul.f32 %v4237_v14, %v4237_v14  ;;  %v1981_v41 = vmul.f32 %v1853_v18, %v4173_v12  ;;  %v4259_v12 = vmul.f32 0.5, %v4164_v61  ;;  %v1095_v55 = vmul.f32 %v967_v35, %v4221_v8 }
 0x191   : > { %v969_v46 = vmul.f32 %v4244_v36, %v4244_v36  ;;  %v631_v48 = vpop.f32.mrb[22].mxu0  ;;  %v3284_v51 = vpop.eup %3283  ;;  %v1980_v60 = vmul.f32 %v1852_v50, %v4156_v54  ;;  %v1476_v1 = vadd.f32 %v1348_v38, %v4196_v45  ;;  %v1350_v6 = vmul.f32 0.044715, %v1094_v9 }
 0x192   : > { %v4256_v32 = vadd.f32 %v631_v48, %v4090_v30  ;;  %v633_v53 = vpop.f32.mrb[23].mxu0  ;;  %2261 = vmatmul.mubr.f32.vlgmr.msra.gmra.mrb[128].mxu0 %v1972_v7  ;;  %2280 = vmatprep.mubr.f32.mxu1 %v1981_v41  ;;  %v1096_v56 = vmul.f32 %v968_v39, %v4237_v14  ;;  %v3286_v62 = vpop.eup %3285  ;;  %v1855_v4 = vadd.f32 1.0, %v3284_v51  ;;  %v1477_v7 = vadd.f32 %v1349_v44, %v4200_v47 }
 0x193   : > { %v4264_v59 = vadd.f32 %v633_v53, %v4093_v31  ;;  %2265 = vmatprep.mubr.f32.mxu0 %v1975_v17  ;;  %v1097_v2 = vmul.f32 %v969_v46, %v4244_v36  ;;  %2281 = vmatmul.mubr.f32.vlgmr.msra.gmra.mrb[0].mxu1 %v1980_v60  ;;  %v1854_v13 = vadd.f32 1.0, %v3286_v62  ;;  %v1976_v20 = vmul.f32 %v1848_v42, %v4135_v33 }
 0x194   : > { %v970_v61 = vmul.f32 %v4256_v32, %v4256_v32  ;;  %v1983_v17 = vmul.f32 %v1855_v4, %v1215_v25  ;;  %v1351_v21 = vmul.f32 0.044715, %v1095_v55  ;;  %v1352_v24 = vmul.f32 0.044715, %v1096_v56 }
 0x195   : > { %v971_v40 = vmul.f32 %v4264_v59, %v4264_v59  ;;  %v637_v10 = vpop.f32.mrb[24].mxu0  ;;  %v1982_v26 = vmul.f32 %v1854_v13, %v4212_v63  ;;  %v1353_v28 = vmul.f32 0.044715, %v1097_v2  ;;  %3289 = vtanh.f32 %v4206_v58 }
 0x196   : > { %v1098_v54 = vmul.f32 %v970_v61, %v4256_v32  ;;  %v4276_v15 = vadd.f32 %v637_v10, %v4090_v30  ;;  %v639_v16 = vpop.f32.mrb[25].mxu0  ;;  %2266 = vmatmul.mubr.f32.gmra.mrb[130].mxu0 %v1974_v19  ;;  %2285 = vmatprep.mubr.f32.mxu1 %v1983_v17  ;;  %v4287_v19 = vmul.f32 0.7978846, %v1476_v1  ;;  %v1605_v33 = vmul.f32 0.7978846, %v1477_v7 }
 0x197   : > { %v4280_v0 = vadd.f32 %v639_v16, %v4093_v31  ;;  %2270 = vmatprep.mubr.f32.mxu0 %v1977_v43  ;;  %v1099_v22 = vmul.f32 %v971_v40, %v4264_v59  ;;  %v1478_v25 = vadd.f32 %v1350_v6, %v4216_v3  ;;  %2286 = vmatmul.mubr.f32.gmra.mrb[2].mxu1 %v1982_v26  ;;  %3291 = vtanh.f32 %v4229_v11 }
 0x198   : > { %v972_v18 = vmul.f32 %v4276_v15, %v4276_v15  ;;  %v1354_v63 = vmul.f32 0.044715, %v1098_v54  ;;  %v1479_v58 = vadd.f32 %v1351_v21, %v4221_v8  ;;  %v1480_v41 = vadd.f32 %v1352_v24, %v4237_v14 }
 0x199   : > { %v973_v29 = vmul.f32 %v4280_v0, %v4280_v0  ;;  %v643_v35 = vpop.f32.mrb[26].mxu0  ;;  %3293 = vtanh.f32 %v4187_v27  ;;  %v3288_v44 = vpop.eup %3287  ;;  %v1481_v9 = vadd.f32 %v1353_v28, %v4244_v36  ;;  %v1355_v46 = vmul.f32 0.044715, %v1099_v22 }
 0x19a   : > { %v1100_v43 = vmul.f32 %v972_v18, %v4276_v15  ;;  %v4294_v38 = vadd.f32 %v643_v35, %v4090_v30  ;;  %v645_v39 = vpop.f32.mrb[27].mxu0  ;;  %2271 = vmatmul.mubr.f32.gmra.mrb[132].mxu0 %v1976_v20  ;;  %v4307_v51 = vmul.f32 0.7978846, %v1478_v25  ;;  %v1857_v55 = vadd.f32 1.0, %v3288_v44 }
 0x19b   : > { %v4300_v42 = vadd.f32 %v645_v39, %v4093_v31  ;;  %v1101_v48 = vmul.f32 %v973_v29, %v4280_v0  ;;  %v1482_v60 = vadd.f32 %v1354_v63, %v4256_v32  ;;  %3295 = vtanh.f32 %v4253_v52 }
 0x19c   : > { %v974_v50 = vmul.f32 %v4294_v38, %v4294_v38  ;;  %v1356_v11 = vmul.f32 0.044715, %v1100_v43  ;;  %v1607_v2 = vmul.f32 0.7978846, %v1479_v58  ;;  %v4317_v61 = vmul.f32 0.7978846, %v1480_v41 }
 0x19d   : > { %v975_v53 = vmul.f32 %v4300_v42, %v4300_v42  ;;  %v649_v56 = vpop.f32.mrb[28].mxu0  ;;  %v1985_v4 = vmul.f32 %v1857_v55, %v4259_v12  ;;  %v4323_v6 = vmul.f32 0.7978846, %v1481_v9  ;;  %v1483_v40 = vadd.f32 %v1355_v46, %v4264_v59 }
 0x19e   : > { %v1102_v27 = vmul.f32 %v974_v50, %v4294_v38  ;;  %v4314_v62 = vadd.f32 %v649_v56, %v4090_v30  ;;  %v651_v1 = vpop.f32.mrb[29].mxu0  ;;  %v1357_v10 = vmul.f32 0.044715, %v1101_v48  ;;  %v1484_v54 = vadd.f32 %v1356_v11, %v4276_v15 }
 0x19f   : > { %v4321_v7 = vadd.f32 %v651_v1, %v4093_v31  ;;  %v1103_v52 = vmul.f32 %v975_v53, %v4300_v42  ;;  %2290 = vmatprep.mubr.f32.mxu1 %v1985_v4  ;;  %v1216_v16 = vmul.f32 0.5, %v4160_v57  ;;  %3297 = vtanh.f32 %v4239_v34  ;;  %v3290_v17 = vpop.eup %3289 }
 0x1a0   : > { %v976_v13 = vmul.f32 %v4314_v62, %v4314_v62  ;;  %v4332_v20 = vmul.f32 0.7978846, %v1482_v60  ;;  %v1358_v21 = vmul.f32 0.044715, %v1102_v27  ;;  %v1851_v22 = vadd.f32 1.0, %v3290_v17 }
 0x1a1   : > { %v655_v12 = vpop.f32.mrb[30].mxu0  ;;  %v977_v24 = vmul.f32 %v4321_v7, %v4321_v7  ;;  %v1219_v25 = vmul.f32 0.5, %v4183_v23  ;;  %v3292_v34 = vpop.eup %3291  ;;  %v4344_v29 = vmul.f32 0.7978846, %v1483_v40  ;;  %v1485_v35 = vadd.f32 %v1357_v10, %v4280_v0 }
 0x1a2   : > { %v4337_v26 = vadd.f32 %v655_v12, %v4090_v30  ;;  %v657_v28 = vpop.f32.mrb[31].mxu0  ;;  %v1104_v18 = vmul.f32 %v976_v13, %v4314_v62  ;;  %3299 = vtanh.f32 %v1605_v33  ;;  %v4349_v39 = vmul.f32 0.7978846, %v1484_v54 }
 0x1a3   : > { %v4342_v57 = vadd.f32 %v657_v28, %v4093_v31  ;;  %v3294_v43 = vpop.eup %3293  ;;  %v1359_v58 = vmul.f32 0.044715, %v1103_v52  ;;  %v1979_v41 = vmul.f32 %v1851_v22, %v4152_v49  ;;  %v1856_v44 = vadd.f32 1.0, %v3292_v34 }
 0x1a4   : > { %v978_v63 = vmul.f32 %v4337_v26, %v4337_v26  ;;  %v1486_v9 = vadd.f32 %v1358_v21, %v4294_v38  ;;  %v1105_v46 = vmul.f32 %v977_v24, %v4321_v7  ;;  %v1850_v48 = vadd.f32 1.0, %v3294_v43 }
 0x1a5   : > { %v661_v23 = vpop.f32.mrb[32].mxu0  ;;  %v979_v50 = vmul.f32 %v4342_v57, %v4342_v57  ;;  %2275 = vmatprep.mubr.f32.mxu0 %v1979_v41  ;;  %v1984_v53 = vmul.f32 %v1856_v44, %v1216_v16  ;;  %v1360_v33 = vmul.f32 0.044715, %v1104_v18  ;;  %v1218_v55 = vmul.f32 0.5, %v4178_v5  ;;  %v3296_v56 = vpop.eup %3295 }
 0x1a6   : > { %v663_v11 = vpop.f32.mrb[33].mxu0  ;;  %3301 = vtanh.f32 %v4287_v19  ;;  %v4358_v49 = vmul.f32 0.7978846, %v1485_v35  ;;  %v1978_v60 = vmul.f32 %v1850_v48, %v4138_v37  ;;  %v1106_v27 = vmul.f32 %v978_v63, %v4337_v26 }
 0x1a7   : > { %v1107_v1 = vmul.f32 %v979_v50, %v4342_v57  ;;  %2291 = vmatmul.mubr.f32.gmra.mrb[4].mxu1 %v1984_v53  ;;  %v1859_v4 = vadd.f32 1.0, %v3296_v56  ;;  %v1221_v40 = vmul.f32 0.5, %v4200_v47  ;;  %v4365_v10 = vadd.f32 %v661_v23, %v4090_v30 }
 0x1a8   : > { %v4368_v5 = vadd.f32 %v663_v11, %v4093_v31  ;;  %v4370_v13 = vmul.f32 0.7978846, %v1486_v9  ;;  %v1487_v54 = vadd.f32 %v1359_v58, %v4300_v42  ;;  %v1361_v37 = vmul.f32 0.044715, %v1105_v46  ;;  %2276 = vmatmul.mubr.f32.gmra.mrb[134].mxu0 %v1978_v60 }
 0x1a9   : > { %v667_v19 = vpop.f32.mrb[34].mxu0  ;;  %3303 = vtanh.f32 %v1607_v2  ;;  %v3298_v16 = vpop.eup %3297  ;;  %v1488_v12 = vadd.f32 %v1360_v33, %v4314_v62  ;;  %v1987_v17 = vmul.f32 %v1859_v4, %v1219_v25  ;;  %v980_v47 = vmul.f32 %v4365_v10, %v4365_v10 }
 0x1aa   : > { %v669_v52 = vpop.f32.mrb[35].mxu0  ;;  %v981_v21 = vmul.f32 %v4368_v5, %v4368_v5  ;;  %v1858_v24 = vadd.f32 1.0, %v3298_v16  ;;  %v1362_v28 = vmul.f32 0.044715, %v1106_v27  ;;  %v1363_v22 = vmul.f32 0.044715, %v1107_v1 }
 0x1ab   : > { %3305 = vtanh.f32 %v4307_v51  ;;  %2295 = vmatprep.mubr.f32.mxu1 %v1987_v17  ;;  %v1108_v18 = vmul.f32 %v980_v47, %v4365_v10  ;;  %v4382_v34 = vadd.f32 %v667_v19, %v4090_v30  ;;  %v4385_v25 = vadd.f32 %v669_v52, %v4093_v31 }
 0x1ac   : > { %v1109_v2 = vmul.f32 %v981_v21, %v4368_v5  ;;  %v3300_v63 = vpop.eup %3299  ;;  %v4387_v43 = vmul.f32 0.7978846, %v1487_v54  ;;  %v1489_v58 = vadd.f32 %v1361_v37, %v4321_v7  ;;  %v1986_v41 = vmul.f32 %v1858_v24, %v1218_v55 }
 0x1ad   : > { %v673_v35 = vpop.f32.mrb[36].mxu0  ;;  %3307 = vtanh.f32 %v4323_v6  ;;  %v4391_v44 = vmul.f32 0.7978846, %v1488_v12  ;;  %v1861_v23 = vadd.f32 1.0, %v3300_v63  ;;  %v1220_v9 = vmul.f32 0.5, %v4196_v45 }
 0x1ae   : > { %v675_v51 = vpop.f32.mrb[37].mxu0  ;;  %v982_v46 = vmul.f32 %v4382_v34, %v4382_v34  ;;  %2296 = vmatmul.mubr.f32.gmra.mrb[6].mxu1 %v1986_v41  ;;  %v1364_v48 = vmul.f32 0.044715, %v1108_v18  ;;  %v983_v50 = vmul.f32 %v4385_v25, %v4385_v25  ;;  %3309 = vtanh.f32 %v4317_v61 }
 0x1af   : > { %v4400_v11 = vadd.f32 %v673_v35, %v4090_v30  ;;  %v1490_v53 = vadd.f32 %v1362_v28, %v4337_v26  ;;  %v1491_v33 = vadd.f32 %v1363_v22, %v4342_v57  ;;  %v1989_v55 = vmul.f32 %v1861_v23, %v1221_v40 }
 0x1b0   : > { %v3302_v6 = vpop.eup %3301  ;;  %v1365_v45 = vmul.f32 0.044715, %v1109_v2  ;;  %v1110_v27 = vmul.f32 %v982_v46, %v4382_v34  ;;  %v4408_v4 = vadd.f32 %v675_v51, %v4093_v31  ;;  %v4410_v19 = vmul.f32 0.7978846, %v1489_v58 }
 0x1b1   : > { %v679_v56 = vpop.f32.mrb[38].mxu0  ;;  %v1860_v60 = vadd.f32 1.0, %v3302_v6  ;;  %v984_v1 = vmul.f32 %v4400_v11, %v4400_v11  ;;  %2300 = vmatprep.mubr.f32.mxu1 %v1989_v55  ;;  %v1223_v54 = vmul.f32 0.5, %v4221_v8  ;;  %v1222_v37 = vmul.f32 0.5, %v4216_v3 }
 0x1b2   : > { %v681_v61 = vpop.f32.mrb[39].mxu0  ;;  %3311 = vtanh.f32 %v4344_v29  ;;  %v1492_v16 = vadd.f32 %v1364_v48, %v4365_v10  ;;  %v1111_v12 = vmul.f32 %v983_v50, %v4385_v25  ;;  %v4418_v47 = vmul.f32 0.7978846, %v1490_v53 }
 0x1b3   : > { %v3304_v40 = vpop.eup %3303  ;;  %v1988_v52 = vmul.f32 %v1860_v60, %v1220_v9  ;;  %v1112_v17 = vmul.f32 %v984_v1, %v4400_v11  ;;  %v4420_v21 = vmul.f32 0.7978846, %v1491_v33  ;;  %v985_v8 = vmul.f32 %v4408_v4, %v4408_v4 }
 0x1b4   : > { %v1863_v24 = vadd.f32 1.0, %v3304_v40  ;;  %v1493_v29 = vadd.f32 %v1365_v45, %v4368_v5  ;;  %v1366_v22 = vmul.f32 0.044715, %v1110_v27  ;;  %v1225_v18 = vmul.f32 0.5, %v4244_v36 }
 0x1b5   : > { %v685_v28 = vpop.f32.mrb[40].mxu0  ;;  %v3306_v3 = vpop.eup %3305  ;;  %2301 = vmatmul.mubr.f32.gmra.mrb[8].mxu1 %v1988_v52  ;;  %3313 = vtanh.f32 %v4332_v20  ;;  %v1224_v58 = vmul.f32 0.5, %v4237_v14  ;;  %v4429_v41 = vadd.f32 %v679_v56, %v4090_v30  ;;  %v4431_v23 = vmul.f32 0.7978846, %v1492_v16 }
 0x1b6   : > { %v687_v2 = vpop.f32.mrb[41].mxu0  ;;  %v1991_v35 = vmul.f32 %v1863_v24, %v1223_v54  ;;  %v1862_v63 = vadd.f32 1.0, %v3306_v3  ;;  %v1367_v9 = vmul.f32 0.044715, %v1111_v12  ;;  %v1368_v46 = vmul.f32 0.044715, %v1112_v17 }
 0x1b7   : > { %v3308_v51 = vpop.eup %3307  ;;  %v4434_v48 = vadd.f32 %v681_v61, %v4093_v31  ;;  %v1113_v20 = vmul.f32 %v985_v8, %v4408_v4  ;;  %v986_v6 = vmul.f32 %v4429_v41, %v4429_v41  ;;  %v4439_v33 = vmul.f32 0.7978846, %v1493_v29 }
 0x1b8   : > { %2305 = vmatprep.mubr.f32.mxu1 %v1991_v35  ;;  %v1990_v36 = vmul.f32 %v1862_v63, %v1222_v37  ;;  %v1865_v50 = vadd.f32 1.0, %v3308_v51  ;;  %v3310_v53 = vpop.eup %3309  ;;  %v1494_v55 = vadd.f32 %v1366_v22, %v4382_v34  ;;  %3315 = vtanh.f32 %v4358_v49 }
 0x1b9   : > { %v691_v14 = vpop.f32.mrb[42].mxu0  ;;  %v987_v45 = vmul.f32 %v4434_v48, %v4434_v48  ;;  %v1864_v27 = vadd.f32 1.0, %v3310_v53  ;;  %v1227_v1 = vmul.f32 0.5, %v4264_v59  ;;  %v1114_v61 = vmul.f32 %v986_v6, %v4429_v41 }
 0x1ba   : > { %v693_v56 = vpop.f32.mrb[43].mxu0  ;;  %2306 = vmatmul.mubr.f32.gmra.mrb[10].mxu1 %v1990_v36  ;;  %v1993_v60 = vmul.f32 %v1865_v50, %v1225_v18  ;;  %v1495_v54 = vadd.f32 %v1367_v9, %v4385_v25  ;;  %3317 = vtanh.f32 %v4349_v39  ;;  %v4451_v40 = vadd.f32 %v685_v28, %v4090_v30 }
 0x1bb   : > { %v1115_v37 = vmul.f32 %v987_v45, %v4434_v48  ;;  %v1992_v49 = vmul.f32 %v1864_v27, %v1224_v58  ;;  %v1496_v16 = vadd.f32 %v1368_v46, %v4400_v11  ;;  %v1369_v12 = vmul.f32 0.044715, %v1113_v20 }
 0x1bc   : > { %v3312_v52 = vpop.eup %3311  ;;  %2310 = vmatprep.mubr.f32.mxu1 %v1993_v60  ;;  %v4455_v17 = vadd.f32 %v687_v2, %v4093_v31  ;;  %v1370_v8 = vmul.f32 0.044715, %v1114_v61  ;;  %v988_v3 = vmul.f32 %v4451_v40, %v4451_v40  ;;  %3319 = vtanh.f32 %v4387_v43 }
 0x1bd   : > { %v697_v59 = vpop.f32.mrb[44].mxu0  ;;  %v1867_v24 = vadd.f32 1.0, %v3312_v52  ;;  %v1226_v28 = vmul.f32 0.5, %v4256_v32  ;;  %v1371_v29 = vmul.f32 0.044715, %v1115_v37  ;;  %3321 = vtanh.f32 %v4370_v13 }
 0x1be   : > { %v699_v39 = vpop.f32.mrb[45].mxu0  ;;  %2311 = vmatmul.mubr.f32.gmra.mrb[12].mxu1 %v1992_v49  ;;  %v989_v22 = vmul.f32 %v4455_v17, %v4455_v17  ;;  %v4464_v2 = vmul.f32 0.7978846, %v1494_v55  ;;  %v1116_v63 = vmul.f32 %v988_v3, %v4451_v40  ;;  %v4468_v58 = vadd.f32 %v691_v14, %v4090_v30 }
 0x1bf   : > { %v3314_v18 = vpop.eup %3313  ;;  %v1995_v35 = vmul.f32 %v1867_v24, %v1227_v1  ;;  %v4470_v43 = vmul.f32 0.7978846, %v1495_v54  ;;  %v1497_v51 = vadd.f32 %v1369_v12, %v4408_v4  ;;  %v4474_v9 = vadd.f32 %v693_v56, %v4093_v31 }
 0x1c0   : > { %v1866_v32 = vadd.f32 1.0, %v3314_v18  ;;  %v4476_v36 = vmul.f32 0.7978846, %v1496_v16  ;;  %v1498_v13 = vadd.f32 %v1370_v8, %v4429_v41  ;;  %v1229_v50 = vmul.f32 0.5, %v4280_v0 }
 0x1c1   : > { %v703_v46 = vpop.f32.mrb[46].mxu0  ;;  %2315 = vmatprep.mubr.f32.mxu1 %v1995_v35  ;;  %v990_v20 = vmul.f32 %v4468_v58, %v4468_v58  ;;  %v1499_v53 = vadd.f32 %v1371_v29, %v4434_v48  ;;  %v1117_v55 = vmul.f32 %v989_v22, %v4455_v17  ;;  %3323 = vtanh.f32 %v4410_v19 }
 0x1c2   : > { %v705_v6 = vpop.f32.mrb[47].mxu0  ;;  %v1994_v14 = vmul.f32 %v1866_v32, %v1226_v28  ;;  %v3316_v45 = vpop.eup %3315  ;;  %v1228_v56 = vmul.f32 0.5, %v4276_v15  ;;  %v1372_v60 = vmul.f32 0.044715, %v1116_v63  ;;  %v991_v27 = vmul.f32 %v4474_v9, %v4474_v9 }
 0x1c3   : > { %3325 = vtanh.f32 %v4391_v44  ;;  %v4489_v0 = vmul.f32 0.7978846, %v1497_v51  ;;  %v1869_v1 = vadd.f32 1.0, %v3316_v45  ;;  %v1231_v61 = vmul.f32 0.5, %v4300_v42 }
 0x1c4   : > { %2316 = vmatmul.mubr.f32.gmra.mrb[14].mxu1 %v1994_v14  ;;  %v4493_v54 = vadd.f32 %v697_v59, %v4090_v30  ;;  %v3318_v19 = vpop.eup %3317  ;;  %v4495_v52 = vmul.f32 0.7978846, %v1498_v13  ;;  %v1230_v15 = vmul.f32 0.5, %v4294_v38  ;;  %v1118_v49 = vmul.f32 %v990_v20, %v4468_v58 }
 0x1c5   : > { %v709_v37 = vpop.f32.mrb[48].mxu0  ;;  %v4500_v16 = vadd.f32 %v699_v39, %v4093_v31  ;;  %v4502_v12 = vmul.f32 0.7978846, %v1499_v53  ;;  %v1997_v24 = vmul.f32 %v1869_v1, %v1229_v50  ;;  %v1868_v8 = vadd.f32 1.0, %v3318_v19 }
 0x1c6   : > { %v711_v44 = vpop.f32.mrb[49].mxu0  ;;  %v1373_v42 = vmul.f32 0.044715, %v1117_v55  ;;  %v3320_v3 = vpop.eup %3319  ;;  %v1500_v59 = vadd.f32 %v1372_v60, %v4451_v40  ;;  %v1119_v28 = vmul.f32 %v991_v27, %v4474_v9  ;;  %v992_v29 = vmul.f32 %v4493_v54, %v4493_v54 }
 0x1c7   : > { %3327 = vtanh.f32 %v4420_v21  ;;  %v3322_v38 = vpop.eup %3321  ;;  %2320 = vmatprep.mubr.f32.mxu1 %v1997_v24  ;;  %v1996_v39 = vmul.f32 %v1868_v8, %v1228_v56  ;;  %v1871_v22 = vadd.f32 1.0, %v3320_v3  ;;  %v1233_v18 = vmul.f32 0.5, %v4321_v7 }
 0x1c8   : > { %v993_v35 = vmul.f32 %v4500_v16, %v4500_v16  ;;  %v1870_v51 = vadd.f32 1.0, %v3322_v38  ;;  %v1374_v32 = vmul.f32 0.044715, %v1118_v49  ;;  %v1232_v13 = vmul.f32 0.5, %v4314_v62 }
 0x1c9   : > { %v715_v63 = vpop.f32.mrb[50].mxu0  ;;  %v1120_v50 = vmul.f32 %v992_v29, %v4493_v54  ;;  %2321 = vmatmul.mubr.f32.gmra.mrb[16].mxu1 %v1996_v39  ;;  %v1501_v21 = vadd.f32 %v1373_v42, %v4455_v17  ;;  %v1999_v14 = vmul.f32 %v1871_v22, %v1231_v61  ;;  %3329 = vtanh.f32 %v4418_v47 }
 0x1ca   : > { %v717_v20 = vpop.f32.mrb[51].mxu0  ;;  %v4517_v53 = vadd.f32 %v703_v46, %v4090_v30  ;;  %v4519_v7 = vmul.f32 0.7978846, %v1500_v59  ;;  %v1375_v55 = vmul.f32 0.044715, %v1119_v28  ;;  %v1235_v45 = vmul.f32 0.5, %v4342_v57 }
 0x1cb   : > { %v4523_v56 = vadd.f32 %v705_v6, %v4093_v31  ;;  %v3324_v62 = vpop.eup %3323  ;;  %2325 = vmatprep.mubr.f32.mxu1 %v1999_v14  ;;  %v1998_v60 = vmul.f32 %v1870_v51, %v1230_v15  ;;  %v1121_v27 = vmul.f32 %v993_v35, %v4500_v16  ;;  %3331 = vtanh.f32 %v4439_v33 }
 0x1cc   : > { %v994_v1 = vmul.f32 %v4517_v53, %v4517_v53  ;;  %v1502_v61 = vadd.f32 %v1374_v32, %v4468_v58  ;;  %v1873_v19 = vadd.f32 1.0, %v3324_v62  ;;  %v1376_v57 = vmul.f32 0.044715, %v1120_v50 }
 0x1cd   : > { %v4529_v47 = vpop.f32.mrb[52].mxu0  ;;  %v3326_v46 = vpop.eup %3325  ;;  %v995_v6 = vmul.f32 %v4523_v56, %v4523_v56  ;;  %2326 = vmatmul.mubr.f32.gmra.mrb[18].mxu1 %v1998_v60  ;;  %3333 = vtanh.f32 %v4431_v23  ;;  %v4539_v33 = vadd.f32 %v709_v37, %v4090_v30  ;;  %v4541_v8 = vmul.f32 0.7978846, %v1501_v21 }
 0x1ce   : > { %v4534_v49 = vpop.f32.mrb[53].mxu0  ;;  %v1872_v15 = vadd.f32 1.0, %v3326_v46  ;;  %v1122_v24 = vmul.f32 %v994_v1, %v4517_v53  ;;  %v1503_v42 = vadd.f32 %v1375_v55, %v4474_v9  ;;  %v2001_v3 = vmul.f32 %v1873_v19, %v1233_v18 }
 0x1cf   : > { %v1123_v59 = vmul.f32 %v995_v6, %v4523_v56  ;;  %v1377_v29 = vmul.f32 0.044715, %v1121_v27  ;;  %v996_v38 = vmul.f32 %v4539_v33, %v4539_v33  ;;  %v4548_v39 = vadd.f32 %v711_v44, %v4093_v31 }
 0x1d0   : > { %v2000_v28 = vmul.f32 %v1872_v15, %v1232_v13  ;;  %v4552_v37 = vmul.f32 0.7978846, %v1502_v61  ;;  %2330 = vmatprep.mubr.f32.mxu1 %v2001_v3  ;;  %v1504_v35 = vadd.f32 %v1376_v57, %v4493_v54  ;;  %v1234_v18 = vmul.f32 0.5, %v4337_v26 }
 0x1d1   : > { %v4550_v22 = vpop.f32.mrb[54].mxu0  ;;  %v3328_v23 = vpop.eup %3327  ;;  %3335 = vtanh.f32 %v4470_v43  ;;  %v1378_v13 = vmul.f32 0.044715, %v1122_v24  ;;  %v1379_v50 = vmul.f32 0.044715, %v1123_v59  ;;  %v997_v44 = vmul.f32 %v4548_v39, %v4548_v39 }
 0x1d2   : > { %v4557_v51 = vpop.f32.mrb[55].mxu0  ;;  %2331 = vmatmul.mubr.f32.gmra.mrb[20].mxu1 %v2000_v28  ;;  %v1875_v32 = vadd.f32 1.0, %v3328_v23  ;;  %v1124_v21 = vmul.f32 %v996_v38, %v4539_v33  ;;  %3337 = vtanh.f32 %v4464_v2  ;;  %v4564_v14 = vadd.f32 %v715_v63, %v4090_v30 }
 0x1d3   : > { %v4567_v26 = vadd.f32 %v717_v20, %v4093_v31  ;;  %v3330_v43 = vpop.eup %3329  ;;  %v4569_v55 = vmul.f32 0.7978846, %v1503_v42  ;;  %v1505_v62 = vadd.f32 %v1377_v29, %v4500_v16  ;;  %v1237_v27 = vmul.f32 0.5, %v4368_v5 }
 0x1d4   : > { %v2003_v60 = vmul.f32 %v1875_v32, %v1235_v45  ;;  %v1874_v46 = vadd.f32 1.0, %v3330_v43  ;;  %v1236_v61 = vmul.f32 0.5, %v4365_v10  ;;  %v1125_v2 = vmul.f32 %v997_v44, %v4548_v39 }
 0x1d5   : > { %v4573_v1 = vpop.f32.mrb[56].mxu0  ;;  %v998_v63 = vmul.f32 %v4564_v14, %v4564_v14  ;;  %v3332_v19 = vpop.eup %3331  ;;  %v4581_v57 = vmul.f32 0.7978846, %v1504_v35  ;;  %v1506_v45 = vadd.f32 %v1378_v13, %v4517_v53  ;;  %v1507_v5 = vadd.f32 %v1379_v50, %v4523_v56 }
 0x1d6   : > { %v4579_v20 = vpop.f32.mrb[57].mxu0  ;;  %2335 = vmatprep.mubr.f32.mxu1 %v2003_v60  ;;  %3339 = vtanh.f32 %v4489_v0  ;;  %v2002_v6 = vmul.f32 %v1874_v46, %v1234_v18  ;;  %v1877_v15 = vadd.f32 1.0, %v3332_v19  ;;  %v1380_v10 = vmul.f32 0.044715, %v1124_v21 }
 0x1d7   : > { %v999_v24 = vmul.f32 %v4567_v26, %v4567_v26  ;;  %v3334_v42 = vpop.eup %3333  ;;  %v4588_v3 = vmul.f32 0.7978846, %v1505_v62  ;;  %v1239_v59 = vmul.f32 0.5, %v4385_v25  ;;  %v1126_v28 = vmul.f32 %v998_v63, %v4564_v14 }
 0x1d8   : > { %3341 = vtanh.f32 %v4476_v36  ;;  %2336 = vmatmul.mubr.f32.gmra.mrb[22].mxu1 %v2002_v6  ;;  %v2005_v38 = vmul.f32 %v1877_v15, %v1237_v27  ;;  %v1876_v0 = vadd.f32 1.0, %v3334_v42  ;;  %v1381_v23 = vmul.f32 0.044715, %v1125_v2 }
 0x1d9   : > { %v4593_v29 = vpop.f32.mrb[58].mxu0  ;;  %v1238_v35 = vmul.f32 0.5, %v4382_v34  ;;  %v4598_v32 = vmul.f32 0.7978846, %v1506_v45  ;;  %v4600_v13 = vmul.f32 0.7978846, %v1507_v5  ;;  %v4604_v25 = vadd.f32 %v4529_v47, %v4090_v30 }
 0x1da   : > { %v4596_v18 = vpop.f32.mrb[59].mxu0  ;;  %v4608_v36 = vadd.f32 %v4534_v49, %v4093_v31  ;;  %2340 = vmatprep.mubr.f32.mxu1 %v2005_v38  ;;  %v2004_v44 = vmul.f32 %v1876_v0, %v1236_v61  ;;  %v1508_v21 = vadd.f32 %v1380_v10, %v4539_v33  ;;  %v1127_v34 = vmul.f32 %v999_v24, %v4567_v26 }
 0x1db   : > { %v3336_v50 = vpop.eup %3335  ;;  %3343 = vtanh.f32 %v4502_v12  ;;  %v1382_v62 = vmul.f32 0.044715, %v1126_v28  ;;  %v1000_v60 = vmul.f32 %v4604_v25, %v4604_v25  ;;  %v1509_v46 = vadd.f32 %v1381_v23, %v4548_v39 }
 0x1dc   : > { %v1879_v43 = vadd.f32 1.0, %v3336_v50  ;;  %v1001_v47 = vmul.f32 %v4608_v36, %v4608_v36  ;;  %v3338_v49 = vpop.eup %3337  ;;  %2341 = vmatmul.mubr.f32.gmra.mrb[24].mxu1 %v2004_v44  ;;  %v1241_v61 = vmul.f32 0.5, %v4408_v4  ;;  %3345 = vtanh.f32 %v4495_v52 }
 0x1dd   : > { %v4617_v27 = vpop.f32.mrb[60].mxu0  ;;  %v4624_v12 = vadd.f32 %v4550_v22, %v4090_v30  ;;  %v1878_v19 = vadd.f32 1.0, %v3338_v49  ;;  %v1128_v45 = vmul.f32 %v1000_v60, %v4604_v25  ;;  %v1383_v6 = vmul.f32 0.044715, %v1127_v34 }
 0x1de   : > { %v4626_v2 = vpop.f32.mrb[61].mxu0  ;;  %v2007_v63 = vmul.f32 %v1879_v43, %v1239_v59  ;;  %v1129_v5 = vmul.f32 %v1001_v47, %v4608_v36  ;;  %v4634_v4 = vadd.f32 %v4557_v51, %v4093_v31  ;;  %3347 = vtanh.f32 %v4541_v8 }
 0x1df   : > { %v1002_v15 = vmul.f32 %v4624_v12, %v4624_v12  ;;  %v4637_v22 = vmul.f32 0.7978846, %v1508_v21  ;;  %v2006_v10 = vmul.f32 %v1878_v19, %v1238_v35  ;;  %v1510_v24 = vadd.f32 %v1382_v62, %v4564_v14 }
 0x1e0   : > { %v3340_v52 = vpop.eup %3339  ;;  %2345 = vmatprep.mubr.f32.mxu1 %v2007_v63  ;;  %v1240_v42 = vmul.f32 0.5, %v4400_v11  ;;  %v1384_v38 = vmul.f32 0.044715, %v1128_v45  ;;  %v1003_v0 = vmul.f32 %v4634_v4, %v4634_v4  ;;  %3349 = vtanh.f32 %v4519_v7 }
 0x1e1   : > { %v4641_v59 = vpop.f32.mrb[62].mxu0  ;;  %v1881_v28 = vadd.f32 1.0, %v3340_v52  ;;  %2346 = vmatmul.mubr.f32.gmra.mrb[26].mxu1 %v2006_v10  ;;  %v1385_v23 = vmul.f32 0.044715, %v1129_v5  ;;  %v1130_v35 = vmul.f32 %v1002_v15, %v4624_v12  ;;  %v4651_v50 = vadd.f32 %v4573_v1, %v4090_v30 }
 0x1e2   : > { %v4646_v51 = vpop.f32.mrb[63].mxu0  ;;  %v3342_v8 = vpop.eup %3341  ;;  %v4655_v11 = vadd.f32 %v4579_v20, %v4093_v31  ;;  %v4657_v44 = vmul.f32 0.7978846, %v1509_v46  ;;  %v1511_v21 = vadd.f32 %v1383_v6, %v4567_v26  ;;  %v1243_v43 = vmul.f32 0.5, %v4434_v48 }
 0x1e3   : > { %v2009_v7 = vmul.f32 %v1881_v28, %v1241_v61  ;;  %v1880_v34 = vadd.f32 1.0, %v3342_v8  ;;  %v1242_v62 = vmul.f32 0.5, %v4429_v41  ;;  %v1131_v60 = vmul.f32 %v1003_v0, %v4634_v4 }
 0x1e4   : > { %v1004_v1 = vmul.f32 %v4651_v50, %v4651_v50  ;;  %v4667_v20 = vmul.f32 0.7978846, %v1510_v24  ;;  %v1512_v63 = vadd.f32 %v1384_v38, %v4604_v25  ;;  %v1005_v61 = vmul.f32 %v4655_v11, %v4655_v11 }
 0x1e5   : > { %v4665_v47 = vpop.f32.mrb[64].mxu0  ;;  %v3344_v49 = vpop.eup %3343  ;;  %2350 = vmatprep.mubr.f32.mxu1 %v2009_v7  ;;  %v2008_v46 = vmul.f32 %v1880_v34, %v1240_v42  ;;  %v1513_v41 = vadd.f32 %v1385_v23, %v4608_v36  ;;  %v1386_v45 = vmul.f32 0.044715, %v1130_v35  ;;  %3351 = vtanh.f32 %v4569_v55 }
 0x1e6   : > { %v4672_v48 = vpop.f32.mrb[65].mxu0  ;;  %v1883_v19 = vadd.f32 1.0, %v3344_v49  ;;  %v3346_v5 = vpop.eup %3345  ;;  %v4676_v6 = vmul.f32 0.7978846, %v1511_v21  ;;  %v1245_v15 = vmul.f32 0.5, %v4455_v17  ;;  %v1132_v52 = vmul.f32 %v1004_v1, %v4651_v50 }
 0x1e7   : > { %2351 = vmatmul.mubr.f32.gmra.mrb[28].mxu1 %v2008_v46  ;;  %3353 = vtanh.f32 %v4552_v37  ;;  %v1882_v24 = vadd.f32 1.0, %v3346_v5  ;;  %v1387_v42 = vmul.f32 0.044715, %v1131_v60  ;;  %v1244_v28 = vmul.f32 0.5, %v4451_v40 }
 0x1e8   : > { %v2011_v10 = vmul.f32 %v1883_v19, %v1243_v43  ;;  %v3348_v0 = vpop.eup %3347  ;;  %v4684_v8 = vmul.f32 0.7978846, %v1512_v63  ;;  %v1133_v55 = vmul.f32 %v1005_v61, %v4655_v11  ;;  %v4689_v23 = vadd.f32 %v4593_v29, %v4090_v30 }
 0x1e9   : > { %v4682_v38 = vpop.f32.mrb[66].mxu0  ;;  %v4693_v17 = vadd.f32 %v4596_v18, %v4093_v31  ;;  %v4697_v35 = vmul.f32 0.7978846, %v1513_v41  ;;  %v2010_v40 = vmul.f32 %v1882_v24, %v1242_v62  ;;  %v1514_v21 = vadd.f32 %v1386_v45, %v4624_v12 }
 0x1ea   : > { %v4695_v37 = vpop.f32.mrb[67].mxu0  ;;  %2355 = vmatprep.mubr.f32.mxu1 %v2011_v10  ;;  %v1885_v7 = vadd.f32 1.0, %v3348_v0  ;;  %v3350_v34 = vpop.eup %3349  ;;  %v1388_v43 = vmul.f32 0.044715, %v1132_v52  ;;  %v1006_v60 = vmul.f32 %v4689_v23, %v4689_v23  ;;  %3355 = vtanh.f32 %v4588_v3 }
 0x1eb   : > { %v1007_v29 = vmul.f32 %v4693_v17, %v4693_v17  ;;  %2356 = vmatmul.mubr.f32.gmra.mrb[30].mxu1 %v2010_v40  ;;  %v1515_v18 = vadd.f32 %v1387_v42, %v4634_v4  ;;  %v1884_v49 = vadd.f32 1.0, %v3350_v34  ;;  %v1247_v62 = vmul.f32 0.5, %v4474_v9 }
 0x1ec   : > { %v2013_v1 = vmul.f32 %v1885_v7, %v1245_v15  ;;  %v1389_v63 = vmul.f32 0.044715, %v1133_v55  ;;  %v1134_v61 = vmul.f32 %v1006_v60, %v4689_v23  ;;  %3357 = vtanh.f32 %v4581_v57 }
 0x1ed   : > { %v4707_v46 = vpop.f32.mrb[68].mxu0  ;;  %v4713_v41 = vadd.f32 %v4617_v27, %v4090_v30  ;;  %v2012_v3 = vmul.f32 %v1884_v49, %v1244_v28  ;;  %v1135_v45 = vmul.f32 %v1007_v29, %v4693_v17  ;;  %v4720_v9 = vadd.f32 %v4626_v2, %v4093_v31 }
 0x1ee   : > { %v4715_v19 = vpop.f32.mrb[69].mxu0  ;;  %2360 = vmatprep.mubr.f32.mxu1 %v2013_v1  ;;  %3359 = vtanh.f32 %v4600_v13  ;;  %v4723_v5 = vmul.f32 0.7978846, %v1514_v21  ;;  %v1516_v57 = vadd.f32 %v1388_v43, %v4651_v50  ;;  %v1390_v15 = vmul.f32 0.044715, %v1134_v61 }
 0x1ef   : > { %v1008_v27 = vmul.f32 %v4713_v41, %v4713_v41  ;;  %v3352_v52 = vpop.eup %3351  ;;  %2361 = vmatmul.mubr.f32.gmra.mrb[32].mxu1 %v2012_v3  ;;  %v1009_v10 = vmul.f32 %v4720_v9, %v4720_v9  ;;  %3361 = vtanh.f32 %v4598_v32  ;;  %v4733_v2 = vadd.f32 %v4641_v59, %v4090_v30 }
 0x1f0   : > { %v4737_v13 = vadd.f32 %v4646_v51, %v4093_v31  ;;  %v4741_v28 = vmul.f32 0.7978846, %v1515_v18  ;;  %v1517_v0 = vadd.f32 %v1389_v63, %v4655_v11  ;;  %v1887_v55 = vadd.f32 1.0, %v3352_v52 }
 0x1f1   : > { %v4739_v24 = vpop.f32.mrb[70].mxu0  ;;  %v3354_v42 = vpop.eup %3353  ;;  %v1246_v40 = vmul.f32 0.5, %v4468_v58  ;;  %v1391_v7 = vmul.f32 0.044715, %v1135_v45  ;;  %v1136_v59 = vmul.f32 %v1008_v27, %v4713_v41  ;;  %v1010_v51 = vmul.f32 %v4733_v2, %v4733_v2 }
 0x1f2   : > { %v4745_v21 = vpop.f32.mrb[71].mxu0  ;;  %v1886_v32 = vadd.f32 1.0, %v3354_v42  ;;  %v2015_v34 = vmul.f32 %v1887_v55, %v1247_v62  ;;  %v1249_v43 = vmul.f32 0.5, %v4500_v16  ;;  %v1248_v60 = vmul.f32 0.5, %v4493_v54 }
 0x1f3   : > { %v1011_v29 = vmul.f32 %v4737_v13, %v4737_v13  ;;  %v4754_v18 = vmul.f32 0.7978846, %v1516_v57  ;;  %v1518_v1 = vadd.f32 %v1390_v15, %v4689_v23  ;;  %v1137_v49 = vmul.f32 %v1009_v10, %v4720_v9 }
 0x1f4   : > { %v2014_v58 = vmul.f32 %v1886_v32, %v1246_v40  ;;  %v3356_v61 = vpop.eup %3355  ;;  %v4760_v3 = vmul.f32 0.7978846, %v1517_v0  ;;  %2365 = vmatprep.mubr.f32.mxu1 %v2015_v34  ;;  %v1251_v16 = vmul.f32 0.5, %v4523_v56  ;;  %v1138_v54 = vmul.f32 %v1010_v51, %v4733_v2 }
 0x1f5   : > { %v4758_v63 = vpop.f32.mrb[72].mxu0  ;;  %3363 = vtanh.f32 %v4657_v44  ;;  %v1519_v45 = vadd.f32 %v1391_v7, %v4693_v17  ;;  %v1889_v57 = vadd.f32 1.0, %v3356_v61  ;;  %v1392_v15 = vmul.f32 0.044715, %v1136_v59 }
 0x1f6   : > { %v4765_v62 = vpop.f32.mrb[73].mxu0  ;;  %2366 = vmatmul.mubr.f32.gmra.mrb[34].mxu1 %v2014_v58  ;;  %v1250_v27 = vmul.f32 0.5, %v4517_v53  ;;  %v3358_v52 = vpop.eup %3357  ;;  %v1139_v10 = vmul.f32 %v1011_v29, %v4737_v13  ;;  %3365 = vtanh.f32 %v4637_v22  ;;  %v4773_v56 = vadd.f32 %v4665_v47, %v4090_v30 }
 0x1f7   : > { %v4777_v44 = vadd.f32 %v4672_v48, %v4093_v31  ;;  %v4779_v0 = vmul.f32 0.7978846, %v1518_v1  ;;  %v2017_v55 = vmul.f32 %v1889_v57, %v1249_v43  ;;  %v1888_v40 = vadd.f32 1.0, %v3358_v52 }
 0x1f8   : > { %v3360_v42 = vpop.eup %3359  ;;  %v1393_v32 = vmul.f32 0.044715, %v1137_v49  ;;  %v1394_v59 = vmul.f32 0.044715, %v1138_v54  ;;  %v1012_v22 = vmul.f32 %v4773_v56, %v4773_v56  ;;  %v4789_v34 = vmul.f32 0.7978846, %v1519_v45 }
 0x1f9   : > { %v4781_v53 = vpop.f32.mrb[74].mxu0  ;;  %v1891_v7 = vadd.f32 1.0, %v3360_v42  ;;  %v1013_v47 = vmul.f32 %v4777_v44, %v4777_v44  ;;  %v3362_v48 = vpop.eup %3361  ;;  %2370 = vmatprep.mubr.f32.mxu1 %v2017_v55  ;;  %v2016_v29 = vmul.f32 %v1888_v40, %v1248_v60  ;;  %v1520_v43 = vadd.f32 %v1392_v15, %v4713_v41 }
 0x1fa   : > { %v4787_v51 = vpop.f32.mrb[75].mxu0  ;;  %3367 = vtanh.f32 %v4676_v6  ;;  %v1890_v1 = vadd.f32 1.0, %v3362_v48  ;;  %v1395_v49 = vmul.f32 0.044715, %v1139_v10  ;;  %v1140_v61 = vmul.f32 %v1012_v22, %v4773_v56 }
 0x1fb   : > { %v2019_v58 = vmul.f32 %v1891_v7, %v1251_v16  ;;  %2371 = vmatmul.mubr.f32.gmra.mrb[36].mxu1 %v2016_v29  ;;  %v1521_v54 = vadd.f32 %v1393_v32, %v4720_v9  ;;  %v1253_v57 = vmul.f32 0.5, %v4548_v39  ;;  %3369 = vtanh.f32 %v4667_v20 }
 0x1fc   : > { %v4799_v45 = vadd.f32 %v4682_v38, %v4090_v30  ;;  %v1522_v6 = vadd.f32 %v1394_v59, %v4733_v2  ;;  %v1252_v16 = vmul.f32 0.5, %v4539_v33  ;;  %v1141_v15 = vmul.f32 %v1013_v47, %v4777_v44 }
 0x1fd   : > { %v4801_v60 = vpop.f32.mrb[76].mxu0  ;;  %2375 = vmatprep.mubr.f32.mxu1 %v2019_v58  ;;  %v4808_v52 = vadd.f32 %v4695_v37, %v4093_v31  ;;  %v2018_v20 = vmul.f32 %v1890_v1, %v1250_v27  ;;  %v1396_v10 = vmul.f32 0.044715, %v1140_v61  ;;  %3371 = vtanh.f32 %v4697_v35 }
 0x1fe   : > { %v4810_v39 = vpop.f32.mrb[77].mxu0  ;;  %v1014_v38 = vmul.f32 %v4799_v45, %v4799_v45  ;;  %v1523_v55 = vadd.f32 %v1395_v49, %v4737_v13  ;;  %3373 = vtanh.f32 %v4684_v8  ;;  %v4821_v37 = vadd.f32 %v4707_v46, %v4090_v30 }
 0x1ff   : > { %v3364_v42 = vpop.eup %3363  ;;  %v1015_v33 = vmul.f32 %v4808_v52, %v4808_v52  ;;  %v4823_v40 = vmul.f32 0.7978846, %v1520_v43  ;;  %v4825_v27 = vmul.f32 0.7978846, %v1521_v54  ;;  %2376 = vmatmul.mubr.f32.gmra.mrb[38].mxu1 %v2018_v20  ;;  %v4830_v22 = vmul.f32 0.7978846, %v1522_v6 }
 0x200   : > { %v1893_v32 = vadd.f32 1.0, %v3364_v42  ;;  %v1142_v35 = vmul.f32 %v1014_v38, %v4799_v45  ;;  %v3366_v59 = vpop.eup %3365  ;;  %v1255_v47 = vmul.f32 0.5, %v4567_v26  ;;  %v1016_v8 = vmul.f32 %v4821_v37, %v4821_v37 }
 0x201   : > { %v4828_v7 = vpop.f32.mrb[78].mxu0  ;;  %v4837_v46 = vadd.f32 %v4715_v19, %v4093_v31  ;;  %v1892_v43 = vadd.f32 1.0, %v3366_v59  ;;  %v1524_v58 = vadd.f32 %v1396_v10, %v4773_v56  ;;  %v1397_v1 = vmul.f32 0.044715, %v1141_v15 }
 0x202   : > { %v4839_v48 = vpop.f32.mrb[79].mxu0  ;;  %v2021_v29 = vmul.f32 %v1893_v32, %v1253_v57  ;;  %v4842_v49 = vmul.f32 0.7978846, %v1523_v55  ;;  %v1398_v61 = vmul.f32 0.044715, %v1142_v35  ;;  %v1143_v54 = vmul.f32 %v1015_v33, %v4808_v52 }
 0x203   : > { %3375 = vtanh.f32 %v4741_v28  ;;  %v2020_v6 = vmul.f32 %v1892_v43, %v1252_v16  ;;  %v1254_v19 = vmul.f32 0.5, %v4564_v14  ;;  %v1144_v20 = vmul.f32 %v1016_v8, %v4821_v37 }
 0x204   : > { %v3368_v26 = vpop.eup %3367  ;;  %2380 = vmatprep.mubr.f32.mxu1 %v2021_v29  ;;  %3377 = vtanh.f32 %v4723_v5  ;;  %v1257_v15 = vmul.f32 0.5, %v4608_v36  ;;  %v1256_v38 = vmul.f32 0.5, %v4604_v25  ;;  %v1017_v42 = vmul.f32 %v4837_v46, %v4837_v46 }
 0x205   : > { %v4849_v57 = vpop.f32.mrb[80].mxu0  ;;  %v1895_v10 = vadd.f32 1.0, %v3368_v26  ;;  %v3370_v55 = vpop.eup %3369  ;;  %2381 = vmatmul.mubr.f32.gmra.mrb[40].mxu1 %v2020_v6  ;;  %v4857_v16 = vmul.f32 0.7978846, %v1524_v58  ;;  %v1525_v14 = vadd.f32 %v1397_v1, %v4777_v44  ;;  %v4862_v5 = vadd.f32 %v4739_v24, %v4090_v30 }
 0x206   : > { %v4855_v28 = vpop.f32.mrb[81].mxu0  ;;  %v4866_v36 = vadd.f32 %v4745_v21, %v4093_v31  ;;  %v1894_v33 = vadd.f32 1.0, %v3370_v55  ;;  %v1526_v32 = vadd.f32 %v1398_v61, %v4799_v45  ;;  %v1399_v35 = vmul.f32 0.044715, %v1143_v54 }
 0x207   : > { %5924 = vst [vmem:[#allocation13_spill] sm:$0xff] %v4862_v5  ;;  %v2023_v25 = vmul.f32 %v1895_v10, %v1255_v47  ;;  %v3372_v59 = vpop.eup %3371  ;;  %v1400_v8 = vmul.f32 0.044715, %v1144_v20  ;;  %v1018_v29 = vmul.f32 %v4862_v5, %v4862_v5  ;;  %3379 = vtanh.f32 %v4760_v3 }
 0x208   : > { %v1019_v43 = vmul.f32 %v4866_v36, %v4866_v36  ;;  %v3374_v58 = vpop.eup %3373  ;;  %v2022_v21 = vmul.f32 %v1894_v33, %v1254_v19  ;;  %v1897_v47 = vadd.f32 1.0, %v3372_v59  ;;  %v1145_v1 = vmul.f32 %v1017_v42, %v4837_v46 }
 0x209   : > { %v4874_v24 = vpop.f32.mrb[82].mxu0  ;;  %2385 = vmatprep.mubr.f32.mxu1 %v2023_v25  ;;  %v1259_v61 = vmul.f32 0.5, %v4634_v4  ;;  %v4880_v26 = vmul.f32 0.7978846, %v1525_v14  ;;  %v1896_v6 = vadd.f32 1.0, %v3374_v58  ;;  %v1146_v20 = vmul.f32 %v1018_v29, %v4862_v5 }
 0x20a   : > { %v4878_v54 = vpop.f32.mrb[83].mxu0  ;;  %v1147_v10 = vmul.f32 %v1019_v43, %v4866_v36  ;;  %2386 = vmatmul.mubr.f32.gmra.mrb[42].mxu1 %v2022_v21  ;;  %v2025_v3 = vmul.f32 %v1897_v47, %v1257_v15  ;;  %3381 = vtanh.f32 %v4754_v18  ;;  %v4887_v19 = vadd.f32 %v4758_v63, %v4090_v30 }
 0x20b   : > { %v4891_v4 = vadd.f32 %v4765_v62, %v4093_v31  ;;  %v4893_v42 = vmul.f32 0.7978846, %v1526_v32  ;;  %v1527_v55 = vadd.f32 %v1399_v35, %v4808_v52  ;;  %v1528_v14 = vadd.f32 %v1400_v8, %v4821_v37 }
 0x20c   : > { %v1258_v25 = vmul.f32 0.5, %v4624_v12  ;;  %2390 = vmatprep.mubr.f32.mxu1 %v2025_v3  ;;  %v2024_v15 = vmul.f32 %v1896_v6, %v1256_v38  ;;  %v1401_v18 = vmul.f32 0.044715, %v1145_v1  ;;  %v1020_v63 = vmul.f32 %v4887_v19, %v4887_v19 }
 0x20d   : > { %v3376_v33 = vpop.eup %3375  ;;  %3383 = vtanh.f32 %v4789_v34  ;;  %v4901_v59 = vpop.f32.mrb[84].mxu0  ;;  %v1402_v29 = vmul.f32 0.044715, %v1146_v20  ;;  %v1403_v43 = vmul.f32 0.044715, %v1147_v10  ;;  %v1021_v38 = vmul.f32 %v4891_v4, %v4891_v4 }
 0x20e   : > { %v3378_v62 = vpop.eup %3377  ;;  %v1899_v32 = vadd.f32 1.0, %v3376_v33  ;;  %v4903_v35 = vpop.f32.mrb[85].mxu0  ;;  %2391 = vmatmul.mubr.f32.gmra.mrb[44].mxu1 %v2024_v15  ;;  %v1148_v12 = vmul.f32 %v1020_v63, %v4887_v19  ;;  %3385 = vtanh.f32 %v4779_v0  ;;  %v4909_v58 = vmul.f32 0.7978846, %v1527_v55 }
 0x20f   : > { %v1898_v8 = vadd.f32 1.0, %v3378_v62  ;;  %v1261_v21 = vmul.f32 0.5, %v4655_v11  ;;  %v4914_v47 = vadd.f32 %v4781_v53, %v4090_v30  ;;  %v4918_v6 = vmul.f32 0.7978846, %v1528_v14 }
 0x210   : > { %v2027_v34 = vmul.f32 %v1899_v32, %v1259_v61  ;;  %v1529_v20 = vadd.f32 %v1401_v18, %v4837_v46  ;;  %v4923_v3 = vadd.f32 %v4787_v51, %v4093_v31  ;;  %v1530_v11 = vadd.f32 %v1402_v29, %v4862_v5 }
 0x211   : > { %v4916_v1 = vpop.f32.mrb[86].mxu0  ;;  %v2026_v10 = vmul.f32 %v1898_v8, %v1258_v25  ;;  %v3380_v61 = vpop.eup %3379  ;;  %v1260_v53 = vmul.f32 0.5, %v4651_v50  ;;  %v1022_v55 = vmul.f32 %v4914_v47, %v4914_v47  ;;  %3387 = vtanh.f32 %v4825_v27 }
 0x212   : > { %v4925_v0 = vpop.f32.mrb[87].mxu0  ;;  %2395 = vmatprep.mubr.f32.mxu1 %v2027_v34  ;;  %v1531_v14 = vadd.f32 %v1403_v43, %v4866_v36  ;;  %v1901_v25 = vadd.f32 1.0, %v3380_v61  ;;  %v1404_v33 = vmul.f32 0.044715, %v1148_v12  ;;  %v1149_v51 = vmul.f32 %v1021_v38, %v4891_v4 }
 0x213   : > { %2396 = vmatmul.mubr.f32.gmra.mrb[46].mxu1 %v2026_v10  ;;  %v1023_v15 = vmul.f32 %v4923_v3, %v4923_v3  ;;  %3389 = vtanh.f32 %v4823_v40  ;;  %v4939_v50 = vadd.f32 %v4801_v60, %v4090_v30  ;;  %v4943_v18 = vadd.f32 %v4810_v39, %v4093_v31 }
 0x214   : > { %v3382_v63 = vpop.eup %3381  ;;  %v4947_v62 = vmul.f32 0.7978846, %v1529_v20  ;;  %v2029_v32 = vmul.f32 %v1901_v25, %v1261_v21  ;;  %v1263_v29 = vmul.f32 0.5, %v4693_v17  ;;  %v1150_v43 = vmul.f32 %v1022_v55, %v4914_v47 }
 0x215   : > { %v4945_v27 = vpop.f32.mrb[88].mxu0  ;;  %v1900_v40 = vadd.f32 1.0, %v3382_v63  ;;  %v1262_v60 = vmul.f32 0.5, %v4689_v23  ;;  %v1024_v12 = vmul.f32 %v4939_v50, %v4939_v50  ;;  %v1025_v39 = vmul.f32 %v4943_v18, %v4943_v18 }
 0x216   : > { %v4951_v8 = vpop.f32.mrb[89].mxu0  ;;  %v4958_v34 = vmul.f32 0.7978846, %v1530_v11  ;;  %v4960_v20 = vmul.f32 0.7978846, %v1531_v14  ;;  %2400 = vmatprep.mubr.f32.mxu1 %v2029_v32  ;;  %3391 = vtanh.f32 %v4842_v49  ;;  %v1532_v10 = vadd.f32 %v1404_v33, %v4887_v19 }
 0x217   : > { %v3384_v38 = vpop.eup %3383  ;;  %v1405_v17 = vmul.f32 0.044715, %v1149_v51  ;;  %v2028_v21 = vmul.f32 %v1900_v40, %v1260_v53  ;;  %v1151_v23 = vmul.f32 %v1023_v15, %v4923_v3  ;;  %v1406_v63 = vmul.f32 0.044715, %v1150_v43 }
 0x218   : > { %v1903_v61 = vadd.f32 1.0, %v3384_v38  ;;  %v3386_v25 = vpop.eup %3385  ;;  %v1152_v5 = vmul.f32 %v1024_v12, %v4939_v50  ;;  %3393 = vtanh.f32 %v4830_v22  ;;  %v4971_v11 = vadd.f32 %v4828_v7, %v4090_v30 }
 0x219   : > { %v4965_v55 = vpop.f32.mrb[90].mxu0  ;;  %2401 = vmatmul.mubr.f32.gmra.mrb[48].mxu1 %v2028_v21  ;;  %v1902_v53 = vadd.f32 1.0, %v3386_v25  ;;  %v1265_v33 = vmul.f32 0.5, %v4720_v9  ;;  %v1153_v51 = vmul.f32 %v1025_v39, %v4943_v18  ;;  %v1533_v15 = vadd.f32 %v1405_v17, %v4891_v4 }
 0x21a   : > { %v4973_v14 = vpop.f32.mrb[91].mxu0  ;;  %v2031_v49 = vmul.f32 %v1903_v61, %v1263_v29  ;;  %v1264_v32 = vmul.f32 0.5, %v4713_v41  ;;  %v1026_v22 = vmul.f32 %v4971_v11, %v4971_v11  ;;  %v4983_v7 = vadd.f32 %v4839_v48, %v4093_v31 }
 0x21b   : > { %v3388_v43 = vpop.eup %3387  ;;  %v4985_v40 = vmul.f32 0.7978846, %v1532_v10  ;;  %v2030_v29 = vmul.f32 %v1902_v53, %v1262_v60  ;;  %v1407_v12 = vmul.f32 0.044715, %v1151_v23  ;;  %3395 = vtanh.f32 %v4880_v26 }
 0x21c   : > { %2405 = vmatprep.mubr.f32.mxu1 %v2031_v49  ;;  %v1534_v39 = vadd.f32 %v1406_v63, %v4914_v47  ;;  %v1905_v41 = vadd.f32 1.0, %v3388_v43  ;;  %v1408_v38 = vmul.f32 0.044715, %v1152_v5  ;;  %v1154_v17 = vmul.f32 %v1026_v22, %v4971_v11 }
 0x21d   : > { %v4988_v9 = vpop.f32.mrb[92].mxu0  ;;  %v3390_v48 = vpop.eup %3389  ;;  %2406 = vmatmul.mubr.f32.gmra.mrb[50].mxu1 %v2030_v29  ;;  %v1409_v61 = vmul.f32 0.044715, %v1153_v51  ;;  %v1027_v10 = vmul.f32 %v4983_v7, %v4983_v7  ;;  %3397 = vtanh.f32 %v4857_v16  ;;  %v4999_v26 = vadd.f32 %v4849_v57, %v4090_v30 }
 0x21e   : > { %v4992_v21 = vpop.f32.mrb[93].mxu0  ;;  %v5001_v60 = vmul.f32 0.7978846, %v1533_v15  ;;  %v2033_v23 = vmul.f32 %v1905_v41, %v1265_v33  ;;  %v1904_v5 = vadd.f32 1.0, %v3390_v48  ;;  %v1267_v25 = vmul.f32 0.5, %v4737_v13 }
 0x21f   : > { %v1535_v63 = vadd.f32 %v1407_v12, %v4923_v3  ;;  %v1266_v49 = vmul.f32 0.5, %v4733_v2  ;;  %v1028_v53 = vmul.f32 %v4999_v26, %v4999_v26  ;;  %v5010_v16 = vadd.f32 %v4855_v28, %v4093_v31 }
 0x220   : > { %v3392_v57 = vpop.eup %3391  ;;  %2410 = vmatprep.mubr.f32.mxu1 %v2033_v23  ;;  %v2032_v15 = vmul.f32 %v1904_v5, %v1264_v32  ;;  %v1536_v33 = vadd.f32 %v1408_v38, %v4939_v50  ;;  %v1410_v22 = vmul.f32 0.044715, %v1154_v17  ;;  %3399 = vtanh.f32 %v4909_v58 }
 0x221   : > { %v5012_v51 = vpop.f32.mrb[94].mxu0  ;;  %v5018_v2 = vmul.f32 0.7978846, %v1534_v39  ;;  %v1537_v43 = vadd.f32 %v1409_v61, %v4943_v18  ;;  %v1907_v29 = vadd.f32 1.0, %v3392_v57  ;;  %v1155_v28 = vmul.f32 %v1027_v10, %v4983_v7 }
 0x222   : > { %v5016_v13 = vpop.f32.mrb[95].mxu0  ;;  %v3394_v12 = vpop.eup %3393  ;;  %2411 = vmatmul.mubr.f32.gmra.mrb[52].mxu1 %v2032_v15  ;;  %v1156_v41 = vmul.f32 %v1028_v53, %v4999_v26  ;;  %3401 = vtanh.f32 %v4893_v42  ;;  %v5026_v32 = vadd.f32 %v4874_v24, %v4090_v30  ;;  %v5030_v58 = vadd.f32 %v4878_v54, %v4093_v31 }
 0x223   : > { %v5032_v39 = vmul.f32 0.7978846, %v1535_v63  ;;  %v2035_v38 = vmul.f32 %v1907_v29, %v1267_v25  ;;  %v1906_v17 = vadd.f32 1.0, %v3394_v12  ;;  %v1029_v48 = vmul.f32 %v5010_v16, %v5010_v16 }
 0x224   : > { %v5038_v10 = vmul.f32 0.7978846, %v1536_v33  ;;  %v1538_v42 = vadd.f32 %v1410_v22, %v4971_v11  ;;  %v1269_v24 = vmul.f32 0.5, %v4777_v44  ;;  %v1030_v23 = vmul.f32 %v5026_v32, %v5026_v32 }
 0x225   : > { %v5036_v61 = vpop.f32.mrb[96].mxu0  ;;  %v3396_v5 = vpop.eup %3395  ;;  %2415 = vmatprep.mubr.f32.mxu1 %v2035_v38  ;;  %v2034_v25 = vmul.f32 %v1906_v17, %v1266_v49  ;;  %v1411_v63 = vmul.f32 0.044715, %v1155_v28  ;;  %v1031_v53 = vmul.f32 %v5030_v58, %v5030_v58  ;;  %3403 = vtanh.f32 %v4947_v62 }
 0x226   : > { %v5044_v54 = vpop.f32.mrb[97].mxu0  ;;  %v5049_v57 = vmul.f32 0.7978846, %v1537_v43  ;;  %v1909_v15 = vadd.f32 1.0, %v3396_v5  ;;  %v1268_v33 = vmul.f32 0.5, %v4773_v56  ;;  %v1157_v29 = vmul.f32 %v1029_v48, %v5010_v16 }
 0x227   : > { %v1412_v44 = vmul.f32 0.044715, %v1156_v41  ;;  %v3398_v22 = vpop.eup %3397  ;;  %2416 = vmatmul.mubr.f32.gmra.mrb[54].mxu1 %v2034_v25  ;;  %v1158_v12 = vmul.f32 %v1030_v23, %v5026_v32  ;;  %3405 = vtanh.f32 %v4918_v6  ;;  %v5057_v49 = vadd.f32 %v4901_v59, %v4090_v30 }
 0x228   : > { %v2037_v62 = vmul.f32 %v1909_v15, %v1269_v24  ;;  %v1908_v43 = vadd.f32 1.0, %v3398_v22  ;;  %v1271_v38 = vmul.f32 0.5, %v4808_v52  ;;  %v1270_v56 = vmul.f32 0.5, %v4799_v45 }
 0x229   : > { %v5059_v28 = vpop.f32.mrb[98].mxu0  ;;  %v5065_v17 = vmul.f32 0.7978846, %v1538_v42  ;;  %v1539_v48 = vadd.f32 %v1411_v63, %v4983_v7  ;;  %v1159_v6 = vmul.f32 %v1031_v53, %v5030_v58  ;;  %v5071_v59 = vadd.f32 %v4903_v35, %v4093_v31 }
 0x22a   : > { %v5063_v41 = vpop.f32.mrb[99].mxu0  ;;  %v3400_v23 = vpop.eup %3399  ;;  %2420 = vmatprep.mubr.f32.mxu1 %v2037_v62  ;;  %v2036_v24 = vmul.f32 %v1908_v43, %v1268_v33  ;;  %v1540_v5 = vadd.f32 %v1412_v44, %v4999_v26  ;;  %v1032_v45 = vmul.f32 %v5057_v49, %v5057_v49  ;;  %3407 = vtanh.f32 %v4960_v20 }
 0x22b   : > { %v1413_v52 = vmul.f32 0.044715, %v1157_v29  ;;  %v1911_v42 = vadd.f32 1.0, %v3400_v23  ;;  %v1414_v25 = vmul.f32 0.044715, %v1158_v12  ;;  %v1273_v35 = vmul.f32 0.5, %v4837_v46 }
 0x22c   : > { %v3402_v53 = vpop.eup %3401  ;;  %2421 = vmatmul.mubr.f32.gmra.mrb[56].mxu1 %v2036_v24  ;;  %v1033_v15 = vmul.f32 %v5071_v59, %v5071_v59  ;;  %3409 = vtanh.f32 %v4958_v34  ;;  %v5085_v33 = vadd.f32 %v4916_v1, %v4090_v30  ;;  %v5089_v20 = vmul.f32 0.7978846, %v1539_v48 }
 0x22d   : > { %v5077_v63 = vpop.f32.mrb[100].mxu0  ;;  %v2039_v22 = vmul.f32 %v1911_v42, %v1271_v38  ;;  %v1910_v29 = vadd.f32 1.0, %v3402_v53  ;;  %v1415_v12 = vmul.f32 0.044715, %v1159_v6  ;;  %v5091_v62 = vmul.f32 0.7978846, %v1540_v5 }
 0x22e   : > { %v5087_v44 = vpop.f32.mrb[101].mxu0  ;;  %v1160_v46 = vmul.f32 %v1032_v45, %v5057_v49  ;;  %v1034_v43 = vmul.f32 %v5085_v33, %v5085_v33  ;;  %v5098_v34 = vadd.f32 %v4925_v0, %v4093_v31  ;;  %v1541_v23 = vadd.f32 %v1413_v52, %v5010_v16 }
 0x22f   : > { %v3404_v1 = vpop.eup %3403  ;;  %2425 = vmatprep.mubr.f32.mxu1 %v2039_v22  ;;  %v2038_v48 = vmul.f32 %v1910_v29, %v1270_v56  ;;  %v1542_v38 = vadd.f32 %v1414_v25, %v5026_v32  ;;  %3411 = vtanh.f32 %v5001_v60  ;;  %v1272_v5 = vmul.f32 0.5, %v4821_v37 }
 0x230   : > { %v1913_v24 = vadd.f32 1.0, %v3404_v1  ;;  %v1161_v45 = vmul.f32 %v1033_v15, %v5071_v59  ;;  %v1162_v42 = vmul.f32 %v1034_v43, %v5085_v33  ;;  %v1543_v52 = vadd.f32 %v1415_v12, %v5030_v58 }
 0x231   : > { %v5103_v6 = vpop.f32.mrb[102].mxu0  ;;  %v3406_v53 = vpop.eup %3405  ;;  %2426 = vmatmul.mubr.f32.gmra.mrb[58].mxu1 %v2038_v48  ;;  %3413 = vtanh.f32 %v4985_v40  ;;  %v5114_v60 = vadd.f32 %v4945_v27, %v4090_v30  ;;  %v5118_v56 = vadd.f32 %v4951_v8, %v4093_v31  ;;  %v1416_v15 = vmul.f32 0.044715, %v1160_v46 }
 0x232   : > { %v5108_v0 = vpop.f32.mrb[103].mxu0  ;;  %v2041_v37 = vmul.f32 %v1913_v24, %v1273_v35  ;;  %v1912_v25 = vadd.f32 1.0, %v3406_v53  ;;  %v1035_v22 = vmul.f32 %v5098_v34, %v5098_v34  ;;  %v5122_v29 = vmul.f32 0.7978846, %v1541_v23  ;;  %v5927_v24 = vld [vmem:[#allocation13_spill] sm:$0xff] }
 0x233   : > { %5925 = vst [vmem:[#allocation14_spill] sm:$0xff] %v5108_v0  ;;  %v5124_v43 = vmul.f32 0.7978846, %v1542_v38  ;;  %v1275_v40 = vmul.f32 0.5, %v4866_v36  ;;  %v1036_v27 = vmul.f32 %v5114_v60, %v5114_v60  ;;  %v1417_v35 = vmul.f32 0.044715, %v1161_v45 }
 0x234   : > { %v3408_v1 = vpop.eup %3407  ;;  %2430 = vmatprep.mubr.f32.mxu1 %v2041_v37  ;;  %v2040_v8 = vmul.f32 %v1912_v25, %v1272_v5  ;;  %v1418_v48 = vmul.f32 0.044715, %v1162_v42  ;;  %3415 = vtanh.f32 %v5032_v39  ;;  %v5134_v23 = vmul.f32 0.7978846, %v1543_v52 }
 0x235   : > { %v5129_v12 = vpop.f32.mrb[104].mxu0  ;;  %v1915_v38 = vadd.f32 1.0, %v3408_v1  ;;  %v1274_v53 = vmul.f32 0.5, %v5927_v24  ;;  %v1037_v36 = vmul.f32 %v5118_v56, %v5118_v56  ;;  %v1163_v5 = vmul.f32 %v1035_v22, %v5098_v34 }
 0x236   : > { %5926 = vst [vmem:[#allocation15_spill] sm:$0xff] %v5129_v12  ;;  %v5132_v46 = vpop.f32.mrb[105].mxu0  ;;  %v3410_v0 = vpop.eup %3409  ;;  %2431 = vmatmul.mubr.f32.gmra.mrb[60].mxu1 %v2040_v8  ;;  %v1544_v12 = vadd.f32 %v1416_v15, %v5057_v49  ;;  %3417 = vtanh.f32 %v5018_v2  ;;  %v5144_v39 = vadd.f32 %v4965_v55, %v4090_v30  ;;  %v1277_v52 = vmul.f32 0.5, %v4891_v4 }
 0x237   : > { %v2043_v45 = vmul.f32 %v1915_v38, %v1275_v40  ;;  %v1914_v42 = vadd.f32 1.0, %v3410_v0  ;;  %v1164_v37 = vmul.f32 %v1036_v27, %v5114_v60  ;;  %v1545_v1 = vadd.f32 %v1417_v35, %v5071_v59 }
 0x238   : > { %v1546_v15 = vadd.f32 %v1418_v48, %v5085_v33  ;;  %v1276_v22 = vmul.f32 0.5, %v4887_v19  ;;  %v5155_v2 = vadd.f32 %v4973_v14, %v4093_v31  ;;  %v1165_v4 = vmul.f32 %v1037_v36, %v5118_v56 }
 0x239   : > { %v5148_v25 = vpop.f32.mrb[106].mxu0  ;;  %v3412_v40 = vpop.eup %3411  ;;  %2435 = vmatprep.mubr.f32.mxu1 %v2043_v45  ;;  %v2042_v0 = vmul.f32 %v1914_v42, %v1274_v53  ;;  %v1038_v27 = vmul.f32 %v5144_v39, %v5144_v39  ;;  %3419 = vtanh.f32 %v5049_v57  ;;  %v5163_v8 = vmul.f32 0.7978846, %v1544_v12 }
 0x23a   : > { %v5157_v55 = vpop.f32.mrb[107].mxu0  ;;  %v1419_v35 = vmul.f32 0.044715, %v1163_v5  ;;  %v1917_v19 = vadd.f32 1.0, %v3412_v40  ;;  %v1279_v48 = vmul.f32 0.5, %v4923_v3  ;;  %v1039_v24 = vmul.f32 %v5155_v2, %v5155_v2 }
 0x23b   : > { %v3414_v14 = vpop.eup %3413  ;;  %2436 = vmatmul.mubr.f32.gmra.mrb[62].mxu1 %v2042_v0  ;;  %v1420_v38 = vmul.f32 0.044715, %v1164_v37  ;;  %3421 = vtanh.f32 %v5038_v10  ;;  %v5171_v53 = vadd.f32 %v4988_v9, %v4090_v30  ;;  %v5175_v57 = vmul.f32 0.7978846, %v1545_v1 }
 0x23c   : > { %v5177_v12 = vmul.f32 0.7978846, %v1546_v15  ;;  %v2045_v5 = vmul.f32 %v1917_v19, %v1277_v52  ;;  %v1916_v3 = vadd.f32 1.0, %v3414_v14  ;;  %v1421_v42 = vmul.f32 0.044715, %v1165_v4 }
 0x23d   : > { %v5173_v36 = vpop.f32.mrb[108].mxu0  ;;  %v1166_v37 = vmul.f32 %v1038_v27, %v5144_v39  ;;  %v1040_v10 = vmul.f32 %v5171_v53, %v5171_v53  ;;  %v5186_v9 = vadd.f32 %v4992_v21, %v4093_v31  ;;  %v1547_v1 = vadd.f32 %v1419_v35, %v5098_v34 }
 0x23e   : > { %v5179_v45 = vpop.f32.mrb[109].mxu0  ;;  %v3416_v40 = vpop.eup %3415  ;;  %2440 = vmatprep.mubr.f32.mxu1 %v2045_v5  ;;  %v2044_v15 = vmul.f32 %v1916_v3, %v1276_v22  ;;  %v1278_v52 = vmul.f32 0.5, %v4914_v47  ;;  %3423 = vtanh.f32 %v5089_v20  ;;  %v1548_v0 = vadd.f32 %v1420_v38, %v5114_v60 }
 0x23f   : > { %5928 = vst [vmem:[#allocation13_spill] sm:$0xff] %v5179_v45  ;;  %v1919_v4 = vadd.f32 1.0, %v3416_v40  ;;  %v1167_v27 = vmul.f32 %v1039_v24, %v5155_v2  ;;  %v1168_v19 = vmul.f32 %v1040_v10, %v5171_v53  ;;  %v1041_v35 = vmul.f32 %v5186_v9, %v5186_v9 }
 0x240   : > { %v3418_v21 = vpop.eup %3417  ;;  %2441 = vmatmul.mubr.f32.gmra.mrb[64].mxu1 %v2044_v15  ;;  %3425 = vtanh.f32 %v5065_v17  ;;  %v5201_v47 = vadd.f32 %v5012_v51, %v4090_v30  ;;  %v5205_v20 = vadd.f32 %v5016_v13, %v4093_v31  ;;  %v1549_v38 = vadd.f32 %v1421_v42, %v5118_v56 }
 0x241   : > { %v5194_v14 = vpop.f32.mrb[110].mxu0  ;;  %v2047_v24 = vmul.f32 %v1919_v4, %v1279_v48  ;;  %v1918_v5 = vadd.f32 1.0, %v3418_v21  ;;  %v1422_v3 = vmul.f32 0.044715, %v1166_v37  ;;  %v5210_v10 = vmul.f32 0.7978846, %v1547_v1 }
 0x242   : > { %5929 = vst [vmem:[#allocation16_spill] sm:$0xff] %v5194_v14  ;;  %v5207_v22 = vpop.f32.mrb[111].mxu0  ;;  %v1281_v40 = vmul.f32 0.5, %v4943_v18  ;;  %v1042_v17 = vmul.f32 %v5201_v47, %v5201_v47  ;;  %v1043_v51 = vmul.f32 %v5205_v20, %v5205_v20  ;;  %v5217_v13 = vmul.f32 0.7978846, %v1548_v0 }
 0x243   : > { %5930 = vst [vmem:[#allocation17_spill] sm:$0xff] %v5207_v22  ;;  %v3420_v15 = vpop.eup %3419  ;;  %2445 = vmatprep.mubr.f32.mxu1 %v2047_v24  ;;  %v2046_v22 = vmul.f32 %v1918_v5, %v1278_v52  ;;  %v1423_v14 = vmul.f32 0.044715, %v1167_v27  ;;  %3427 = vtanh.f32 %v5122_v29  ;;  %v1280_v37 = vmul.f32 0.5, %v4939_v50 }
 0x244   : > { %v1921_v42 = vadd.f32 1.0, %v3420_v15  ;;  %v1424_v18 = vmul.f32 0.044715, %v1168_v19  ;;  %v1169_v1 = vmul.f32 %v1041_v35, %v5186_v9  ;;  %v5226_v45 = vmul.f32 0.7978846, %v1549_v38 }
 0x245   : > { %v5220_v48 = vpop.f32.mrb[112].mxu0  ;;  %v3422_v21 = vpop.eup %3421  ;;  %2446 = vmatmul.mubr.f32.gmra.mrb[66].mxu1 %v2046_v22  ;;  %v1550_v0 = vadd.f32 %v1422_v3, %v5144_v39  ;;  %v1170_v52 = vmul.f32 %v1042_v17, %v5201_v47  ;;  %3429 = vtanh.f32 %v5091_v62  ;;  %v1171_v24 = vmul.f32 %v1043_v51, %v5205_v20 }
 0x246   : > { %v5224_v4 = vpop.f32.mrb[113].mxu0  ;;  %v2049_v29 = vmul.f32 %v1921_v42, %v1281_v40  ;;  %v1920_v27 = vadd.f32 1.0, %v3422_v21  ;;  %v5234_v50 = vadd.f32 %v5036_v61, %v4090_v30  ;;  %v1551_v19 = vadd.f32 %v1423_v14, %v5155_v2 }
 0x247   : > { %v1283_v35 = vmul.f32 0.5, %v4983_v7  ;;  %v1282_v22 = vmul.f32 0.5, %v4971_v11  ;;  %v5241_v38 = vadd.f32 %v5044_v54, %v4093_v31  ;;  %v1552_v40 = vadd.f32 %v1424_v18, %v5171_v53 }
 0x248   : > { %v3424_v62 = vpop.eup %3423  ;;  %2450 = vmatprep.mubr.f32.mxu1 %v2049_v29  ;;  %v2048_v3 = vmul.f32 %v1920_v27, %v1280_v37  ;;  %v1425_v17 = vmul.f32 0.044715, %v1169_v1  ;;  %3431 = vtanh.f32 %v5134_v23  ;;  %v5249_v14 = vmul.f32 0.7978846, %v1550_v0 }
 0x249   : > { %v5243_v5 = vpop.f32.mrb[114].mxu0  ;;  %v1923_v7 = vadd.f32 1.0, %v3424_v62  ;;  %v1426_v11 = vmul.f32 0.044715, %v1170_v52  ;;  %v1285_v51 = vmul.f32 0.5, %v5010_v16  ;;  %v1044_v42 = vmul.f32 %v5234_v50, %v5234_v50 }
 0x24a   : > { %v5247_v61 = vpop.f32.mrb[115].mxu0  ;;  %v3426_v54 = vpop.eup %3425  ;;  %2451 = vmatmul.mubr.f32.gmra.mrb[68].mxu1 %v2048_v3  ;;  %v1427_v15 = vmul.f32 0.044715, %v1171_v24  ;;  %3433 = vtanh.f32 %v5124_v43  ;;  %v5257_v37 = vadd.f32 %v5059_v28, %v4090_v30  ;;  %v5259_v23 = vmul.f32 0.7978846, %v1551_v19 }
 0x24b   : > { %v2051_v18 = vmul.f32 %v1923_v7, %v1283_v35  ;;  %v1922_v1 = vadd.f32 1.0, %v3426_v54  ;;  %v1045_v21 = vmul.f32 %v5241_v38, %v5241_v38  ;;  %v5265_v0 = vmul.f32 0.7978846, %v1552_v40 }
 0x24c   : > { %v1553_v52 = vadd.f32 %v1425_v17, %v5186_v9  ;;  %v1284_v29 = vmul.f32 0.5, %v4999_v26  ;;  %v5271_v43 = vadd.f32 %v5063_v41, %v4093_v31  ;;  %v1554_v19 = vadd.f32 %v1426_v11, %v5201_v47 }
 0x24d   : > { %v5263_v16 = vpop.f32.mrb[116].mxu0  ;;  %v3428_v27 = vpop.eup %3427  ;;  %2455 = vmatprep.mubr.f32.mxu1 %v2051_v18  ;;  %v2050_v24 = vmul.f32 %v1922_v1, %v1282_v22  ;;  %v1046_v35 = vmul.f32 %v5257_v37, %v5257_v37  ;;  %3435 = vtanh.f32 %v5175_v57  ;;  %v1555_v62 = vadd.f32 %v1427_v15, %v5205_v20 }
 0x24e   : > { %v5273_v28 = vpop.f32.mrb[117].mxu0  ;;  %v1925_v3 = vadd.f32 1.0, %v3428_v27  ;;  %v1172_v26 = vmul.f32 %v1044_v42, %v5234_v50  ;;  %v1287_v41 = vmul.f32 0.5, %v5030_v58  ;;  %v1173_v17 = vmul.f32 %v1045_v21, %v5241_v38 }
 0x24f   : > { %v3430_v40 = vpop.eup %3429  ;;  %2456 = vmatmul.mubr.f32.gmra.mrb[70].mxu1 %v2050_v24  ;;  %3437 = vtanh.f32 %v5163_v8  ;;  %v5286_v22 = vadd.f32 %v5077_v63, %v4090_v30  ;;  %v5290_v57 = vadd.f32 %v5087_v44, %v4093_v31  ;;  %v5294_v11 = vmul.f32 0.7978846, %v1553_v52 }
 0x250   : > { %v2053_v54 = vmul.f32 %v1925_v3, %v1285_v51  ;;  %v1924_v58 = vadd.f32 1.0, %v3430_v40  ;;  %v1047_v15 = vmul.f32 %v5271_v43, %v5271_v43  ;;  %v5300_v8 = vmul.f32 0.7978846, %v1554_v19 }
 0x251   : > { %v5292_v7 = vpop.f32.mrb[118].mxu0  ;;  %v1174_v63 = vmul.f32 %v1046_v35, %v5257_v37  ;;  %v1048_v18 = vmul.f32 %v5286_v22, %v5286_v22  ;;  %v1049_v44 = vmul.f32 %v5290_v57, %v5290_v57  ;;  %v1428_v51 = vmul.f32 0.044715, %v1172_v26 }
 0x252   : > { %v5298_v42 = vpop.f32.mrb[119].mxu0  ;;  %v3432_v1 = vpop.eup %3431  ;;  %2460 = vmatprep.mubr.f32.mxu1 %v2053_v54  ;;  %v2052_v21 = vmul.f32 %v1924_v58, %v1284_v29  ;;  %v1286_v52 = vmul.f32 0.5, %v5026_v32  ;;  %3439 = vtanh.f32 %v5210_v10  ;;  %v5309_v27 = vmul.f32 0.7978846, %v1555_v62 }
 0x253   : > { %5931 = vst [vmem:[#allocation18_spill] sm:$0xff] %v5298_v42  ;;  %v1429_v24 = vmul.f32 0.044715, %v1173_v17  ;;  %v1927_v19 = vadd.f32 1.0, %v3432_v1  ;;  %v1175_v40 = vmul.f32 %v1047_v15, %v5271_v43  ;;  %v1176_v42 = vmul.f32 %v1048_v18, %v5286_v22 }
 0x254   : > { %v3434_v35 = vpop.eup %3433  ;;  %2461 = vmatmul.mubr.f32.gmra.mrb[72].mxu1 %v2052_v21  ;;  %3441 = vtanh.f32 %v5177_v12  ;;  %v5318_v29 = vadd.f32 %v5103_v6, %v4090_v30  ;;  %v1430_v26 = vmul.f32 0.044715, %v1174_v63  ;;  %v1177_v17 = vmul.f32 %v1049_v44, %v5290_v57  ;;  %v5933_v12 = vld [vmem:[#allocation14_spill] sm:$0xff] }
 0x255   : > { %v5311_v3 = vpop.f32.mrb[120].mxu0  ;;  %v2055_v10 = vmul.f32 %v1927_v19, %v1287_v41  ;;  %v1926_v62 = vadd.f32 1.0, %v3434_v35  ;;  %v1556_v54 = vadd.f32 %v1428_v51, %v5234_v50  ;;  %v1289_v58 = vmul.f32 0.5, %v5071_v59 }
 0x256   : > { %v5320_v32 = vpop.f32.mrb[121].mxu0  ;;  %v1050_v15 = vmul.f32 %v5318_v29, %v5318_v29  ;;  %v5329_v18 = vadd.f32 %v5933_v12, %v4093_v31  ;;  %v1557_v1 = vadd.f32 %v1429_v24, %v5241_v38  ;;  %v1288_v63 = vmul.f32 0.5, %v5057_v49 }
 0x257   : > { %5932 = vst [vmem:[#allocation19_spill] sm:$0xff] %v5320_v32  ;;  %v3436_v6 = vpop.eup %3435  ;;  %2465 = vmatprep.mubr.f32.mxu1 %v2055_v10  ;;  %v2054_v41 = vmul.f32 %v1926_v62, %v1286_v52  ;;  %3443 = vtanh.f32 %v5226_v45  ;;  %v1431_v21 = vmul.f32 0.044715, %v1175_v40  ;;  %v1432_v51 = vmul.f32 0.044715, %v1176_v42  ;;  %v5934_v40 = vld [vmem:[#allocation15_spill] sm:$0xff] }
 0x258   : > { %v1929_v59 = vadd.f32 1.0, %v3436_v6  ;;  %v1558_v12 = vadd.f32 %v1430_v26, %v5257_v37  ;;  %v1433_v32 = vmul.f32 0.044715, %v1177_v17  ;;  %v1051_v24 = vmul.f32 %v5329_v18, %v5329_v18 }
 0x259   : > { %v5334_v44 = vpop.f32.mrb[122].mxu0  ;;  %v3438_v35 = vpop.eup %3437  ;;  %2466 = vmatmul.mubr.f32.gmra.mrb[74].mxu1 %v2054_v41  ;;  %3445 = vtanh.f32 %v5217_v13  ;;  %v1178_v45 = vmul.f32 %v1050_v15, %v5318_v29  ;;  %v5345_v10 = vadd.f32 %v5934_v40, %v4090_v30  ;;  %v5347_v42 = vmul.f32 0.7978846, %v1556_v54 }
 0x25a   : > { %v5336_v19 = vpop.f32.mrb[123].mxu0  ;;  %v2057_v49 = vmul.f32 %v1929_v59, %v1289_v58  ;;  %v1928_v52 = vadd.f32 1.0, %v3438_v35  ;;  %v5349_v62 = vmul.f32 0.7978846, %v1557_v1  ;;  %v1291_v26 = vmul.f32 0.5, %v5098_v34 }
 0x25b   : > { %v5354_v17 = vadd.f32 %v5132_v46, %v4093_v31  ;;  %v1559_v58 = vadd.f32 %v1431_v21, %v5271_v43  ;;  %v1560_v41 = vadd.f32 %v1432_v51, %v5286_v22  ;;  %3447 = vtanh.f32 %v5259_v23 }
 0x25c   : > { %v3440_v13 = vpop.eup %3439  ;;  %2470 = vmatprep.mubr.f32.mxu1 %v2057_v49  ;;  %v2056_v15 = vmul.f32 %v1928_v52, %v1288_v63  ;;  %v5363_v1 = vmul.f32 0.7978846, %v1558_v12  ;;  %v1290_v59 = vmul.f32 0.5, %v5085_v33  ;;  %v1179_v46 = vmul.f32 %v1051_v24, %v5329_v18 }
 0x25d   : > { %v5356_v6 = vpop.f32.mrb[124].mxu0  ;;  %v1931_v34 = vadd.f32 1.0, %v3440_v13  ;;  %v1561_v40 = vadd.f32 %v1433_v32, %v5290_v57  ;;  %v1434_v21 = vmul.f32 0.044715, %v1178_v45  ;;  %v1052_v63 = vmul.f32 %v5345_v10, %v5345_v10 }
 0x25e   : > { %5935 = vst [vmem:[#allocation14_spill] sm:$0xff] %v5356_v6  ;;  %v5361_v54 = vpop.f32.mrb[125].mxu0  ;;  %v3442_v35 = vpop.eup %3441  ;;  %2471 = vmatmul.mubr.f32.gmra.mrb[76].mxu1 %v2056_v15  ;;  %3449 = vtanh.f32 %v5249_v14  ;;  %v1053_v12 = vmul.f32 %v5354_v17, %v5354_v17  ;;  %v5375_v33 = vadd.f32 %v5148_v25, %v4090_v30  ;;  %v5379_v49 = vmul.f32 0.7978846, %v1559_v58 }
 0x25f   : > { %v2059_v23 = vmul.f32 %v1931_v34, %v1291_v26  ;;  %v1930_v51 = vadd.f32 1.0, %v3442_v35  ;;  %v5381_v32 = vmul.f32 0.7978846, %v1560_v41  ;;  %v1293_v52 = vmul.f32 0.5, %v5118_v56 }
 0x260   : > { %v5386_v14 = vadd.f32 %v5157_v55, %v4093_v31  ;;  %v1435_v15 = vmul.f32 0.044715, %v1179_v46  ;;  %v1292_v25 = vmul.f32 0.5, %v5114_v60  ;;  %3451 = vtanh.f32 %v5294_v11 }
 0x261   : > { %v5377_v24 = vpop.f32.mrb[126].mxu0  ;;  %v3444_v26 = vpop.eup %3443  ;;  %2475 = vmatprep.mubr.f32.mxu1 %v2059_v23  ;;  %v2058_v13 = vmul.f32 %v1930_v51, %v1290_v59  ;;  %v5392_v58 = vmul.f32 0.7978846, %v1561_v40  ;;  %v1562_v41 = vadd.f32 %v1434_v21, %v5318_v29  ;;  %v1180_v56 = vmul.f32 %v1052_v63, %v5345_v10 }
 0x262   : > { %5936 = vst [vmem:[#allocation15_spill] sm:$0xff] %v5377_v24  ;;  %v5388_v45 = vpop.f32.mrb[127].mxu0  ;;  %v1933_v34 = vadd.f32 1.0, %v3444_v26  ;;  %v1181_v55 = vmul.f32 %v1053_v12, %v5354_v17  ;;  %v1054_v23 = vmul.f32 %v5375_v33, %v5375_v33  ;;  %3453 = vtanh.f32 %v5265_v0 }
 0x263   : > { %5937 = vst [vmem:[#allocation20_spill] sm:$0xff] %v5388_v45  ;;  %v3446_v35 = vpop.eup %3445  ;;  %2476 = vmatmul.mubr.f32.gmra.mrb[78].mxu1 %v2058_v13  ;;  %v5402_v60 = vadd.f32 %v5173_v36, %v4090_v30  ;;  %v1295_v40 = vmul.f32 0.5, %v5155_v2  ;;  %v1055_v21 = vmul.f32 %v5386_v14, %v5386_v14  ;;  %v1563_v51 = vadd.f32 %v1435_v15, %v5329_v18  ;;  %v5939_v36 = vld [vmem:[#allocation13_spill] sm:$0xff] }
 0x264   : > { %v2061_v59 = vmul.f32 %v1933_v34, %v1293_v52  ;;  %v1932_v46 = vadd.f32 1.0, %v3446_v35  ;;  %v1294_v12 = vmul.f32 0.5, %v5144_v39  ;;  %v5415_v26 = vadd.f32 %v5939_v36, %v4093_v31 }
 0x265   : > { %v5404_v11 = vpop.f32.mrb[128].mxu0  ;;  %v1056_v0 = vmul.f32 %v5402_v60, %v5402_v60  ;;  %v3448_v13 = vpop.eup %3447  ;;  %v5417_v52 = vmul.f32 0.7978846, %v1562_v41  ;;  %v1436_v34 = vmul.f32 0.044715, %v1180_v56  ;;  %3455 = vtanh.f32 %v5309_v27  ;;  %v5942_v27 = vld [vmem:[#allocation16_spill] sm:$0xff] }
 0x266   : > { %5938 = vst [vmem:[#allocation21_spill] sm:$0xff] %v5404_v11  ;;  %v2264_v63 = vpop.f32.mrb[129].mxu0  ;;  %2480 = vmatprep.mubr.f32.mxu1 %v2061_v59  ;;  %v2060_v2 = vmul.f32 %v1932_v46, %v1292_v25  ;;  %v5420_v35 = vpop.f32.mrb[0].mxu1  ;;  %v1437_v15 = vmul.f32 0.044715, %v1181_v55  ;;  %v1182_v39 = vmul.f32 %v1054_v23, %v5375_v33  ;;  %v1297_v11 = vmul.f32 0.5, %v5186_v9 }
 0x267   : > { %5940 = vst [vmem:[#allocation13_spill] sm:$0xff] %v5420_v35  ;;  %v1935_v63 = vadd.f32 1.0, %v3448_v13  ;;  %v2284_v45 = vpop.f32.mrb[1].mxu1  ;;  %v1183_v41 = vmul.f32 %v1055_v21, %v5386_v14  ;;  %v1184_v25 = vmul.f32 %v1056_v0, %v5402_v60  ;;  %3457 = vtanh.f32 %v5300_v8  ;;  %v5943_v8 = vld [vmem:[#allocation17_spill] sm:$0xff] }
 0x268   : > { %v3450_v36 = vpop.eup %3449  ;;  %2481 = vmatmul.mubr.f32.gmra.mrb[80].mxu1 %v2060_v2  ;;  %v5431_v56 = vadd.f32 %v5942_v27, %v4090_v30  ;;  %v5433_v59 = vmul.f32 0.7978846, %v1563_v51  ;;  %v1057_v45 = vmul.f32 %v5415_v26, %v5415_v26  ;;  %v1564_v46 = vadd.f32 %v1436_v34, %v5345_v10 }
 0x269   : > { %v5424_v24 = vpop.f32.mrb[130].mxu0  ;;  %v2063_v23 = vmul.f32 %v1935_v63, %v1295_v40  ;;  %v1934_v9 = vadd.f32 1.0, %v3450_v36  ;;  %v1296_v21 = vmul.f32 0.5, %v5171_v53  ;;  %v5443_v13 = vadd.f32 %v5943_v8, %v4093_v31 }
 0x26a   : > { %5941 = vst [vmem:[#allocation22_spill] sm:$0xff] %v5424_v24  ;;  %v2269_v55 = vpop.f32.mrb[131].mxu0  ;;  %v1058_v0 = vmul.f32 %v5431_v56, %v5431_v56  ;;  %v5445_v2 = vpop.f32.mrb[2].mxu1  ;;  %v1565_v40 = vadd.f32 %v1437_v15, %v5354_v17  ;;  %v1438_v36 = vmul.f32 0.044715, %v1182_v39  ;;  %3459 = vtanh.f32 %v5349_v62 }
 0x26b   : > { %5944 = vst [vmem:[#allocation16_spill] sm:$0xff] %v5445_v2  ;;  %v3452_v51 = vpop.eup %3451  ;;  %2485 = vmatprep.mubr.f32.mxu1 %v2063_v23  ;;  %v2062_v63 = vmul.f32 %v1934_v9, %v1294_v12  ;;  %v2289_v34 = vpop.f32.mrb[3].mxu1  ;;  %v1439_v53 = vmul.f32 0.044715, %v1183_v41  ;;  %v1440_v24 = vmul.f32 0.044715, %v1184_v25  ;;  %v1185_v8 = vmul.f32 %v1057_v45, %v5415_v26 }
 0x26c   : > { %v1937_v55 = vadd.f32 1.0, %v3452_v51  ;;  %v3454_v6 = vpop.eup %3453  ;;  %v1186_v2 = vmul.f32 %v1058_v0, %v5431_v56  ;;  %3461 = vtanh.f32 %v5347_v42  ;;  %v5456_v12 = vadd.f32 %v5220_v48, %v4090_v30 }
 0x26d   : > { %v5449_v27 = vpop.f32.mrb[132].mxu0  ;;  %2486 = vmatmul.mubr.f32.gmra.mrb[82].mxu1 %v2062_v63  ;;  %v1936_v15 = vadd.f32 1.0, %v3454_v6  ;;  %v1059_v39 = vmul.f32 %v5443_v13, %v5443_v13  ;;  %v5464_v41 = vmul.f32 0.7978846, %v1564_v46  ;;  %v5466_v25 = vmul.f32 0.7978846, %v1565_v40 }
 0x26e   : > { %v2274_v35 = vpop.f32.mrb[133].mxu0  ;;  %v2065_v62 = vmul.f32 %v1937_v55, %v1297_v11  ;;  %v1299_v23 = vmul.f32 0.5, %v5205_v20  ;;  %v1060_v42 = vmul.f32 %v5456_v12, %v5456_v12  ;;  %v1566_v11 = vadd.f32 %v1438_v36, %v5375_v33 }
 0x26f   : > { %v5462_v35 = vadd.f32 %v5224_v4, %v4093_v31  ;;  %v3456_v48 = vpop.eup %3455  ;;  %v1567_v6 = vadd.f32 %v1439_v53, %v5386_v14  ;;  %v2064_v9 = vmul.f32 %v1936_v15, %v1296_v21  ;;  %3463 = vtanh.f32 %v5379_v49 }
 0x270   : > { %2490 = vmatprep.mubr.f32.mxu1 %v2065_v62  ;;  %v1441_v4 = vmul.f32 0.044715, %v1185_v8  ;;  %v1939_v45 = vadd.f32 1.0, %v3456_v48  ;;  %v1298_v46 = vmul.f32 0.5, %v5201_v47  ;;  %v1442_v0 = vmul.f32 0.044715, %v1186_v2 }
 0x271   : > { %v3458_v51 = vpop.eup %3457  ;;  %2491 = vmatmul.mubr.f32.gmra.mrb[84].mxu1 %v2064_v9  ;;  %v1568_v20 = vadd.f32 %v1440_v24, %v5402_v60  ;;  %v1187_v40 = vmul.f32 %v1059_v39, %v5443_v13  ;;  %v1061_v63 = vmul.f32 %v5462_v35, %v5462_v35  ;;  %3465 = vtanh.f32 %v5363_v1 }
 0x272   : > { %v2067_v36 = vmul.f32 %v1939_v45, %v1299_v23  ;;  %v1938_v21 = vadd.f32 1.0, %v3458_v51  ;;  %v1188_v49 = vmul.f32 %v1060_v42, %v5456_v12  ;;  %v5483_v34 = vadd.f32 %v5243_v5, %v4090_v30 }
 0x273   : > { %v5485_v47 = vmul.f32 0.7978846, %v1566_v11  ;;  %v5487_v2 = vmul.f32 0.7978846, %v1567_v6  ;;  %v1301_v24 = vmul.f32 0.5, %v5241_v38  ;;  %v5492_v53 = vadd.f32 %v5247_v61, %v4093_v31 }
 0x274   : > { %v3460_v55 = vpop.eup %3459  ;;  %v1569_v1 = vadd.f32 %v1441_v4, %v5415_v26  ;;  %2495 = vmatprep.mubr.f32.mxu1 %v2067_v36  ;;  %v2066_v8 = vmul.f32 %v1938_v21, %v1298_v46  ;;  %v1570_v62 = vadd.f32 %v1442_v0, %v5431_v56  ;;  %3467 = vtanh.f32 %v5392_v58 }
 0x275   : > { %v5497_v5 = vmul.f32 0.7978846, %v1568_v20  ;;  %v1443_v15 = vmul.f32 0.044715, %v1187_v40  ;;  %v1941_v39 = vadd.f32 1.0, %v3460_v55  ;;  %v1300_v23 = vmul.f32 0.5, %v5234_v50 }
 0x276   : > { %v3462_v38 = vpop.eup %3461  ;;  %2496 = vmatmul.mubr.f32.gmra.mrb[86].mxu1 %v2066_v8  ;;  %v1444_v42 = vmul.f32 0.044715, %v1188_v49  ;;  %v1189_v61 = vmul.f32 %v1061_v63, %v5462_v35  ;;  %v1062_v48 = vmul.f32 %v5483_v34, %v5483_v34  ;;  %3469 = vtanh.f32 %v5381_v32 }
 0x277   : > { %v2069_v11 = vmul.f32 %v1941_v39, %v1301_v24  ;;  %v1940_v6 = vadd.f32 1.0, %v3462_v38  ;;  %v1303_v58 = vmul.f32 0.5, %v5271_v43  ;;  %v1063_v9 = vmul.f32 %v5492_v53, %v5492_v53 }
 0x278   : > { %v5507_v4 = vmul.f32 0.7978846, %v1569_v1  ;;  %v5509_v50 = vmul.f32 0.7978846, %v1570_v62  ;;  %v5513_v45 = vadd.f32 %v5263_v16, %v4090_v30  ;;  %v5517_v46 = vadd.f32 %v5273_v28, %v4093_v31 }
 0x279   : > { %v3464_v32 = vpop.eup %3463  ;;  %v1571_v0 = vadd.f32 %v1443_v15, %v5443_v13  ;;  %2500 = vmatprep.mubr.f32.mxu1 %v2069_v11  ;;  %v2068_v43 = vmul.f32 %v1940_v6, %v1300_v23  ;;  %v1302_v51 = vmul.f32 0.5, %v5257_v37  ;;  %3471 = vtanh.f32 %v5433_v59  ;;  %v5945_v59 = vld [vmem:[#allocation18_spill] sm:$0xff] }
 0x27a   : > { %v5522_v20 = vpop.f32.mrb[4].mxu1  ;;  %v1572_v40 = vadd.f32 %v1444_v42, %v5456_v12  ;;  %v1445_v63 = vmul.f32 0.044715, %v1189_v61  ;;  %v1943_v16 = vadd.f32 1.0, %v3464_v32  ;;  %v1190_v36 = vmul.f32 %v1062_v48, %v5483_v34 }
 0x27b   : > { %v2294_v21 = vpop.f32.mrb[5].mxu1  ;;  %v5526_v28 = vpop.f32.mrb[134].mxu0  ;;  %2501 = vmatmul.mubr.f32.gmra.mrb[88].mxu1 %v2068_v43  ;;  %v1191_v24 = vmul.f32 %v1063_v9, %v5492_v53  ;;  %3473 = vtanh.f32 %v5417_v52  ;;  %v5532_v37 = vadd.f32 %v5292_v7, %v4090_v30  ;;  %v5536_v55 = vadd.f32 %v5945_v59, %v4093_v31 }
 0x27c   : > { %v3466_v49 = vpop.eup %3465  ;;  %v2279_v1 = vpop.f32.mrb[135].mxu0  ;;  %v2071_v8 = vmul.f32 %v1943_v16, %v1303_v58  ;;  %v1064_v15 = vmul.f32 %v5513_v45, %v5513_v45  ;;  %v1065_v39 = vmul.f32 %v5517_v46, %v5517_v46  ;;  %v5542_v23 = vmul.f32 0.7978846, %v1571_v0 }
 0x27d   : > { %v1942_v62 = vadd.f32 1.0, %v3466_v49  ;;  %v1305_v52 = vmul.f32 0.5, %v5290_v57  ;;  %v1066_v7 = vmul.f32 %v5532_v37, %v5532_v37  ;;  %v1067_v38 = vmul.f32 %v5536_v55, %v5536_v55 }
 0x27e   : > { %v3468_v42 = vpop.eup %3467  ;;  %v5549_v61 = vmul.f32 0.7978846, %v1572_v40  ;;  %v1573_v48 = vadd.f32 %v1445_v63, %v5462_v35  ;;  %2505 = vmatprep.mubr.f32.mxu1 %v2071_v8  ;;  %3475 = vtanh.f32 %v5466_v25  ;;  %v1446_v6 = vmul.f32 0.044715, %v1190_v36 }
 0x27f   : > { %v2070_v11 = vmul.f32 %v1942_v62, %v1302_v51  ;;  %v1447_v58 = vmul.f32 0.044715, %v1191_v24  ;;  %v1945_v9 = vadd.f32 1.0, %v3468_v42  ;;  %v1304_v57 = vmul.f32 0.5, %v5286_v22  ;;  %v5946_v24 = vld [vmem:[#allocation19_spill] sm:$0xff] }
 0x280   : > { %v3470_v32 = vpop.eup %3469  ;;  %v1192_v0 = vmul.f32 %v1064_v15, %v5513_v45  ;;  %v1193_v43 = vmul.f32 %v1065_v39, %v5517_v46  ;;  %3477 = vtanh.f32 %v5464_v41  ;;  %v5559_v40 = vadd.f32 %v5311_v3, %v4090_v30 }
 0x281   : > { %2506 = vmatmul.mubr.f32.gmra.mrb[90].mxu1 %v2070_v11  ;;  %v5561_v51 = vpop.f32.mrb[6].mxu1  ;;  %v2073_v25 = vmul.f32 %v1945_v9, %v1305_v52  ;;  %v1944_v63 = vadd.f32 1.0, %v3470_v32  ;;  %v1194_v16 = vmul.f32 %v1066_v7, %v5532_v37  ;;  %v1195_v22 = vmul.f32 %v1067_v38, %v5536_v55 }
 0x282   : > { %v2299_v36 = vpop.f32.mrb[7].mxu1  ;;  %v5565_v21 = vmul.f32 0.7978846, %v1573_v48  ;;  %v1307_v49 = vmul.f32 0.5, %v5329_v18  ;;  %v1068_v41 = vmul.f32 %v5559_v40, %v5559_v40  ;;  %v5572_v3 = vadd.f32 %v5946_v24, %v4093_v31 }
 0x283   : > { %v3472_v59 = vpop.eup %3471  ;;  %v1574_v1 = vadd.f32 %v1446_v6, %v5483_v34  ;;  %v1575_v8 = vadd.f32 %v1447_v58, %v5492_v53  ;;  %2510 = vmatprep.mubr.f32.mxu1 %v2073_v25  ;;  %v2072_v62 = vmul.f32 %v1944_v63, %v1304_v57  ;;  %3479 = vtanh.f32 %v5487_v2 }
 0x284   : > { %v1448_v15 = vmul.f32 0.044715, %v1192_v0  ;;  %v1449_v39 = vmul.f32 0.044715, %v1193_v43  ;;  %v1947_v52 = vadd.f32 1.0, %v3472_v59  ;;  %v1306_v18 = vmul.f32 0.5, %v5318_v29 }
 0x285   : > { %v3474_v7 = vpop.eup %3473  ;;  %2511 = vmatmul.mubr.f32.gmra.mrb[92].mxu1 %v2072_v62  ;;  %v1450_v38 = vmul.f32 0.044715, %v1194_v16  ;;  %v1451_v42 = vmul.f32 0.044715, %v1195_v22  ;;  %v1069_v48 = vmul.f32 %v5572_v3, %v5572_v3  ;;  %3481 = vtanh.f32 %v5485_v47 }
 0x286   : > { %v2075_v11 = vmul.f32 %v1947_v52, %v1307_v49  ;;  %v1946_v6 = vadd.f32 1.0, %v3474_v7  ;;  %v1196_v58 = vmul.f32 %v1068_v41, %v5559_v40  ;;  %v5584_v2 = vadd.f32 %v5334_v44, %v4090_v30  ;;  %v5947_v52 = vld [vmem:[#allocation14_spill] sm:$0xff] }
 0x287   : > { %v5588_v29 = vmul.f32 0.7978846, %v1574_v1  ;;  %v5590_v57 = vmul.f32 0.7978846, %v1575_v8  ;;  %v1309_v32 = vmul.f32 0.5, %v5354_v17  ;;  %v5595_v0 = vadd.f32 %v5336_v19, %v4093_v31 }
 0x288   : > { %v5586_v9 = vpop.f32.mrb[8].mxu1  ;;  %v3476_v43 = vpop.eup %3475  ;;  %v1576_v25 = vadd.f32 %v1448_v15, %v5513_v45  ;;  %v1577_v63 = vadd.f32 %v1449_v39, %v5517_v46  ;;  %2515 = vmatprep.mubr.f32.mxu1 %v2075_v11  ;;  %v2074_v44 = vmul.f32 %v1946_v6, %v1306_v18  ;;  %3483 = vtanh.f32 %v5507_v4 }
 0x289   : > { %v2304_v47 = vpop.f32.mrb[9].mxu1  ;;  %v1578_v16 = vadd.f32 %v1450_v38, %v5532_v37  ;;  %v1949_v22 = vadd.f32 1.0, %v3476_v43  ;;  %v1308_v36 = vmul.f32 0.5, %v5345_v10  ;;  %v1197_v17 = vmul.f32 %v1069_v48, %v5572_v3 }
 0x28a   : > { %v3478_v49 = vpop.eup %3477  ;;  %2516 = vmatmul.mubr.f32.gmra.mrb[94].mxu1 %v2074_v44  ;;  %v1579_v19 = vadd.f32 %v1451_v42, %v5536_v55  ;;  %v1452_v41 = vmul.f32 0.044715, %v1196_v58  ;;  %v1070_v24 = vmul.f32 %v5584_v2, %v5584_v2  ;;  %3485 = vtanh.f32 %v5497_v5 }
 0x28b   : > { %v2077_v59 = vmul.f32 %v1949_v22, %v1309_v32  ;;  %v1948_v1 = vadd.f32 1.0, %v3478_v49  ;;  %v1071_v4 = vmul.f32 %v5595_v0, %v5595_v0  ;;  %v5611_v10 = vadd.f32 %v5361_v54, %v4093_v31 }
 0x28c   : > { %v5615_v62 = vmul.f32 0.7978846, %v1576_v25  ;;  %v5617_v15 = vmul.f32 0.7978846, %v1577_v63  ;;  %v1311_v39 = vmul.f32 0.5, %v5386_v14  ;;  %v5622_v5 = vadd.f32 %v5947_v52, %v4090_v30 }
 0x28d   : > { %v5613_v8 = vpop.f32.mrb[10].mxu1  ;;  %v3480_v7 = vpop.eup %3479  ;;  %v5624_v38 = vmul.f32 0.7978846, %v1578_v16  ;;  %2520 = vmatprep.mubr.f32.mxu1 %v2077_v59  ;;  %v2076_v42 = vmul.f32 %v1948_v1, %v1308_v36  ;;  %v1453_v54 = vmul.f32 0.044715, %v1197_v17  ;;  %3487 = vtanh.f32 %v5542_v23  ;;  %v5948_v17 = vld [vmem:[#allocation15_spill] sm:$0xff] }
 0x28e   : > { %v2309_v18 = vpop.f32.mrb[11].mxu1  ;;  %v1580_v48 = vadd.f32 %v1452_v41, %v5559_v40  ;;  %v1951_v11 = vadd.f32 1.0, %v3480_v7  ;;  %v1310_v6 = vmul.f32 0.5, %v5375_v33  ;;  %v1198_v14 = vmul.f32 %v1070_v24, %v5584_v2  ;;  %v5950_v7 = vld [vmem:[#allocation21_spill] sm:$0xff] }
 0x28f   : > { %v3482_v58 = vpop.eup %3481  ;;  %v5630_v32 = vmul.f32 0.7978846, %v1579_v19  ;;  %2521 = vmatmul.mubr.f32.gmra.mrb[96].mxu1 %v2076_v42  ;;  %v1199_v47 = vmul.f32 %v1071_v4, %v5595_v0  ;;  %v1073_v43 = vmul.f32 %v5611_v10, %v5611_v10  ;;  %3489 = vtanh.f32 %v5509_v50  ;;  %v5949_v50 = vld [vmem:[#allocation20_spill] sm:$0xff] }
 0x290   : > { %v2079_v23 = vmul.f32 %v1951_v11, %v1311_v39  ;;  %v1950_v63 = vadd.f32 1.0, %v3482_v58  ;;  %v1313_v44 = vmul.f32 0.5, %v5415_v26  ;;  %v1072_v33 = vmul.f32 %v5622_v5, %v5622_v5  ;;  %v5654_v26 = vld [vmem:[%s5905_s4] ss:$0 sm:$0xff] }
 0x291   : > { %v5636_v25 = vpop.f32.mrb[12].mxu1  ;;  %v1581_v22 = vadd.f32 %v1453_v54, %v5572_v3  ;;  %v1312_v36 = vmul.f32 0.5, %v5402_v60  ;;  %v5645_v49 = vadd.f32 %v5948_v17, %v4090_v30  ;;  %v5649_v19 = vadd.f32 %v5949_v50, %v4093_v31  ;;  %v5953_v50 = vld [vmem:[#allocation16_spill] sm:$0xff] }
 0x292   : > { %v2314_v16 = vpop.f32.mrb[13].mxu1  ;;  %v3484_v41 = vpop.eup %3483  ;;  %v5656_v24 = vmul.f32 0.7978846, %v1580_v48  ;;  %2525 = vmatprep.mubr.f32.mxu1 %v2079_v23  ;;  %v2078_v59 = vmul.f32 %v1950_v63, %v1310_v6  ;;  %v1454_v1 = vmul.f32 0.044715, %v1198_v14  ;;  %3491 = vtanh.f32 %v5565_v21 }
 0x293   : > { %v1455_v60 = vmul.f32 0.044715, %v1199_v47  ;;  %v1953_v30 = vadd.f32 1.0, %v3484_v41  ;;  %v1201_v4 = vmul.f32 %v1073_v43, %v5611_v10  ;;  %v1075_v31 = vmul.f32 %v5649_v19, %v5649_v19 }
 0x294   : > { %v3486_v39 = vpop.eup %3485  ;;  %2526 = vmatmul.mubr.f32.gmra.mrb[98].mxu1 %v2078_v59  ;;  %v1200_v52 = vmul.f32 %v1072_v33, %v5622_v5  ;;  %v1315_v18 = vmul.f32 0.5, %v5443_v13  ;;  %3493 = vtanh.f32 %v5549_v61  ;;  %v2783_v42 = vadd.f32 %v5654_v26, %v5950_v7  ;;  %v5951_v13 = vld [vmem:[#allocation13_spill] sm:$0xff] }
 0x295   : > { %v1709_v21 = vmul.f32 0.7978846, %v1581_v22  ;;  %v2081_v54 = vmul.f32 %v1953_v30, %v1313_v44  ;;  %v1952_v48 = vadd.f32 1.0, %v3486_v39  ;;  %v1074_v11 = vmul.f32 %v5645_v49, %v5645_v49  ;;  %v5952_v22 = vld [vmem:[#allocation22_spill] sm:$0xff] }
 0x296   : > { %v1582_v14 = vadd.f32 %v1454_v1, %v5584_v2  ;;  %v1203_v58 = vmul.f32 %v1075_v31, %v5649_v19  ;;  %2847 = vst [vmem:[%s5675_s9] sm:$0xff] %v2783_v42  ;;  %v2787_v61 = vadd.f32 %v5654_v26, %v5951_v13  ;;  %3495 = vtanh.f32 %v5590_v57 }
 0x297   : > { %v5669_v6 = vpop.f32.mrb[14].mxu1  ;;  %v3488_v43 = vpop.eup %3487  ;;  %v1583_v23 = vadd.f32 %v1455_v60, %v5595_v0  ;;  %2530 = vmatprep.mubr.f32.mxu1 %v2081_v54  ;;  %v2080_v63 = vmul.f32 %v1952_v48, %v1312_v36  ;;  %v1457_v44 = vmul.f32 0.044715, %v1201_v4  ;;  %3497 = vtanh.f32 %v5588_v29 }
 0x298   : > { %v2319_v47 = vpop.f32.mrb[15].mxu1  ;;  %v1456_v33 = vmul.f32 0.044715, %v1200_v52  ;;  %v1955_v16 = vadd.f32 1.0, %v3488_v43  ;;  %2851 = vst [vmem:[%s5675_s9 + $0x20] sm:$0xff] %v2787_v61  ;;  %v2784_v17 = vadd.f32 %v5654_v26, %v5952_v22  ;;  %v2788_v57 = vadd.f32 %v5654_v26, %v5953_v50 }
 0x299   : > { %v3490_v41 = vpop.eup %3489  ;;  %2531 = vmatmul.mubr.f32.gmra.mrb[100].mxu1 %v2080_v63  ;;  %v1314_v59 = vmul.f32 0.5, %v5431_v56  ;;  %v1202_v36 = vmul.f32 %v1074_v11, %v5645_v49  ;;  %v1317_v1 = vmul.f32 0.5, %v5462_v35  ;;  %3499 = vtanh.f32 %v5617_v15 }
 0x29a   : > { %v2083_v29 = vmul.f32 %v1955_v16, %v1315_v18  ;;  %v1954_v60 = vadd.f32 1.0, %v3490_v41  ;;  %v1459_v30 = vmul.f32 0.044715, %v1203_v58  ;;  %2848 = vst [vmem:[%s5675_s9 + $0x8] sm:$0xff] %v2784_v17  ;;  %2852 = vst [vmem:[%s5675_s9 + $0x28] sm:$0xff] %v2788_v57  ;;  %3501 = vtanh.f32 %v5615_v62 }
 0x29b   : > { %v1585_v4 = vadd.f32 %v1457_v44, %v5611_v10  ;;  %v2785_v56 = vadd.f32 %v5654_v26, %v5449_v27  ;;  %v2789_v31 = vadd.f32 %v5654_v26, %v5522_v20  ;;  %3503 = vtanh.f32 %v5630_v32 }
 0x29c   : > { %v2322_v35 = vpop.f32.mrb[16].mxu1  ;;  %v3492_v15 = vpop.eup %3491  ;;  %v1711_v39 = vmul.f32 0.7978846, %v1583_v23  ;;  %v1584_v52 = vadd.f32 %v1456_v33, %v5622_v5  ;;  %2535 = vmatprep.mubr.f32.mxu1 %v2083_v29  ;;  %v2082_v18 = vmul.f32 %v1954_v60, %v1314_v59  ;;  %3505 = vtanh.f32 %v5624_v38 }
 0x29d   : > { %v2324_v62 = vpop.f32.mrb[17].mxu1  ;;  %v1957_v7 = vadd.f32 1.0, %v3492_v15  ;;  %v1316_v27 = vmul.f32 0.5, %v5456_v12  ;;  %2849 = vst [vmem:[%s5675_s9 + $0x10] sm:$0xff] %v2785_v56  ;;  %2853 = vst [vmem:[%s5675_s9 + $0x30] sm:$0xff] %v2789_v31  ;;  %v2786_v20 = vadd.f32 %v5654_v26, %v5526_v28  ;;  %v2790_v32 = vadd.f32 %v5654_v26, %v5561_v51 }
 0x29e   : > { %v3494_v42 = vpop.eup %3493  ;;  %2536 = vmatmul.mubr.f32.gmra.mrb[102].mxu1 %v2082_v18  ;;  %v1458_v54 = vmul.f32 0.044715, %v1202_v36  ;;  %v1587_v38 = vadd.f32 %v1459_v30, %v5649_v19  ;;  %3507 = vtanh.f32 %v1709_v21  ;;  %v2791_v48 = vadd.f32 %v5654_v26, %v5586_v9 }
 0x29f   : > { %v1713_v11 = vmul.f32 0.7978846, %v1585_v4  ;;  %v2085_v12 = vmul.f32 %v1957_v7, %v1317_v1  ;;  %v1956_v58 = vadd.f32 1.0, %v3494_v42  ;;  %2850 = vst [vmem:[%s5675_s9 + $0x18] sm:$0xff] %v2786_v20  ;;  %2854 = vst [vmem:[%s5675_s9 + $0x38] sm:$0xff] %v2790_v32  ;;  %3509 = vtanh.f32 %v5656_v24 }
 0x2a0   : > { %v2327_v28 = vpop.f32.mrb[18].mxu1  ;;  %v3496_v13 = vpop.eup %3495  ;;  %v1710_v51 = vmul.f32 0.7978846, %v1582_v14  ;;  %v1712_v61 = vmul.f32 0.7978846, %v1584_v52  ;;  %2855 = vst [vmem:[%s5675_s9 + $0x40] sm:$0xff] %v2791_v48  ;;  %3511 = vtanh.f32 %v1711_v39  ;;  %v2792_v21 = vadd.f32 %v5654_v26, %v5613_v8 }
 0x2a1   : > { %v2329_v47 = vpop.f32.mrb[19].mxu1  ;;  %v3498_v9 = vpop.eup %3497  ;;  %2540 = vmatprep.mubr.f32.mxu1 %v2085_v12  ;;  %v2084_v43 = vmul.f32 %v1956_v58, %v1316_v27  ;;  %v1319_v23 = vmul.f32 0.5, %v5492_v53  ;;  %v1959_v63 = vadd.f32 1.0, %v3496_v13  ;;  %v2793_v24 = vadd.f32 %v5654_v26, %v5636_v25 }
 0x2a2   : > { %v1586_v14 = vadd.f32 %v1458_v54, %v5645_v49  ;;  %v1715_v44 = vmul.f32 0.7978846, %v1587_v38  ;;  %v1318_v33 = vmul.f32 0.5, %v5483_v34  ;;  %v1958_v16 = vadd.f32 1.0, %v3498_v9  ;;  %2856 = vst [vmem:[%s5675_s9 + $0x48] sm:$0xff] %v2792_v21 }
 0x2a3   : > { %v3500_v22 = vpop.eup %3499  ;;  %2541 = vmatmul.mubr.f32.gmra.mrb[104].mxu1 %v2084_v43  ;;  %v2087_v8 = vmul.f32 %v1959_v63, %v1319_v23  ;;  %3513 = vtanh.f32 %v1713_v11  ;;  %2857 = vst [vmem:[%s5675_s9 + $0x50] sm:$0xff] %v2793_v24  ;;  %v2794_v53 = vadd.f32 %v5654_v26, %v5669_v6  ;;  %v2795_v17 = vadd.f32 %v5654_v26, %v2322_v35 }
 0x2a4   : > { %v3502_v50 = vpop.eup %3501  ;;  %v1321_v57 = vmul.f32 0.5, %v5517_v46  ;;  %v1961_v34 = vadd.f32 1.0, %v3500_v22  ;;  %3515 = vtanh.f32 %v1710_v51  ;;  %v2796_v41 = vadd.f32 %v5654_v26, %v2327_v28 }
 0x2a5   : > { %v2332_v25 = vpop.f32.mrb[20].mxu1  ;;  %v3504_v36 = vpop.eup %3503  ;;  %2545 = vmatprep.mubr.f32.mxu1 %v2087_v8  ;;  %v2086_v1 = vmul.f32 %v1958_v16, %v1318_v33  ;;  %v1960_v29 = vadd.f32 1.0, %v3502_v50  ;;  %2858 = vst [vmem:[%s5675_s9 + $0x58] sm:$0xff] %v2794_v53  ;;  %2859 = vst [vmem:[%s5675_s9 + $0x60] sm:$0xff] %v2795_v17  ;;  %v1323_v4 = vmul.f32 0.5, %v5536_v55  ;;  %v1320_v56 = vmul.f32 0.5, %v5513_v45 }
 0x2a6   : > { %v2334_v59 = vpop.f32.mrb[21].mxu1  ;;  %v2797_v6 = vadd.f32 %v5654_v26, %v2332_v25  ;;  %v3506_v60 = vpop.eup %3505  ;;  %v2089_v30 = vmul.f32 %v1961_v34, %v1321_v57  ;;  %v1963_v46 = vadd.f32 1.0, %v3504_v36  ;;  %2860 = vst [vmem:[%s5675_s9 + $0x68] sm:$0xff] %v2796_v41  ;;  %3517 = vtanh.f32 %v1715_v44 }
 0x2a7   : > { %2546 = vmatmul.mubr.f32.gmra.mrb[106].mxu1 %v2086_v1  ;;  %v1714_v35 = vmul.f32 0.7978846, %v1586_v14  ;;  %3519 = vtanh.f32 %v1712_v61  ;;  %v2088_v52 = vmul.f32 %v1960_v29, %v1320_v56  ;;  %v1962_v18 = vadd.f32 1.0, %v3506_v60 }
 0x2a8   : > { %2861 = vst [vmem:[%s5675_s9 + $0x70] sm:$0xff] %v2797_v6  ;;  %v3508_v31 = vpop.eup %3507  ;;  %2550 = vmatprep.mubr.f32.mxu1 %v2089_v30  ;;  %v2091_v15 = vmul.f32 %v1963_v46, %v1323_v4  ;;  %v1325_v55 = vmul.f32 0.5, %v5572_v3  ;;  %v1322_v20 = vmul.f32 0.5, %v5532_v37  ;;  %v1327_v58 = vmul.f32 0.5, %v5595_v0 }
 0x2a9   : > { %v3510_v39 = vpop.eup %3509  ;;  %v1965_v62 = vadd.f32 1.0, %v3508_v31  ;;  %3521 = vtanh.f32 %v1714_v35  ;;  %v1324_v28 = vmul.f32 0.5, %v5559_v40  ;;  %v1329_v23 = vmul.f32 0.5, %v5611_v10 }
 0x2aa   : > { %v3512_v7 = vpop.eup %3511  ;;  %v2090_v48 = vmul.f32 %v1962_v18, %v1322_v20  ;;  %v1964_v11 = vadd.f32 1.0, %v3510_v39  ;;  %v1326_v0 = vmul.f32 0.5, %v5584_v2  ;;  %v1331_v8 = vmul.f32 0.5, %v5649_v19 }
 0x2ab   : > { %v2337_v27 = vpop.f32.mrb[22].mxu1  ;;  %2551 = vmatmul.mubr.f32.gmra.mrb[108].mxu1 %v2088_v52  ;;  %v2093_v42 = vmul.f32 %v1965_v62, %v1325_v55  ;;  %v1967_v54 = vadd.f32 1.0, %v3512_v7  ;;  %v1328_v10 = vmul.f32 0.5, %v5622_v5  ;;  %v1330_v34 = vmul.f32 0.5, %v5645_v49 }
 0x2ac   : > { %v2798_v45 = vadd.f32 %v5654_v26, %v2337_v27  ;;  %v2339_v32 = vpop.f32.mrb[23].mxu1  ;;  %2555 = vmatprep.mubr.f32.mxu1 %v2091_v15  ;;  %v2092_v47 = vmul.f32 %v1964_v11, %v1324_v28 }
 0x2ad   : > { %v3514_v38 = vpop.eup %3513  ;;  %v2095_v51 = vmul.f32 %v1967_v54, %v1327_v58 }
 0x2ae   : > { %2862 = vst [vmem:[%s5675_s9 + $0x78] sm:$0xff] %v2798_v45  ;;  %v3516_v12 = vpop.eup %3515  ;;  %v1969_v61 = vadd.f32 1.0, %v3514_v38 }
 0x2af   : > { %v2342_v3 = vpop.f32.mrb[24].mxu1  ;;  %2556 = vmatmul.mubr.f32.gmra.mrb[110].mxu1 %v2090_v48  ;;  %v1966_v9 = vadd.f32 1.0, %v3516_v12 }
 0x2b0   : > { %v2799_v37 = vadd.f32 %v5654_v26, %v2342_v3  ;;  %v2344_v13 = vpop.f32.mrb[25].mxu1  ;;  %2560 = vmatprep.mubr.f32.mxu1 %v2093_v42  ;;  %v3518_v21 = vpop.eup %3517  ;;  %v2097_v40 = vmul.f32 %v1969_v61, %v1329_v23 }
 0x2b1   : > { %v3520_v43 = vpop.eup %3519  ;;  %v1971_v24 = vadd.f32 1.0, %v3518_v21  ;;  %v2094_v33 = vmul.f32 %v1966_v9, %v1326_v0 }
 0x2b2   : > { %2863 = vst [vmem:[%s5675_s9 + $0x80] sm:$0xff] %v2799_v37  ;;  %v1968_v16 = vadd.f32 1.0, %v3520_v43 }
 0x2b3   : > { %2561 = vmatmul.mubr.f32.gmra.mrb[112].mxu1 %v2092_v47  ;;  %v3522_v22 = vpop.eup %3521  ;;  %v2099_v2 = vmul.f32 %v1971_v24, %v1331_v8 }
 0x2b4   : > { %v2347_v63 = vpop.f32.mrb[26].mxu1  ;;  %2565 = vmatprep.mubr.f32.mxu1 %v2095_v51  ;;  %v2096_v17 = vmul.f32 %v1968_v16, %v1328_v10  ;;  %v1970_v25 = vadd.f32 1.0, %v3522_v22 }
 0x2b5   : > { %v2800_v14 = vadd.f32 %v5654_v26, %v2347_v63  ;;  %v2349_v44 = vpop.f32.mrb[27].mxu1 }
 0x2b6   : > { %v2098_v19 = vmul.f32 %v1970_v25, %v1330_v34 }
 0x2b7   : > { %2864 = vst [vmem:[%s5675_s9 + $0x88] sm:$0xff] %v2800_v14  ;;  %2566 = vmatmul.mubr.f32.gmra.mrb[114].mxu1 %v2094_v33 }
 0x2b8   : > { %2570 = vmatprep.mubr.f32.mxu1 %v2097_v40 }
 0x2ba   : > { %v2352_v53 = vpop.f32.mrb[28].mxu1 }
 0x2bb   : > { %v2801_v50 = vadd.f32 %v5654_v26, %v2352_v53  ;;  %v2354_v57 = vpop.f32.mrb[29].mxu1  ;;  %2571 = vmatmul.mubr.f32.gmra.mrb[116].mxu1 %v2096_v17 }
 0x2bc   : > { %2575 = vmatprep.mubr.f32.mxu1 %v2099_v2 }
 0x2bd   : > { %2865 = vst [vmem:[%s5675_s9 + $0x90] sm:$0xff] %v2801_v50 }
 0x2be   : > { %v2357_v41 = vpop.f32.mrb[30].mxu1 }
 0x2bf   : > { %v2802_v5 = vadd.f32 %v5654_v26, %v2357_v41  ;;  %v2359_v59 = vpop.f32.mrb[31].mxu1  ;;  %2576 = vmatmul.mubr.f32.gmra.mrb[118].mxu1 %v2098_v19 }
 0x2c1   : > { %2866 = vst [vmem:[%s5675_s9 + $0x98] sm:$0xff] %v2802_v5 }
 0x2c2   : > { %v2362_v36 = vpop.f32.mrb[32].mxu1 }
 0x2c3   : > { %v2803_v1 = vadd.f32 %v5654_v26, %v2362_v36  ;;  %v2364_v29 = vpop.f32.mrb[33].mxu1 }
 0x2c5   : > { %2867 = vst [vmem:[%s5675_s9 + $0xa0] sm:$0xff] %v2803_v1 }
 0x2c9   : > { %v2367_v6 = vpop.f32.mrb[34].mxu1 }
 0x2ca   : > { %v2804_v49 = vadd.f32 %v5654_v26, %v2367_v6  ;;  %v2369_v60 = vpop.f32.mrb[35].mxu1 }
 0x2cc   : > { %2868 = vst [vmem:[%s5675_s9 + $0xa8] sm:$0xff] %v2804_v49 }
 0x2ce   : > { %v2372_v30 = vpop.f32.mrb[36].mxu1 }
 0x2cf   : > { %v2805_v4 = vadd.f32 %v5654_v26, %v2372_v30  ;;  %v2374_v46 = vpop.f32.mrb[37].mxu1 }
 0x2d1   : > { %2869 = vst [vmem:[%s5675_s9 + $0xb0] sm:$0xff] %v2805_v4 }
 0x2d2   : > { %v2377_v56 = vpop.f32.mrb[38].mxu1 }
 0x2d3   : > { %v2806_v31 = vadd.f32 %v5654_v26, %v2377_v56  ;;  %v2379_v35 = vpop.f32.mrb[39].mxu1 }
 0x2d5   : > { %2870 = vst [vmem:[%s5675_s9 + $0xb8] sm:$0xff] %v2806_v31 }
 0x2d8   : > { %v2382_v15 = vpop.f32.mrb[40].mxu1 }
 0x2d9   : > { %v2807_v39 = vadd.f32 %v5654_v26, %v2382_v15  ;;  %v2384_v52 = vpop.f32.mrb[41].mxu1 }
 0x2db   : > { %2871 = vst [vmem:[%s5675_s9 + $0xc0] sm:$0xff] %v2807_v39 }
 0x2dd   : > { %v2387_v18 = vpop.f32.mrb[42].mxu1 }
 0x2de   : > { %v2808_v62 = vadd.f32 %v5654_v26, %v2387_v18  ;;  %v2389_v7 = vpop.f32.mrb[43].mxu1 }
 0x2e0   : > { %2872 = vst [vmem:[%s5675_s9 + $0xc8] sm:$0xff] %v2808_v62 }
 0x2e1   : > { %v2392_v55 = vpop.f32.mrb[44].mxu1 }
 0x2e2   : > { %v2809_v27 = vadd.f32 %v5654_v26, %v2392_v55  ;;  %v2394_v20 = vpop.f32.mrb[45].mxu1 }
 0x2e4   : > { %2873 = vst [vmem:[%s5675_s9 + $0xd0] sm:$0xff] %v2809_v27 }
 0x2e6   : > { %v2397_v45 = vpop.f32.mrb[46].mxu1 }
 0x2e7   : > { %v2810_v32 = vadd.f32 %v5654_v26, %v2397_v45  ;;  %v2399_v42 = vpop.f32.mrb[47].mxu1 }
 0x2e9   : > { %2874 = vst [vmem:[%s5675_s9 + $0xd8] sm:$0xff] %v2810_v32 }
 0x2ec   : > { %v2402_v54 = vpop.f32.mrb[48].mxu1 }
 0x2ed   : > { %v2811_v38 = vadd.f32 %v5654_v26, %v2402_v54  ;;  %v2404_v48 = vpop.f32.mrb[49].mxu1 }
 0x2ef   : > { %2875 = vst [vmem:[%s5675_s9 + $0xe0] sm:$0xff] %v2811_v38 }
 0x2f0   : > { %v2407_v11 = vpop.f32.mrb[50].mxu1 }
 0x2f1   : > { %v2812_v12 = vadd.f32 %v5654_v26, %v2407_v11  ;;  %v2409_v58 = vpop.f32.mrb[51].mxu1 }
 0x2f3   : > { %2876 = vst [vmem:[%s5675_s9 + $0xe8] sm:$0xff] %v2812_v12 }
 0x2f5   : > { %v2412_v3 = vpop.f32.mrb[52].mxu1 }
 0x2f6   : > { %v2813_v28 = vadd.f32 %v5654_v26, %v2412_v3  ;;  %v2414_v37 = vpop.f32.mrb[53].mxu1 }
 0x2f8   : > { %2877 = vst [vmem:[%s5675_s9 + $0xf0] sm:$0xff] %v2813_v28 }
 0x2fa   : > { %v2417_v13 = vpop.f32.mrb[54].mxu1 }
 0x2fb   : > { %v2814_v51 = vadd.f32 %v5654_v26, %v2417_v13  ;;  %v2419_v61 = vpop.f32.mrb[55].mxu1 }
 0x2fd   : > { %2878 = vst [vmem:[%s5675_s9 + $0xf8] sm:$0xff] %v2814_v51 }
 0x2ff   : > { %v2422_v21 = vpop.f32.mrb[56].mxu1 }
 0x300   : > { %v2815_v47 = vadd.f32 %v5654_v26, %v2422_v21  ;;  %v2424_v9 = vpop.f32.mrb[57].mxu1 }
 0x302   : > { %2879 = vst [vmem:[%s5675_s9 + $0x100] sm:$0xff] %v2815_v47 }
 0x304   : > { %v2427_v43 = vpop.f32.mrb[58].mxu1 }
 0x305   : > { %v2816_v23 = vadd.f32 %v5654_v26, %v2427_v43  ;;  %v2429_v0 = vpop.f32.mrb[59].mxu1 }
 0x307   : > { %2880 = vst [vmem:[%s5675_s9 + $0x108] sm:$0xff] %v2816_v23 }
 0x309   : > { %v2432_v63 = vpop.f32.mrb[60].mxu1 }
 0x30a   : > { %v2817_v40 = vadd.f32 %v5654_v26, %v2432_v63  ;;  %v2434_v24 = vpop.f32.mrb[61].mxu1 }
 0x30c   : > { %2881 = vst [vmem:[%s5675_s9 + $0x110] sm:$0xff] %v2817_v40 }
 0x30e   : > { %v2437_v14 = vpop.f32.mrb[62].mxu1 }
 0x30f   : > { %v2818_v44 = vadd.f32 %v5654_v26, %v2437_v14  ;;  %v2439_v33 = vpop.f32.mrb[63].mxu1 }
 0x311   : > { %2882 = vst [vmem:[%s5675_s9 + $0x118] sm:$0xff] %v2818_v44 }
 0x313   : > { %v2442_v16 = vpop.f32.mrb[64].mxu1 }
 0x314   : > { %v2819_v22 = vadd.f32 %v5654_v26, %v2442_v16  ;;  %v2444_v8 = vpop.f32.mrb[65].mxu1 }
 0x316   : > { %2883 = vst [vmem:[%s5675_s9 + $0x120] sm:$0xff] %v2819_v22 }
 0x318   : > { %v2447_v10 = vpop.f32.mrb[66].mxu1 }
 0x319   : > { %v2820_v2 = vadd.f32 %v5654_v26, %v2447_v10  ;;  %v2449_v53 = vpop.f32.mrb[67].mxu1 }
 0x31b   : > { %2884 = vst [vmem:[%s5675_s9 + $0x128] sm:$0xff] %v2820_v2 }
 0x31d   : > { %v2452_v17 = vpop.f32.mrb[68].mxu1 }
 0x31e   : > { %v2821_v25 = vadd.f32 %v5654_v26, %v2452_v17  ;;  %v2454_v50 = vpop.f32.mrb[69].mxu1 }
 0x320   : > { %2885 = vst [vmem:[%s5675_s9 + $0x130] sm:$0xff] %v2821_v25 }
 0x322   : > { %v2457_v57 = vpop.f32.mrb[70].mxu1 }
 0x323   : > { %v2822_v34 = vadd.f32 %v5654_v26, %v2457_v57  ;;  %v2459_v19 = vpop.f32.mrb[71].mxu1 }
 0x325   : > { %2886 = vst [vmem:[%s5675_s9 + $0x138] sm:$0xff] %v2822_v34 }
 0x327   : > { %v2462_v41 = vpop.f32.mrb[72].mxu1 }
 0x328   : > { %v2823_v5 = vadd.f32 %v5654_v26, %v2462_v41  ;;  %v2464_v59 = vpop.f32.mrb[73].mxu1 }
 0x32a   : > { %2887 = vst [vmem:[%s5675_s9 + $0x140] sm:$0xff] %v2823_v5 }
 0x32c   : > { %v2467_v36 = vpop.f32.mrb[74].mxu1 }
 0x32d   : > { %v2824_v1 = vadd.f32 %v5654_v26, %v2467_v36  ;;  %v2469_v29 = vpop.f32.mrb[75].mxu1 }
 0x32f   : > { %2888 = vst [vmem:[%s5675_s9 + $0x148] sm:$0xff] %v2824_v1 }
 0x331   : > { %v2472_v6 = vpop.f32.mrb[76].mxu1 }
 0x332   : > { %v2825_v49 = vadd.f32 %v5654_v26, %v2472_v6  ;;  %v2474_v60 = vpop.f32.mrb[77].mxu1 }
 0x334   : > { %2889 = vst [vmem:[%s5675_s9 + $0x150] sm:$0xff] %v2825_v49 }
 0x336   : > { %v2477_v30 = vpop.f32.mrb[78].mxu1 }
 0x337   : > { %v2826_v4 = vadd.f32 %v5654_v26, %v2477_v30  ;;  %v2479_v46 = vpop.f32.mrb[79].mxu1 }
 0x339   : > { %2890 = vst [vmem:[%s5675_s9 + $0x158] sm:$0xff] %v2826_v4 }
 0x33b   : > { %v2482_v56 = vpop.f32.mrb[80].mxu1 }
 0x33c   : > { %v2827_v31 = vadd.f32 %v5654_v26, %v2482_v56  ;;  %v2484_v35 = vpop.f32.mrb[81].mxu1 }
 0x33e   : > { %2891 = vst [vmem:[%s5675_s9 + $0x160] sm:$0xff] %v2827_v31 }
 0x340   : > { %v2487_v15 = vpop.f32.mrb[82].mxu1 }
 0x341   : > { %v2828_v39 = vadd.f32 %v5654_v26, %v2487_v15  ;;  %v2489_v52 = vpop.f32.mrb[83].mxu1 }
 0x343   : > { %2892 = vst [vmem:[%s5675_s9 + $0x168] sm:$0xff] %v2828_v39 }
 0x344   : > { %v2492_v18 = vpop.f32.mrb[84].mxu1 }
 0x345   : > { %v2829_v62 = vadd.f32 %v5654_v26, %v2492_v18  ;;  %v2494_v7 = vpop.f32.mrb[85].mxu1 }
 0x347   : > { %2893 = vst [vmem:[%s5675_s9 + $0x170] sm:$0xff] %v2829_v62 }
 0x349   : > { %v2497_v55 = vpop.f32.mrb[86].mxu1 }
 0x34a   : > { %v2830_v27 = vadd.f32 %v5654_v26, %v2497_v55  ;;  %v2499_v20 = vpop.f32.mrb[87].mxu1 }
 0x34c   : > { %2894 = vst [vmem:[%s5675_s9 + $0x178] sm:$0xff] %v2830_v27 }
 0x34e   : > { %v2502_v45 = vpop.f32.mrb[88].mxu1 }
 0x34f   : > { %v2831_v32 = vadd.f32 %v5654_v26, %v2502_v45  ;;  %v2504_v42 = vpop.f32.mrb[89].mxu1 }
 0x351   : > { %2895 = vst [vmem:[%s5675_s9 + $0x180] sm:$0xff] %v2831_v32 }
 0x354   : > { %v2507_v54 = vpop.f32.mrb[90].mxu1 }
 0x355   : > { %v2832_v38 = vadd.f32 %v5654_v26, %v2507_v54  ;;  %v2509_v48 = vpop.f32.mrb[91].mxu1 }
 0x357   : > { %2896 = vst [vmem:[%s5675_s9 + $0x188] sm:$0xff] %v2832_v38 }
 0x358   : > { %v2512_v11 = vpop.f32.mrb[92].mxu1 }
 0x359   : > { %v2833_v12 = vadd.f32 %v5654_v26, %v2512_v11  ;;  %v2514_v58 = vpop.f32.mrb[93].mxu1 }
 0x35b   : > { %2897 = vst [vmem:[%s5675_s9 + $0x190] sm:$0xff] %v2833_v12 }
 0x35d   : > { %v2517_v3 = vpop.f32.mrb[94].mxu1 }
 0x35e   : > { %v2834_v28 = vadd.f32 %v5654_v26, %v2517_v3  ;;  %v2519_v37 = vpop.f32.mrb[95].mxu1 }
 0x360   : > { %2898 = vst [vmem:[%s5675_s9 + $0x198] sm:$0xff] %v2834_v28 }
 0x362   : > { %v2522_v13 = vpop.f32.mrb[96].mxu1 }
 0x363   : > { %v2835_v51 = vadd.f32 %v5654_v26, %v2522_v13  ;;  %v2524_v61 = vpop.f32.mrb[97].mxu1 }
 0x365   : > { %2899 = vst [vmem:[%s5675_s9 + $0x1a0] sm:$0xff] %v2835_v51 }
 0x367   : > { %v2527_v21 = vpop.f32.mrb[98].mxu1 }
 0x368   : > { %v2836_v47 = vadd.f32 %v5654_v26, %v2527_v21  ;;  %v2529_v9 = vpop.f32.mrb[99].mxu1 }
 0x36a   : > { %2900 = vst [vmem:[%s5675_s9 + $0x1a8] sm:$0xff] %v2836_v47 }
 0x36c   : > { %v2532_v43 = vpop.f32.mrb[100].mxu1 }
 0x36d   : > { %v2837_v23 = vadd.f32 %v5654_v26, %v2532_v43  ;;  %v2534_v0 = vpop.f32.mrb[101].mxu1 }
 0x36f   : > { %2901 = vst [vmem:[%s5675_s9 + $0x1b0] sm:$0xff] %v2837_v23 }
 0x371   : > { %v2537_v63 = vpop.f32.mrb[102].mxu1 }
 0x372   : > { %v2838_v40 = vadd.f32 %v5654_v26, %v2537_v63  ;;  %v2539_v24 = vpop.f32.mrb[103].mxu1 }
 0x374   : > { %2902 = vst [vmem:[%s5675_s9 + $0x1b8] sm:$0xff] %v2838_v40 }
 0x376   : > { %v2542_v14 = vpop.f32.mrb[104].mxu1 }
 0x377   : > { %v2839_v44 = vadd.f32 %v5654_v26, %v2542_v14  ;;  %v2544_v33 = vpop.f32.mrb[105].mxu1 }
 0x379   : > { %2903 = vst [vmem:[%s5675_s9 + $0x1c0] sm:$0xff] %v2839_v44 }
 0x37a   : > { %v2547_v16 = vpop.f32.mrb[106].mxu1 }
 0x37b   : > { %v2840_v22 = vadd.f32 %v5654_v26, %v2547_v16  ;;  %v2549_v8 = vpop.f32.mrb[107].mxu1 }
 0x37d   : > { %2904 = vst [vmem:[%s5675_s9 + $0x1c8] sm:$0xff] %v2840_v22 }
 0x37e   : > { %v2552_v10 = vpop.f32.mrb[108].mxu1 }
 0x37f   : > { %v2841_v2 = vadd.f32 %v5654_v26, %v2552_v10  ;;  %v2554_v53 = vpop.f32.mrb[109].mxu1 }
 0x381   : > { %2905 = vst [vmem:[%s5675_s9 + $0x1d0] sm:$0xff] %v2841_v2 }
 0x382   : > { %v2557_v17 = vpop.f32.mrb[110].mxu1 }
 0x383   : > { %v2842_v25 = vadd.f32 %v5654_v26, %v2557_v17  ;;  %v2559_v50 = vpop.f32.mrb[111].mxu1 }
 0x385   : > { %2906 = vst [vmem:[%s5675_s9 + $0x1d8] sm:$0xff] %v2842_v25 }
 0x386   : > { %v2562_v57 = vpop.f32.mrb[112].mxu1 }
 0x387   : > { %v2843_v34 = vadd.f32 %v5654_v26, %v2562_v57  ;;  %v2564_v19 = vpop.f32.mrb[113].mxu1 }
 0x389   : > { %2907 = vst [vmem:[%s5675_s9 + $0x1e0] sm:$0xff] %v2843_v34 }
 0x38a   : > { %v2567_v41 = vpop.f32.mrb[114].mxu1 }
 0x38b   : > { %v2844_v5 = vadd.f32 %v5654_v26, %v2567_v41  ;;  %v2569_v59 = vpop.f32.mrb[115].mxu1 }
 0x38d   : > { %2908 = vst [vmem:[%s5675_s9 + $0x1e8] sm:$0xff] %v2844_v5 }
 0x38e   : > { %v2572_v36 = vpop.f32.mrb[116].mxu1 }
 0x38f   : > { %v2845_v1 = vadd.f32 %v5654_v26, %v2572_v36  ;;  %v2574_v29 = vpop.f32.mrb[117].mxu1 }
 0x391   : > { %2909 = vst [vmem:[%s5675_s9 + $0x1f0] sm:$0xff] %v2845_v1 }
 0x392   : > { %v2577_v6 = vpop.f32.mrb[118].mxu1 }
 0x393   : > { %v2846_v49 = vadd.f32 %v5654_v26, %v2577_v6  ;;  %v2579_v60 = vpop.f32.mrb[119].mxu1 }
 0x395   : > { %2910 = vst [vmem:[%s5675_s9 + $0x1f8] sm:$0xff] %v2846_v49 }
 0x396   : > { %3622 = shalt.err (!%p3619_p11)
}
 0x397   : > { %s3623_s26 = scalar_lea.hbm %s5848_s7, 8192  ;;  %s3627_s6 = scalar_lea.hbm %s5906_s5, 16384 }
 0x398   : > { %p3624_p0 = scmp.ne.s32.totalorder %s5848_s7, %s3623_s26  ;;  %p3628_p6 = scmp.lt.u32.totalorder %s5848_s7, %s5906_s5 }
 0x399   : > { %p3629_p7 = scmp.lt.u32.totalorder %s3627_s6, %s3623_s26  ;;  %p3631_p8 = scmp.lt.u32.totalorder %s3623_s26, %s5848_s7 }
 0x39a   : > { %p3625_p4 = pnand %p3624_p0, %p5954_p12 }
 0x39b   : > { %p3630_p2 = por %p3629_p7, %p3628_p6 }
 0x39c   : > { %p3626_p13 = pneg %p3625_p4 }
 0x39d   : > { %p3632_p1 = por %p3631_p8, %p3630_p2 }
 0x39f   : > { %p3633_p10 = pnand %p3632_p1, %p3626_p13 }
 0x3a1   : > { %3636 = shalt.err (!%p3633_p10)
}
 0x3a2   : > { %s3707_s10 = smov 128   ;;  %s3708_s16 = smov 8  }
 0x3a3   : > { %3186 = dma.vmem_to_hbm [thread:$0]  (%p5954_p12), %s5850_s13, 8192, %s5848_s7, %s2912_s14, %s3707_s10, %s3707_s10, %s3708_s16  }
 0x3a4 PF: > { %s2940_s27 = sand.u32 1, %s3675_s18   ;;  %p5955_p3 = scmp.ne.s32.totalorder %s5916_s29, 0 }
 0x3a5   : > { %p5956_p5 = scmp.ge.s32.totalorder %s3695_s23, 2  ;;  %s2941_s21 = scalar_lea.sflag [#allocation5], %s2940_s27 }
 0x3a7   : > { %p3200_p9 = pnand %p5956_p5, %p5955_p3 }
 0x3a9   : > { %3670 = dma.done.wait (!%p3200_p9), %s2941_s21, 8192  }
 0x3aa   : > { %3672 = vsyncadd (!%p3200_p9), %s2941_s21, 4294959104  ;;  %s22_s23 = sadd.s32 1, %s3695_s23   ;;  %s5957_s18 = smov %s3679_s19 }
 0x3ab   : > { %p19_p11 = scmp.ge.s32.totalorder %s22_s23, 4   ;;  %s5958_s19 = smov %s3683_s20 }
 0x3ac   : > { %s5959_s20 = smov %s3884_s17  ;;  %s5960_s21 = smov %s3691_s22 }
 0x3ad   : > { %s5961_s22 = smov %s5963_s12  ;;  %21 = sbr.rel (!%p19_p11) target bundleno = 7 (0x7), region = 106 }
 0x3b4   :  { %2946 = vsyncpa [#allocation4], 1 }
 0x3b5   :  { %2948 = vsyncpa [#allocation4 + $0x1], 1 }
 0x3b6   :  { %2949 = vsyncpa [#allocation7], 1 }
 0x3b7   :  { %2950 = vsyncpa [#allocation5], 1 }
 0x3b8   :  { %2952 = vsyncpa [#allocation5 + $0x1], 1 }

</bundles_post_ra>
